<compile_context>
chip_gen: v5e
topology: v5e:2x2
jax: 0.10.0
libtpu: 0.0.40
codegen_flags: <defaults>
</compile_context>

<pallas_src>
import functools

import jax
import jax.numpy as jnp
from jax import lax
from jax.experimental import pallas as pl
from jax.experimental.pallas import tpu as pltpu

LANE = 128


def _round_up(x, m):
    return (x + m - 1) // m * m


def _pad_to(x, rows, cols):
    r, c = x.shape
    return jnp.pad(x, ((0, rows - r), (0, cols - c)))


def _silu_f32(x):
    # elementwise kept in f32 (v5e has no bf16 VALU/EUP)
    return x * (1.0 / (1.0 + jnp.exp(-x)))


# ----------------------------- edge MLP kernel ------------------------------

def edge_mlp_kernel(x_ref, w1_ref, b1_ref, w2_ref, b2_ref, o_ref):
    """Linear -> SiLU -> Linear -> SiLU over one tile of edges (bf16 MXU, f32 acc)."""
    x = x_ref[...]
    t = jnp.dot(x, w1_ref[...], preferred_element_type=jnp.float32) + b1_ref[...]
    t = _silu_f32(t)
    t = (jnp.dot(t.astype(jnp.bfloat16), w2_ref[...],
                 preferred_element_type=jnp.float32) + b2_ref[...])
    o_ref[...] = _silu_f32(t).astype(o_ref.dtype)


# ----------------------------- node model kernel ----------------------------

def node_mlp_kernel(row_ref, ef_ref, h_ref, w1x_ref, w1a_ref, b1_ref,
                    w2_ref, b2_ref, o_ref, acc_ref, cnt_ref, *,
                    node_tile, edge_tile, normalization_factor,
                    aggregation_method):
    """Grid = (node tiles [parallel], edge tiles [arbitrary reduction]).

    Per edge tile: build one-hot segment block from int32 row ids and
    accumulate seg @ edge_feat into an f32 scratch.  On the last edge tile run
    the node MLP + residual and write the output block.
    """
    k = pl.program_id(1)

    @pl.when(k == 0)
    def _():
        acc_ref[...] = jnp.zeros_like(acc_ref)
        if aggregation_method == "mean":
            cnt_ref[...] = jnp.zeros_like(cnt_ref)

    # one-hot segment tile: seg[n, e] = 1 iff row[e] == global node id n
    base = pl.program_id(0) * node_tile
    node_ids = base + lax.broadcasted_iota(jnp.int32, (node_tile, edge_tile), 0)
    rows = row_ref[...]                               # (1, edge_tile), -1 = pad
    seg = (node_ids == rows).astype(jnp.bfloat16)

    acc_ref[...] += jnp.dot(seg, ef_ref[...], preferred_element_type=jnp.float32)
    if aggregation_method == "mean":
        cnt_ref[...] += jnp.sum(seg.astype(jnp.float32), axis=1, keepdims=True)

    @pl.when(k == pl.num_programs(1) - 1)
    def _():
        agg = acc_ref[...]
        if aggregation_method == "sum":
            agg = agg * (1.0 / normalization_factor)
        elif aggregation_method == "mean":
            cnt = cnt_ref[...]
            agg = agg / jnp.where(cnt == 0.0, 1.0, cnt)
        h = h_ref[...]
        t = (jnp.dot(h.astype(jnp.bfloat16), w1x_ref[...],
                     preferred_element_type=jnp.float32)
             + jnp.dot(agg.astype(jnp.bfloat16), w1a_ref[...],
                       preferred_element_type=jnp.float32)
             + b1_ref[...])
        t = _silu_f32(t)
        out = (jnp.dot(t.astype(jnp.bfloat16), w2_ref[...],
                       preferred_element_type=jnp.float32) + b2_ref[...])
        o_ref[...] = h + out          # residual (requires output_nf == input_nf)


# --------------------------------- wrapper -----------------------------------

def gcl_forward(params, h, edge_index, edge_attr, *, normalization_factor,
                aggregation_method, edge_tile=512, node_tile=128,
                vmem_limit_bytes=48 * 1024 * 1024):
    row, col = edge_index
    n_nodes, d_in = h.shape
    n_edges = row.shape[0]
    d_edge = 0 if edge_attr is None else edge_attr.shape[1]
    hidden_nf = params["w1e"].shape[1]
    d_out = params["w2n"].shape[1]
    assert d_out == d_in, "residual connection requires output_nf == input_nf"
    assert params["w1n"].shape[0] == d_in + hidden_nf, "nodes_att_dim == 0 only"

    # lane-friendly padded feature dims (multiples of 128)
    d_ein = 2 * d_in + d_edge
    d_ein_p = _round_up(d_ein, LANE)
    hid_p = _round_up(hidden_nf, LANE)
    d_in_p = _round_up(d_in, LANE)
    d_out_p = _round_up(d_out, LANE)

    # tile sizes (clamped to the problem, (8,128)-aligned); pad E / N up front
    edge_tile = max(LANE, min(_round_up(edge_tile, LANE), _round_up(n_edges, LANE)))
    node_tile = max(8, min(_round_up(node_tile, 8), _round_up(n_nodes, 8)))
    e_pad = _round_up(n_edges, edge_tile)
    n_pad = _round_up(n_nodes, node_tile)

    f32, bf16 = jnp.float32, jnp.bfloat16

    # padded / casted parameters (zero padding is numerically exact here)
    w1e = _pad_to(params["w1e"].astype(f32), d_ein_p, hid_p).astype(bf16)
    b1e = _pad_to(params["b1e"].astype(f32), 1, hid_p)
    w2e = _pad_to(params["w2e"].astype(f32), hid_p, hid_p).astype(bf16)
    b2e = _pad_to(params["b2e"].astype(f32), 1, hid_p)
    w1n_x = _pad_to(params["w1n"][:d_in].astype(f32), d_in_p, hid_p).astype(bf16)
    w1n_a = _pad_to(params["w1n"][d_in:].astype(f32), hid_p, hid_p).astype(bf16)
    b1n = _pad_to(params["b1n"].astype(f32), 1, hid_p)
    w2n = _pad_to(params["w2n"].astype(f32), hid_p, d_out_p).astype(bf16)
    b2n = _pad_to(params["b2n"].astype(f32), 1, d_out_p)

    # ---- edge pass --------------------------------------------------------
    if edge_attr is None:
        edge_in = jnp.concatenate([h[row], h[col]], axis=1)
    else:
        edge_in = jnp.concatenate([h[row], h[col], edge_attr], axis=1)
    edge_in = jnp.pad(edge_in, ((0, e_pad - n_edges), (0, d_ein_p - d_ein)))
    edge_in = edge_in.astype(bf16)

    n_edge_tiles = e_pad // edge_tile
    edge_feat = pl.pallas_call(
        edge_mlp_kernel,
        out_shape=jax.ShapeDtypeStruct((e_pad, hid_p), bf16),
        grid=(n_edge_tiles,),
        in_specs=[
            pl.BlockSpec((edge_tile, d_ein_p), lambda i: (i, 0)),
            pl.BlockSpec((d_ein_p, hid_p), lambda i: (0, 0)),
            pl.BlockSpec((1, hid_p), lambda i: (0, 0)),
            pl.BlockSpec((hid_p, hid_p), lambda i: (0, 0)),
            pl.BlockSpec((1, hid_p), lambda i: (0, 0)),
        ],
        out_specs=pl.BlockSpec((edge_tile, hid_p), lambda i: (i, 0)),
        compiler_params=pltpu.CompilerParams(
            dimension_semantics=("parallel",),
            vmem_limit_bytes=vmem_limit_bytes),
    )(edge_in, w1e, b1e, w2e, b2e)

    # ---- node pass (segment-sum + node MLP + residual) ---------------------
    row_pad = jnp.full((1, e_pad), -1, jnp.int32).at[0, :n_edges].set(
        row.astype(jnp.int32))
    h_pad = _pad_to(h.astype(f32), n_pad, d_in_p)

    n_node_tiles = n_pad // node_tile
    node_kernel = functools.partial(
        node_mlp_kernel,
        node_tile=node_tile, edge_tile=edge_tile,
        normalization_factor=normalization_factor,
        aggregation_method=aggregation_method)

    h_out = pl.pallas_call(
        node_kernel,
        out_shape=jax.ShapeDtypeStruct((n_pad, d_out_p), f32),
        grid=(n_node_tiles, n_edge_tiles),
        in_specs=[
            pl.BlockSpec((1, edge_tile), lambda i, k: (0, k)),       # row ids
            pl.BlockSpec((edge_tile, hid_p), lambda i, k: (k, 0)),   # edge feat
            pl.BlockSpec((node_tile, d_in_p), lambda i, k: (i, 0)),  # h
            pl.BlockSpec((d_in_p, hid_p), lambda i, k: (0, 0)),      # w1n (x rows)
            pl.BlockSpec((hid_p, hid_p), lambda i, k: (0, 0)),       # w1n (agg rows)
            pl.BlockSpec((1, hid_p), lambda i, k: (0, 0)),           # b1n
            pl.BlockSpec((hid_p, d_out_p), lambda i, k: (0, 0)),     # w2n
            pl.BlockSpec((1, d_out_p), lambda i, k: (0, 0)),         # b2n
        ],
        out_specs=pl.BlockSpec((node_tile, d_out_p), lambda i, k: (i, 0)),
        scratch_shapes=[pltpu.VMEM((node_tile, hid_p), f32),   # agg accumulator
                        pltpu.VMEM((node_tile, LANE), f32)],   # counts ("mean")
        compiler_params=pltpu.CompilerParams(
            dimension_semantics=("parallel", "arbitrary"),
            vmem_limit_bytes=vmem_limit_bytes),
    )(row_pad, edge_feat, h_pad, w1n_x, w1n_a, b1n, w2n, b2n)

    return h_out[:n_nodes, :d_out]


# ------------------------------ pure-JAX reference ---------------------------

def gcl_reference(params, h, edge_index, edge_attr, *, normalization_factor,
                  aggregation_method):
    silu = lambda x: x * jax.nn.sigmoid(x)
    row, col = edge_index
    edge_in = jnp.concatenate([h[row], h[col], edge_attr], axis=1)
    ef = silu(edge_in @ params["w1e"] + params["b1e"])
    ef = silu(ef @ params["w2e"] + params["b2e"])
    n = h.shape[0]
    agg = jnp.zeros((n, ef.shape[1]), ef.dtype).at[row].add(ef)
    if aggregation_method == "sum":
        agg = agg / normalization_factor
    elif aggregation_method == "mean":
        cnt = jnp.zeros((n, ef.shape[1]), ef.dtype).at[row].add(jnp.ones_like(ef))
        cnt = jnp.where(cnt == 0, 1.0, cnt)
        agg = agg / cnt
    node_in = jnp.concatenate([h, agg], axis=1)
    t = silu(node_in @ params["w1n"] + params["b1n"])
    return h + (t @ params["w2n"] + params["b2n"])


def init_params(key, input_nf, output_nf, hidden_nf, edges_in_d):
    input_edge = 2 * input_nf + edges_in_d
    node_in = hidden_nf + input_nf      # nodes_att_dim = 0
    ks = jax.random.split(key, 8)
    s = 0.1
    return {
        "w1e": s * jax.random.normal(ks[0], (input_edge, hidden_nf), jnp.float32),
        "b1e": s * jax.random.normal(ks[1], (1, hidden_nf), jnp.float32),
        "w2e": s * jax.random.normal(ks[2], (hidden_nf, hidden_nf), jnp.float32),
        "b2e": s * jax.random.normal(ks[3], (1, hidden_nf), jnp.float32),
        "w1n": s * jax.random.normal(ks[4], (node_in, hidden_nf), jnp.float32),
        "b1n": s * jax.random.normal(ks[5], (1, hidden_nf), jnp.float32),
        "w2n": s * jax.random.normal(ks[6], (hidden_nf, output_nf), jnp.float32),
        "b2n": s * jax.random.normal(ks[7], (1, output_nf), jnp.float32),
    }


if __name__ == "__main__":
    key = jax.random.PRNGKey(0)
    k_h, k_e, k_p = jax.random.split(key, 3)

    n_nodes = 48
    input_nf = output_nf = 32            # residual requires output_nf == input_nf
    hidden_nf = 32
    edges_in_d = 2
    normalization_factor = 100.0

    # fully-connected graph with self-loops -> E = N*N = 2304 (multiple edge tiles)
    row = jnp.repeat(jnp.arange(n_nodes, dtype=jnp.int32), n_nodes)
    col = jnp.tile(jnp.arange(n_nodes, dtype=jnp.int32), n_nodes)
    n_edges = row.shape[0]

    h = jax.random.normal(k_h, (n_nodes, input_nf), jnp.float32)
    edge_attr = jax.random.normal(k_e, (n_edges, edges_in_d), jnp.float32)
    params = init_params(k_p, input_nf, output_nf, hidden_nf, edges_in_d)

    # small node_tile only to exercise the multi-tile parallel node axis on this
    # tiny demo; at realistic sizes use the defaults (node_tile=128, edge_tile>=512).
    for agg_method in ("sum", "mean"):
        out = gcl_forward(params, h, (row, col), edge_attr,
                          normalization_factor=normalization_factor,
                          aggregation_method=agg_method,
                          edge_tile=512, node_tile=16)
        out = jax.block_until_ready(out)
        ref = gcl_reference(params, h, (row, col), edge_attr,
                            normalization_factor=normalization_factor,
                            aggregation_method=agg_method)
        assert out.shape == (n_nodes, output_nf)
        # bf16 MXU operands (f32 accumulation) -> relaxed tolerance vs f32 reference
        assert jnp.allclose(out, ref, atol=2e-2, rtol=2e-2), \
            f"mismatch vs reference ({agg_method})"

    print("KERNEL_OK")
</pallas_src>

<mosaic_0001>
module attributes {stable_mosaic.version = 11 : i64} {
  func.func @edge_mlp_kernel(%arg0: i32, %arg1: memref<512x128xbf16, #tpu.memory_space<vmem>>, %arg2: memref<128x128xbf16, #tpu.memory_space<vmem>>, %arg3: memref<1x128xf32, #tpu.memory_space<vmem>>, %arg4: memref<128x128xbf16, #tpu.memory_space<vmem>>, %arg5: memref<1x128xf32, #tpu.memory_space<vmem>>, %arg6: memref<512x128xbf16, #tpu.memory_space<vmem>>) attributes {dimension_semantics = [#tpu.dimension_semantics<parallel>], iteration_bounds = array<i64: 5>, scalar_prefetch = 0 : i64, scratch_operands = 0 : i64, tpu.core_type = #tpu.core_type<tc>, window_params = [{transform_indices = @transform_0, window_bounds = array<i64: 512, 128>}, {pipeline_mode = #tpu.pipeline_mode<synchronous>, transform_indices = @transform_1, window_bounds = array<i64: 128, 128>}, {pipeline_mode = #tpu.pipeline_mode<synchronous>, transform_indices = @transform_2, window_bounds = array<i64: 1, 128>}, {pipeline_mode = #tpu.pipeline_mode<synchronous>, transform_indices = @transform_3, window_bounds = array<i64: 128, 128>}, {pipeline_mode = #tpu.pipeline_mode<synchronous>, transform_indices = @transform_4, window_bounds = array<i64: 1, 128>}, {transform_indices = @transform_5, window_bounds = array<i64: 512, 128>}]} {
    %c0 = arith.constant 0 : index
    %c0_0 = arith.constant 0 : index
    %0 = vector.load %arg1[%c0, %c0_0] : memref<512x128xbf16, #tpu.memory_space<vmem>>, vector<512x128xbf16>
    %c0_1 = arith.constant 0 : index
    %c0_2 = arith.constant 0 : index
    %1 = vector.load %arg2[%c0_1, %c0_2] : memref<128x128xbf16, #tpu.memory_space<vmem>>, vector<128x128xbf16>
    %cst = arith.constant dense<0.000000e+00> : vector<512x128xf32>
    %2 = tpu.matmul %0, %1, %cst {dimension_numbers = #tpu.dot_dimension_numbers<[1], [0], [0], [1], [0, 0, 1, 1], [], []>} : vector<512x128xbf16>, vector<128x128xbf16>, vector<512x128xf32> -> vector<512x128xf32>
    %c0_3 = arith.constant 0 : index
    %c0_4 = arith.constant 0 : index
    %3 = vector.load %arg3[%c0_3, %c0_4] : memref<1x128xf32, #tpu.memory_space<vmem>>, vector<1x128xf32>
    %4 = vector.broadcast %3 : vector<1x128xf32> to vector<512x128xf32>
    %5 = arith.addf %2, %4 : vector<512x128xf32>
    %cst_5 = arith.constant 0.000000e+00 : f32
    %6 = vector.broadcast %cst_5 : f32 to vector<512x128xf32>
    %7 = arith.subf %6, %5 : vector<512x128xf32>
    %8 = math.exp %7 : vector<512x128xf32>
    %cst_6 = arith.constant 1.000000e+00 : f32
    %9 = vector.broadcast %cst_6 : f32 to vector<512x128xf32>
    %10 = arith.addf %9, %8 : vector<512x128xf32>
    %cst_7 = arith.constant 1.000000e+00 : f32
    %11 = vector.broadcast %cst_7 : f32 to vector<512x128xf32>
    %12 = arith.divf %11, %10 : vector<512x128xf32>
    %13 = arith.mulf %5, %12 : vector<512x128xf32>
    %14 = arith.truncf %13 : vector<512x128xf32> to vector<512x128xbf16>
    %c0_8 = arith.constant 0 : index
    %c0_9 = arith.constant 0 : index
    %15 = vector.load %arg4[%c0_8, %c0_9] : memref<128x128xbf16, #tpu.memory_space<vmem>>, vector<128x128xbf16>
    %cst_10 = arith.constant dense<0.000000e+00> : vector<512x128xf32>
    %16 = tpu.matmul %14, %15, %cst_10 {dimension_numbers = #tpu.dot_dimension_numbers<[1], [0], [0], [1], [0, 0, 1, 1], [], []>} : vector<512x128xbf16>, vector<128x128xbf16>, vector<512x128xf32> -> vector<512x128xf32>
    %c0_11 = arith.constant 0 : index
    %c0_12 = arith.constant 0 : index
    %17 = vector.load %arg5[%c0_11, %c0_12] : memref<1x128xf32, #tpu.memory_space<vmem>>, vector<1x128xf32>
    %18 = vector.broadcast %17 : vector<1x128xf32> to vector<512x128xf32>
    %19 = arith.addf %16, %18 : vector<512x128xf32>
    %cst_13 = arith.constant 0.000000e+00 : f32
    %20 = vector.broadcast %cst_13 : f32 to vector<512x128xf32>
    %21 = arith.subf %20, %19 : vector<512x128xf32>
    %22 = math.exp %21 : vector<512x128xf32>
    %cst_14 = arith.constant 1.000000e+00 : f32
    %23 = vector.broadcast %cst_14 : f32 to vector<512x128xf32>
    %24 = arith.addf %23, %22 : vector<512x128xf32>
    %cst_15 = arith.constant 1.000000e+00 : f32
    %25 = vector.broadcast %cst_15 : f32 to vector<512x128xf32>
    %26 = arith.divf %25, %24 : vector<512x128xf32>
    %27 = arith.mulf %19, %26 : vector<512x128xf32>
    %28 = arith.truncf %27 : vector<512x128xf32> to vector<512x128xbf16>
    %c0_16 = arith.constant 0 : index
    %c0_17 = arith.constant 0 : index
    %29 = vector.load %arg6[%c0_16, %c0_17] : memref<512x128xbf16, #tpu.memory_space<vmem>>, vector<512x128xbf16>
    tpu.vector_store %arg6[%c0_16, %c0_17], %28 {strides = array<i32>} : memref<512x128xbf16, #tpu.memory_space<vmem>>, vector<512x128xbf16>,
    return
  }
  func.func @transform_0(%arg0: i32) -> (i32, i32) {
    %c0_i32 = arith.constant 0 : i32
    %c0_i32_0 = arith.constant 0 : i32
    return %arg0, %c0_i32 : i32, i32
  }
  func.func @transform_1(%arg0: i32) -> (i32, i32) {
    %c0_i32 = arith.constant 0 : i32
    %c0_i32_0 = arith.constant 0 : i32
    %c0_i32_1 = arith.constant 0 : i32
    return %c0_i32, %c0_i32_0 : i32, i32
  }
  func.func @transform_2(%arg0: i32) -> (i32, i32) {
    %c0_i32 = arith.constant 0 : i32
    %c0_i32_0 = arith.constant 0 : i32
    %c0_i32_1 = arith.constant 0 : i32
    return %c0_i32, %c0_i32_0 : i32, i32
  }
  func.func @transform_3(%arg0: i32) -> (i32, i32) {
    %c0_i32 = arith.constant 0 : i32
    %c0_i32_0 = arith.constant 0 : i32
    %c0_i32_1 = arith.constant 0 : i32
    return %c0_i32, %c0_i32_0 : i32, i32
  }
  func.func @transform_4(%arg0: i32) -> (i32, i32) {
    %c0_i32 = arith.constant 0 : i32
    %c0_i32_0 = arith.constant 0 : i32
    %c0_i32_1 = arith.constant 0 : i32
    return %c0_i32, %c0_i32_0 : i32, i32
  }
  func.func @transform_5(%arg0: i32) -> (i32, i32) {
    %c0_i32 = arith.constant 0 : i32
    %c0_i32_0 = arith.constant 0 : i32
    return %arg0, %c0_i32 : i32, i32
  }
}

</mosaic_0001>

<bundles_post_ra>
// kernel: tpu_custom_call.1
= control target key start
LH: loop header
LB: loop body
LE: loop exit
PB: predicated region body
PF: predicated region fallthrough
CT: control target
= control target key end

     0   :  { %10 = vsyncpa [#allocation3], 0  ;;  %s9172_s0 = inlined_call_operand.hbm [shape: bf16[2560,128], index: 0, kind: input, shape index: {}]   ;;  %s9173_s1 = inlined_call_operand.hbm [shape: bf16[128,128], index: 1, kind: input, shape index: {}]   ;;  %s9174_s2 = inlined_call_operand.vmem [shape: f32[1,128], index: 2, kind: input, shape index: {}]   ;;  %s9175_s3 = inlined_call_operand.hbm [shape: bf16[128,128], index: 3, kind: input, shape index: {}]   ;;  %s9176_s4 = inlined_call_operand.vmem [shape: f32[1,128], index: 4, kind: input, shape index: {}]   ;;  %s9177_s5 = inlined_call_operand.hbm [shape: bf16[2560,128], index: 5, kind: output, shape index: {}]  }
   0x1   :  { %12 = vsyncpa [#allocation3 + $0x1], 0 }
   0x2   :  { %13 = vsyncpa [#allocation6], 0 }
   0x3   :  { %14 = vsyncpa [#allocation4], 0 }
   0x4   :  { %16 = vsyncpa [#allocation4 + $0x1], 0  ;;  %s5094_s18 = smov 0   ;;  %s5096_s19 = smov 0  }
   0x5   :  { %s5098_s20 = smov 0   ;;  %s5100_s21 = smov 0  }
   0x6 LB: > { %s5115_s22 = sadd.s32 4294967295, %s5056_s21   ;;  %s3838_s23 = sadd.s32 4294967294, %s5056_s21   ;;  %s5056_s21 = sphi %s5100_s21, %s9540_s21   ;;  %s5052_s20 = sphi %s5098_s20, %s9539_s20   ;;  %s5048_s19 = sphi %s5096_s19, %s9538_s19   ;;  %s5044_s18 = sphi %s5094_s18, %s9537_s18  }
   0x7   : > { %p42_p0 = scmp.ne.s32.totalorder %s5048_s19, %s5044_s18  ;;  %p43_p1 = scmp.eq.s32.totalorder %s5115_s22, 0 }
   0x8   : > { %p150_p2 = scmp.eq.s32.totalorder %s5115_s22, 4  ;;  %p156_p3 = scmp.eq.s32.totalorder %s3838_s23, 4 }
   0x9   : > { %p5124_p4 = por %p43_p1, %p42_p0  ;;  %p3839_p5 = scmp.ge.s32.totalorder %s5056_s21, 1 }
   0xa   : > { %p5129_p6 = por %p156_p3, %p42_p0  ;;  %p163_p7 = scmp.lt.s32.totalorder %s5056_s21, 6 }
   0xb   : > { %s174_s28 = sshll.u32 %s9173_s1, 4  ;;  %s5058_s30 = smov [#allocation5]   ;;  %s175_s28 = int_to_ptr.hbm [resolvable:$true] %s174_s28 }
   0xc   : > { %p5137_p8 = pnand %p3839_p5, %p163_p7  ;;  %s176_s6 = sshll.u32 %s5058_s30, 4  ;;  %s177_s6 = int_to_ptr.vmem [resolvable:$true] %s176_s6 }
   0xd   : > { %s191_s9 = sshll.u32 %s9175_s3, 4  ;;  %s9178_s10 = smov 64   ;;  %s192_s9 = int_to_ptr.hbm [resolvable:$true] %s191_s9 }
   0xe   : > { %p4317_p9 = pneg %p5137_p8  ;;  %s5060_s11 = smov 4  }
   0xf   : > { %s5061_s12 = smov [#allocation7]   ;;  %s5155_s14 = sadd.s32 1, %s5056_s21  }
  0x10   : > { %p4318_p10 = pnand %p4317_p9, %p43_p1  ;;  %s193_s13 = sshll.u32 %s5061_s12, 4  ;;  %s194_s13 = int_to_ptr.vmem [resolvable:$true] %s193_s13 }
  0x11   : > { %s29_s15 = sadd.s32 1, %s5052_s20  ;;  %s26_s16 = ssub.s32 %s5056_s21, %s5155_s14 }
  0x12   : > { %4320 = dma.hbm_to_vmem [thread:$0]  (!%p4318_p10), %s175_s28, 1024, %s177_s6, [#allocation6], %s9178_s10, %s9178_s10, %s5060_s11  }
  0x13   : > { %4323 = dma.hbm_to_vmem [thread:$0]  (!%p4318_p10), %s192_s9, 1024, %s194_s13, [#allocation6], %s9178_s10, %s9178_s10, %s5060_s11  }
  0x14   : > { %p36_p11 = scmp.ne.s32.totalorder %s5052_s20, %s5048_s19  ;;  %p27_p12 = scmp.eq.s32.totalorder %s26_s16, 0 }
  0x15   : > { %p37_p13 = scmp.eq.s32.totalorder %s5056_s21, 0  ;;  %p4334_p3 = scmp.lt.s32.totalorder %s5056_s21, 5 }
  0x16   : > { %p5165_p0 = por %p150_p2, %p36_p11  ;;  %s210_s26 = sand.u32 1, %s5052_s20  }
  0x17   : > { %s5171_s23 = scalar_select %p27_p12, %s5052_s20, %s29_s15  }
  0x18   : > { %p38_p5 = por %p37_p13, %p36_p11  ;;  %s3843_s27 = sshll.u32 %s210_s26, 8 }
  0x19   : > { %s4048_s28 = sshll.u32 %s5056_s21, 8  ;;  %s214_s8 = scalar_lea.vmem [#allocation2], %s3843_s27 }
  0x1a   : > { %s219_s7 = scalar_lea.hbm %s9172_s0, %s4048_s28  ;;  %s222_s9 = sshll.u32 %s214_s8, 4  ;;  %s223_s9 = int_to_ptr.vmem [resolvable:$true] %s222_s9 }
  0x1b   : > { %s220_s12 = sshll.u32 %s219_s7, 4  ;;  %p5178_p2 = pnand %p4334_p3, %p38_p5  ;;  %s221_s12 = int_to_ptr.hbm [resolvable:$true] %s220_s12 }
  0x1c   : > { %s211_s15 = scalar_lea.sflag [#allocation3], %s210_s26  ;;  %s4956_s16 = sshra.s32 %s221_s12, 4  ;;  %s4957_s16 = int_to_ptr.hbm [resolvable:$true] %s4956_s16 }
  0x1d   : > { %s4958_s10 = scalar_lea.hbm %s4957_s16, 256  ;;  %p4960_p9 = pneg %p5178_p2 }
  0x1e   : > { %p4959_p7 = scmp.ne.s32.totalorder %s4957_s16, %s4958_s10  ;;  %s4963_s30 = scalar_lea.hbm %s9172_s0, 1280 }
  0x1f   : > { %p4964_p12 = scmp.lt.s32.totalorder %s4957_s16, %s9172_s0  ;;  %p4965_p13 = scmp.lt.s32.totalorder %s4963_s30, %s4958_s10 }
  0x20   : > { %p4961_p10 = pnand %p4960_p9, %p4959_p7 }
  0x21   : > { %p4966_p3 = por %p4965_p13, %p4964_p12 }
  0x22   : > { %p4962_p11 = pneg %p4961_p10 }
  0x24   : > { %p4967_p5 = pnand %p4966_p3, %p4962_p11 }
  0x26   : > { %4970 = shalt.err (!%p4967_p5)
}
  0x27   : > { %s9184_s26 = smov 64   ;;  %234 = sbr.rel (%p5137_p8) target bundleno = 856 (0x358), region = 40 }
  0x28   : > { %4327 = dma.hbm_to_vmem [thread:$0]  (!%p5178_p2), %s221_s12, 4096, %s223_s9, %s211_s15, %s9184_s26, %s9184_s26, %s5060_s11  }
  0x29   : > { %s5198_s8 = sand.u32 (!%p5137_p8), 1, %s5048_s19  }
  0x2a   : > { %s3847_s10 = sshll.u32 (!%p5137_p8), %s5198_s8, 8  ;;  %s237_s16 = scalar_lea.sflag (!%p5137_p8), [#allocation3], %s5198_s8 }
  0x2b   : > { %s5204_s28 = scalar_lea.vmem (!%p5137_p8), [#allocation2], %s3847_s10 }
  0x2c   : > { %5031 = dma.done.wait (%p5124_p4), %s237_s16, 4096  }
  0x2d   : > { %5033 = vsyncadd (%p5124_p4), %s237_s16, 4294963200 }
  0x2e   : > { %5035 = dma.done.wait (%p43_p1), [#allocation6], 2048  }
  0x2f   : > { %5037 = vsyncadd (%p43_p1), [#allocation6], 4294965248  ;;  %v4088_v0 = vld [vmem:[#allocation5 + $0x38] sm:$0xff]  ;;  %v4087_v1 = vld [vmem:[#allocation5 + $0x30] sm:$0xff]  ;;  %s6758_s30 = scalar_lea.vmem [#allocation8], %s3847_s10  ;;  %s4097_s11 = sshll.u32 %s5115_s22, 8 }
  0x30   : > { %604 = vmatpush.bf16.msra.mxu0 %v4088_v0  ;;  %4289 = vmatpush.bf16.msra.mxu2 %v4088_v0  ;;  %v4086_v2 = vld [vmem:[#allocation5 + $0x28] sm:$0xff]  ;;  %v4085_v3 = vld [vmem:[#allocation5 + $0x20] sm:$0xff]  ;;  %v4084_v4 = vld [vmem:[#allocation5 + $0x18] sm:$0xff]  ;;  %s3742_s13 = scalar_lea.hbm %s9177_s5, %s4097_s11  ;;  %s3743_s22 = sshll.u32 %s6758_s30, 4  ;;  %s3744_s22 = int_to_ptr.vmem [resolvable:$true] %s3743_s22 }
  0x31   : > { %v4083_v5 = vld [vmem:[#allocation5 + $0x10] sm:$0xff]  ;;  %v4082_v6 = vld [vmem:[#allocation5 + $0x8] sm:$0xff]  ;;  %v4081_v7 = vld [vmem:[#allocation5] sm:$0xff]  ;;  %s3745_s15 = sshll.u32 %s3742_s13, 4  ;;  %s3731_s27 = scalar_lea.sflag [#allocation4], %s5198_s8  ;;  %s3746_s15 = int_to_ptr.hbm [resolvable:$true] %s3745_s15 }
  0x32   : > { %v4049_v8 = vld [vmem:[%s5204_s28] sm:$0xff]  ;;  %v4050_v10 = vld [vmem:[%s5204_s28 + $0x8] sm:$0xff]  ;;  %v4051_v12 = vld [vmem:[%s5204_s28 + $0x10] sm:$0xff]  ;;  %s5000_s6 = sshra.s32 %s3746_s15, 4  ;;  %s5006_s16 = scalar_lea.hbm %s9177_s5, 1280  ;;  %s5001_s6 = int_to_ptr.hbm [resolvable:$true] %s5000_s6 }
  0x33   : > { %v4065_v9 = vld [vmem:[%s5204_s28 + $0x80] sm:$0xff]  ;;  %v4066_v11 = vld [vmem:[%s5204_s28 + $0x88] sm:$0xff]  ;;  %v4067_v13 = vld [vmem:[%s5204_s28 + $0x90] sm:$0xff]  ;;  %s5002_s7 = scalar_lea.hbm %s5001_s6, 256  ;;  %p5007_p2 = scmp.lt.s32.totalorder %s5001_s6, %s9177_s5 }
  0x34   : > { %605 = vmatpush.bf16.msra.mxu0 %v4087_v1  ;;  %4290 = vmatpush.bf16.msra.mxu2 %v4087_v1  ;;  %v4052_v14 = vld [vmem:[%s5204_s28 + $0x18] sm:$0xff]  ;;  %v4053_v16 = vld [vmem:[%s5204_s28 + $0x20] sm:$0xff]  ;;  %v4054_v18 = vld [vmem:[%s5204_s28 + $0x28] sm:$0xff]  ;;  %p5003_p1 = scmp.ne.s32.totalorder %s5001_s6, %s5002_s7  ;;  %p5008_p7 = scmp.lt.s32.totalorder %s5006_s16, %s5002_s7 }
  0x35   : > { %v4068_v15 = vld [vmem:[%s5204_s28 + $0x98] sm:$0xff]  ;;  %v4069_v17 = vld [vmem:[%s5204_s28 + $0xa0] sm:$0xff]  ;;  %v4070_v19 = vld [vmem:[%s5204_s28 + $0xa8] sm:$0xff] }
  0x36   : > { %v4055_v20 = vld [vmem:[%s5204_s28 + $0x30] sm:$0xff]  ;;  %v4096_v22 = vld [vmem:[#allocation7 + $0x38] sm:$0xff]  ;;  %v4094_v26 = vld [vmem:[#allocation7 + $0x28] sm:$0xff]  ;;  %p5004_p4 = pnand %p5003_p1, %p5165_p0  ;;  %p5009_p9 = por %p5008_p7, %p5007_p2 }
  0x37   : > { %v4071_v21 = vld [vmem:[%s5204_s28 + $0xb0] sm:$0xff]  ;;  %v4056_v23 = vld [vmem:[%s5204_s28 + $0x38] sm:$0xff]  ;;  %2153 = vmatpush.bf16.msra.mxu1 %v4096_v22  ;;  %4297 = vmatpush.bf16.msra.mxu3 %v4096_v22  ;;  %v4093_v27 = vld [vmem:[#allocation7 + $0x20] sm:$0xff] }
  0x38   : > { %606 = vmatpush.bf16.msra.mxu0 %v4086_v2  ;;  %4291 = vmatpush.bf16.msra.mxu2 %v4086_v2  ;;  %v4072_v24 = vld [vmem:[%s5204_s28 + $0xb8] sm:$0xff]  ;;  %v4095_v25 = vld [vmem:[#allocation7 + $0x30] sm:$0xff]  ;;  %v5233_v28 = vld [vmem:[%s9174_s2] ss:$0 sm:$0xff]  ;;  %p5005_p8 = pneg %p5004_p4 }
  0x39   : > { %v4057_v29 = vld [vmem:[%s5204_s28 + $0x40] sm:$0xff]  ;;  %v4092_v31 = vld [vmem:[#allocation7 + $0x18] sm:$0xff]  ;;  %v4091_v35 = vld [vmem:[#allocation7 + $0x10] sm:$0xff] }
  0x3a   : > { %v4073_v30 = vld [vmem:[%s5204_s28 + $0xc0] sm:$0xff]  ;;  %v4090_v39 = vld [vmem:[#allocation7 + $0x8] sm:$0xff]  ;;  %p5010_p10 = pnand %p5009_p9, %p5005_p8 }
  0x3b   : > { %2154 = vmatpush.bf16.msra.mxu1 %v4095_v25  ;;  %4298 = vmatpush.bf16.msra.mxu3 %v4095_v25  ;;  %v4089_v45 = vld [vmem:[#allocation7] sm:$0xff]  ;;  %v4058_v51 = vld [vmem:[%s5204_s28 + $0x48] sm:$0xff] }
  0x3c   : > { %607 = vmatpush.bf16.msra.mxu0 %v4085_v3  ;;  %4292 = vmatpush.bf16.msra.mxu2 %v4085_v3  ;;  %v4074_v52 = vld [vmem:[%s5204_s28 + $0xc8] sm:$0xff] }
  0x3f   : > { %2155 = vmatpush.bf16.msra.mxu1 %v4094_v26  ;;  %4299 = vmatpush.bf16.msra.mxu3 %v4094_v26 }
  0x40   : > { %608 = vmatpush.bf16.msra.mxu0 %v4084_v4  ;;  %4293 = vmatpush.bf16.msra.mxu2 %v4084_v4 }
  0x43   : > { %2156 = vmatpush.bf16.msra.mxu1 %v4093_v27  ;;  %4300 = vmatpush.bf16.msra.mxu3 %v4093_v27 }
  0x44   : > { %609 = vmatpush.bf16.msra.mxu0 %v4083_v5  ;;  %4294 = vmatpush.bf16.msra.mxu2 %v4083_v5 }
  0x47   : > { %2157 = vmatpush.bf16.msra.mxu1 %v4092_v31  ;;  %4301 = vmatpush.bf16.msra.mxu3 %v4092_v31 }
  0x48   : > { %610 = vmatpush.bf16.msra.mxu0 %v4082_v6  ;;  %4295 = vmatpush.bf16.msra.mxu2 %v4082_v6 }
  0x4b   : > { %2158 = vmatpush.bf16.msra.mxu1 %v4091_v35  ;;  %4302 = vmatpush.bf16.msra.mxu3 %v4091_v35 }
  0x4c   : > { %611 = vmatpush.bf16.msra.mxu0 %v4081_v7  ;;  %4296 = vmatpush.bf16.msra.mxu2 %v4081_v7 }
  0x4f   : > { %612 = vmatmul.bf16.vlgmr.msra.gmra.mxu0 %v4049_v8  ;;  %692 = vmatmul.bf16.vlgmr.msra.gmra.mxu2 %v4065_v9 }
  0x50   : > { %2159 = vmatpush.bf16.msra.mxu1 %v4090_v39  ;;  %4303 = vmatpush.bf16.msra.mxu3 %v4090_v39 }
  0x54   : > { %2160 = vmatpush.bf16.msra.mxu1 %v4089_v45  ;;  %4304 = vmatpush.bf16.msra.mxu3 %v4089_v45 }
  0x5f   : > { %617 = vmatmul.bf16.gmra.mxu0 %v4050_v10  ;;  %697 = vmatmul.bf16.gmra.mxu2 %v4066_v11 }
  0x6f   : > { %622 = vmatmul.bf16.gmra.mxu0 %v4051_v12  ;;  %702 = vmatmul.bf16.gmra.mxu2 %v4067_v13 }
  0x7f   : > { %627 = vmatmul.bf16.gmra.mxu0 %v4052_v14  ;;  %707 = vmatmul.bf16.gmra.mxu2 %v4068_v15 }
  0x8f   : > { %632 = vmatmul.bf16.gmra.mxu0 %v4053_v16  ;;  %712 = vmatmul.bf16.gmra.mxu2 %v4069_v17  ;;  %v4059_v17 = vld [vmem:[%s5204_s28 + $0x50] sm:$0xff] }
  0x9f   : > { %637 = vmatmul.bf16.gmra.mxu0 %v4054_v18  ;;  %717 = vmatmul.bf16.gmra.mxu2 %v4070_v19  ;;  %v4075_v18 = vld [vmem:[%s5204_s28 + $0xd0] sm:$0xff] }
  0xaf   : > { %642 = vmatmul.bf16.gmra.mxu0 %v4055_v20  ;;  %722 = vmatmul.bf16.gmra.mxu2 %v4071_v21 }
  0xbf   : > { %647 = vmatmul.bf16.gmra.mxu0 %v4056_v23  ;;  %727 = vmatmul.bf16.gmra.mxu2 %v4072_v24 }
  0xcc   : > { %v613_v32 = vpop.f32.mrf.mxu0 }
  0xcd   : > { %v5238_v33 = vadd.f32 %v5233_v28, %v613_v32 }
  0xcf   : > { %v773_v34 = vsub.f32 0.0, %v5238_v33  ;;  %652 = vmatmul.bf16.gmra.mxu0 %v4057_v29  ;;  %732 = vmatmul.bf16.gmra.mxu2 %v4073_v30 }
  0xd1   : > { %v837_v36 = vmul.f32 1.442695, %v773_v34 }
  0xd2   : > { %v693_v37 = vpop.f32.mrf.mxu2 }
  0xd3   : > { %4378 = vpow2.f32 %v837_v36  ;;  %v5242_v38 = vadd.f32 %v5233_v28, %v693_v37 }
  0xd4   : > { %v615_v40 = vpop.f32.mrf.mxu0 }
  0xd5   : > { %v805_v41 = vsub.f32 0.0, %v5242_v38  ;;  %v5246_v42 = vadd.f32 %v5233_v28, %v615_v40 }
  0xd7   : > { %v901_v43 = vmul.f32 1.442695, %v805_v41  ;;  %v774_v44 = vsub.f32 0.0, %v5246_v42 }
  0xd9   : > { %v4379_v46 = vpop.eup %4378  ;;  %4380 = vpow2.f32 %v901_v43  ;;  %v839_v47 = vmul.f32 1.442695, %v774_v44 }
  0xda   : > { %v5249_v48 = vadd.f32 1.0, %v4379_v46  ;;  %v695_v49 = vpop.f32.mrf.mxu2 }
  0xdb   : > { %4382 = vpow2.f32 %v839_v47  ;;  %v5252_v50 = vadd.f32 %v5233_v28, %v695_v49 }
  0xdc   : > { %4384 = vrcp.f32 %v5249_v48  ;;  %v618_v53 = vpop.f32.mrf.mxu0  ;;  %vm1034_vm0 = vweird.f32 %v5249_v48  ;;  %v1038_v25 = vand.u32 2147483647, %v5249_v48  ;;  %v1040_v30 = vand.u32 2147483648, %v5249_v48 }
  0xdd   : > { %v806_v54 = vsub.f32 0.0, %v5252_v50  ;;  %v5259_v55 = vadd.f32 %v5233_v28, %v618_v53 }
  0xde   : > { %vm5318_vm3 = vcmp.eq.f32.partialorder %v1038_v25, 8.507059e+37  ;;  %v1041_v47 = vor.u32 1.1754944e-38, %v1040_v30 }
  0xdf   : > { %v4381_v56 = vpop.eup %4380  ;;  %v903_v57 = vmul.f32 1.442695, %v806_v54  ;;  %v775_v58 = vsub.f32 0.0, %v5259_v55  ;;  %657 = vmatmul.bf16.gmra.mxu0 %v4058_v51  ;;  %737 = vmatmul.bf16.gmra.mxu2 %v4074_v52 }
  0xe0   : > { %v5262_v59 = vadd.f32 1.0, %v4381_v56 }
  0xe1   : > { %v4383_v60 = vpop.eup %4382  ;;  %4386 = vpow2.f32 %v903_v57  ;;  %v841_v61 = vmul.f32 1.442695, %v775_v58 }
  0xe2   : > { %v5264_v62 = vpop.eup %4384  ;;  %v698_v63 = vpop.f32.mrf.mxu2  ;;  %v5266_v0 = vadd.f32 1.0, %v4383_v60  ;;  %v1518_v60 = vand.u32 2147483647, %v5262_v59  ;;  %vm1514_vm8 = vweird.f32 %v5262_v59 }
  0xe3   : > { %4388 = vpow2.f32 %v841_v61  ;;  %v1030_v1 = vmul.f32 %v5264_v62, %v5249_v48  ;;  %v5272_v2 = vadd.f32 %v5233_v28, %v698_v63  ;;  %vm1035_vm1 = vweird.f32 %v5264_v62 }
  0xe4   : > { %4390 = vrcp.f32 %v5262_v59  ;;  %v620_v3 = vpop.f32.mrf.mxu0  ;;  %vm5312_vm2 = vmor %vm1034_vm0, %vm1035_vm1  ;;  %v1055_v49 = vand.u32 2147483648, %v5266_v0  ;;  %v1520_v61 = vand.u32 2147483648, %v5262_v59  ;;  %vm1049_vm5 = vweird.f32 %v5266_v0 }
  0xe5   : > { %4392 = vrcp.f32 %v5266_v0  ;;  %v5276_v4 = vadd.f32 %v5233_v28, %v620_v3  ;;  %v807_v5 = vsub.f32 0.0, %v5272_v2  ;;  %v1031_v8 = vsub.f32 1.0, %v1030_v1 }
  0xe6   : > { %vm5368_vm9 = vcmp.eq.f32.partialorder %v1518_v60, 8.507059e+37 }
  0xe7   : > { %v4387_v6 = vpop.eup %4386  ;;  %v776_v7 = vsub.f32 0.0, %v5276_v4  ;;  %v905_v10 = vmul.f32 1.442695, %v807_v5  ;;  %v1032_v19 = vmul.f32 %v5264_v62, %v1031_v8  ;;  %v1056_v8 = vor.u32 1.1754944e-38, %v1055_v49 }
  0xe8   : > { %v5280_v9 = vadd.f32 1.0, %v4387_v6 }
  0xe9   : > { %v4389_v11 = vpop.eup %4388  ;;  %v843_v12 = vmul.f32 1.442695, %v776_v7  ;;  %v1033_v29 = vadd.f32 %v5264_v62, %v1032_v19  ;;  %v4060_v19 = vld [vmem:[%s5204_s28 + $0x58] sm:$0xff] }
  0xea   : > { %v5282_v13 = vpop.eup %4390  ;;  %4394 = vrcp.f32 %v5280_v9  ;;  %v700_v14 = vpop.f32.mrf.mxu2  ;;  %v5293_v20 = vadd.f32 1.0, %v4389_v11  ;;  %vm1529_vm11 = vweird.f32 %v5280_v9 }
  0xeb   : > { %v5285_v15 = vpop.eup %4392  ;;  %4396 = vpow2.f32 %v905_v10  ;;  %v5288_v16 = vadd.f32 %v5233_v28, %v700_v14  ;;  %v1510_v22 = vmul.f32 %v5282_v13, %v5262_v59  ;;  %v1037_v46 = vsel %vm5312_vm2, %v5264_v62, %v1033_v29 }
  0xec   : > { %v623_v21 = vpop.f32.mrf.mxu0  ;;  %4398 = vpow2.f32 %v843_v12  ;;  %v1045_v24 = vmul.f32 %v5285_v15, %v5266_v0  ;;  %vm1050_vm4 = vweird.f32 %v5285_v15  ;;  %v1053_v62 = vand.u32 2147483647, %v5266_v0 }
  0xed   : > { %v5300_v23 = vadd.f32 %v5233_v28, %v623_v21  ;;  %v808_v26 = vsub.f32 0.0, %v5288_v16  ;;  %4400 = vrcp.f32 %v5293_v20  ;;  %v1511_v35 = vsub.f32 1.0, %v1510_v22  ;;  %vm5355_vm7 = vmor %vm1049_vm5, %vm1050_vm4  ;;  %v4076_v21 = vld [vmem:[%s5204_s28 + $0xd8] sm:$0xff] }
  0xee   : > { %v1046_v40 = vsub.f32 1.0, %v1045_v24  ;;  %v1042_v5 = vsel %vm5318_vm3, %v1041_v47, %v1037_v46  ;;  %vm1515_vm6 = vweird.f32 %v5282_v13  ;;  %vm1054_vm10 = vcmp.eq.f32.partialorder %v1053_v62, 8.507059e+37 }
  0xef   : > { %662 = vmatmul.bf16.gmra.mxu0 %v4059_v17  ;;  %742 = vmatmul.bf16.gmra.mxu2 %v4075_v18  ;;  %v777_v31 = vsub.f32 0.0, %v5300_v23  ;;  %v907_v44 = vmul.f32 1.442695, %v808_v26  ;;  %v1512_v52 = vmul.f32 %v5282_v13, %v1511_v35  ;;  %v1521_v18 = vor.u32 1.1754944e-38, %v1520_v61  ;;  %vm5379_vm12 = vmor %vm1514_vm8, %vm1515_vm6 }
  0xf0   : > { %v5306_v27 = vpop.eup %4394  ;;  %v1047_v58 = vmul.f32 %v5285_v15, %v1046_v40  ;;  %v1989_v29 = vmul.f32 %v1042_v5, %v5238_v33  ;;  %vm1064_vm13 = vweird.f32 %v5293_v20  ;;  %v1533_v33 = vand.u32 2147483647, %v5280_v9 }
  0xf1   : > { %v4397_v32 = vpop.eup %4396  ;;  %v845_v37 = vmul.f32 1.442695, %v777_v31  ;;  %v1525_v51 = vmul.f32 %v5306_v27, %v5280_v9  ;;  %v1513_v0 = vadd.f32 %v5282_v13, %v1512_v52  ;;  %v1068_v31 = vand.u32 2147483647, %v5293_v20 }
  0xf2   : > { %v5316_v36 = vadd.f32 1.0, %v4397_v32  ;;  %v703_v39 = vpop.f32.mrf.mxu2  ;;  %v4399_v41 = vpop.eup %4398  ;;  %v1048_v1 = vadd.f32 %v5285_v15, %v1047_v58  ;;  %vm1530_vm14 = vweird.f32 %v5306_v27  ;;  %vm1534_vm2 = vcmp.eq.f32.partialorder %v1533_v33, 8.507059e+37 }
  0xf3   : > { %v5323_v45 = vadd.f32 %v5233_v28, %v703_v39  ;;  %v5335_v54 = vpop.eup %4400  ;;  %v5337_v56 = vadd.f32 1.0, %v4399_v41  ;;  %v1526_v3 = vsub.f32 1.0, %v1525_v51  ;;  %v1517_v34 = vsel %vm5379_vm12, %v5282_v13, %v1513_v0  ;;  %vm1531_vm1 = vmor %vm1529_vm11, %vm1530_vm14 }
  0xf4   : > { %v625_v48 = vpop.f32.mrf.mxu0  ;;  %4402 = vrcp.f32 %v5316_v36  ;;  %v1060_v6 = vmul.f32 %v5335_v54, %v5293_v20  ;;  %v1052_v11 = vsel %vm5355_vm7, %v5285_v15, %v1048_v1  ;;  %vm5405_vm15 = vcmp.eq.f32.partialorder %v1068_v31, 8.507059e+37 }
  0xf5   : > { %v809_v53 = vsub.f32 0.0, %v5323_v45  ;;  %4404 = vpow2.f32 %v845_v37  ;;  %v5340_v57 = vadd.f32 %v5233_v28, %v625_v48  ;;  %v1057_v24 = vsel %vm1054_vm10, %v1056_v8, %v1052_v11 }
  0xf6   : > { %4406 = vpow2.f32 %v907_v44  ;;  %v1527_v26 = vmul.f32 %v5306_v27, %v1526_v3  ;;  %v1061_v30 = vsub.f32 1.0, %v1060_v6  ;;  %v1990_v32 = vmul.f32 %v1057_v24, %v5246_v42 }
  0xf7   : > { %v909_v63 = vmul.f32 1.442695, %v809_v53  ;;  %4408 = vrcp.f32 %v5337_v56  ;;  %v778_v10 = vsub.f32 0.0, %v5340_v57  ;;  %v1535_v44 = vand.u32 2147483648, %v5280_v9 }
  0xf8   : > { %v2053_v40 = vpack.c.bf16 %v1990_v32, %v1989_v29  ;;  %v1528_v13 = vadd.f32 %v5306_v27, %v1527_v26  ;;  %v1062_v46 = vmul.f32 %v5335_v54, %v1061_v30  ;;  %v1070_v48 = vand.u32 2147483648, %v5293_v20 }
  0xf9   : > { %4410 = vpow2.f32 %v909_v63  ;;  %v847_v35 = vmul.f32 1.442695, %v778_v10  ;;  %v1522_v52 = vsel %vm5368_vm9, %v1521_v18, %v1517_v34  ;;  %vm1065_vm0 = vweird.f32 %v5335_v54  ;;  %v4061_v34 = vld [vmem:[%s5204_s28 + $0x60] sm:$0xff] }
  0xfa   : > { %v705_v12 = vpop.f32.mrf.mxu2  ;;  %v5365_v14 = vpop.eup %4402  ;;  %2161 = vmatmul.bf16.vlgmr.msra.gmra.mxu1 %v2053_v40  ;;  %v1550_v63 = vand.u32 2147483648, %v5316_v36  ;;  %v1532_v1 = vsel %vm1531_vm1, %v5306_v27, %v1528_v13  ;;  %v1536_v3 = vor.u32 1.1754944e-38, %v1535_v44  ;;  %v1063_v6 = vadd.f32 %v5335_v54, %v1062_v46  ;;  %vm5435_vm3 = vmor %vm1064_vm13, %vm1065_vm0 }
  0xfb   : > { %v4405_v22 = vpop.eup %4404  ;;  %v1540_v37 = vmul.f32 %v5365_v14, %v5316_v36  ;;  %4412 = vpow2.f32 %v847_v35  ;;  %v5415_v53 = vadd.f32 %v5233_v28, %v705_v12  ;;  %v1548_v7 = vand.u32 2147483647, %v5316_v36  ;;  %v4077_v35 = vld [vmem:[%s5204_s28 + $0xe0] sm:$0xff] }
  0xfc   : > { %v628_v25 = vpop.f32.mrf.mxu0  ;;  %v4407_v15 = vpop.eup %4406  ;;  %v5392_v39 = vadd.f32 1.0, %v4405_v22  ;;  %v1537_v27 = vsel %vm1534_vm2, %v1536_v3, %v1532_v1  ;;  %v2021_v11 = vmul.f32 %v1522_v52, %v5242_v38  ;;  %v1071_v20 = vor.u32 1.1754944e-38, %v1070_v48 }
  0xfd   : > { %v5395_v41 = vadd.f32 %v5233_v28, %v628_v25  ;;  %v5397_v42 = vpop.eup %4408  ;;  %v5399_v43 = vadd.f32 1.0, %v4407_v15  ;;  %v1541_v60 = vsub.f32 1.0, %v1540_v37  ;;  %v810_v0 = vsub.f32 0.0, %v5415_v53 }
  0xfe   : > { %4414 = vrcp.f32 %v5392_v39  ;;  %v1075_v62 = vmul.f32 %v5397_v42, %v5337_v56  ;;  %v2022_v17 = vmul.f32 %v1537_v27, %v5252_v50  ;;  %vm1544_vm4 = vweird.f32 %v5316_v36 }
  0xff   : > { %667 = vmatmul.bf16.gmra.mxu0 %v4060_v19  ;;  %747 = vmatmul.bf16.gmra.mxu2 %v4076_v21  ;;  %v779_v49 = vsub.f32 0.0, %v5395_v41  ;;  %v4411_v51 = vpop.eup %4410  ;;  %4416 = vrcp.f32 %v5399_v43  ;;  %v1542_v12 = vmul.f32 %v5365_v14, %v1541_v60  ;;  %v1551_v21 = vor.u32 1.1754944e-38, %v1550_v63 }
 0x100   : > { %v5429_v8 = vadd.f32 1.0, %v4411_v51  ;;  %v1076_v18 = vsub.f32 1.0, %v1075_v62  ;;  %v1067_v25 = vsel %vm5435_vm3, %v5335_v54, %v1063_v6  ;;  %vm5453_vm5 = vcmp.eq.f32.partialorder %v1548_v7, 8.507059e+37 }
 0x101   : > { %v849_v61 = vmul.f32 1.442695, %v779_v49  ;;  %v4413_v19 = vpop.eup %4412  ;;  %v2069_v50 = vpack.c.bf16 %v2022_v17, %v2021_v11  ;;  %v1085_v26 = vand.u32 2147483648, %v5337_v56  ;;  %v911_v29 = vmul.f32 1.442695, %v810_v0 }
 0x102   : > { %v708_v58 = vpop.f32.mrf.mxu2  ;;  %v1077_v30 = vmul.f32 %v5397_v42, %v1076_v18  ;;  %vm1080_vm6 = vweird.f32 %v5397_v42  ;;  %v1543_v31 = vadd.f32 %v5365_v14, %v1542_v12  ;;  %vm1545_vm7 = vweird.f32 %v5365_v14 }
 0x103   : > { %4418 = vpow2.f32 %v849_v61  ;;  %v5441_v10 = vadd.f32 %v5233_v28, %v708_v58  ;;  %2241 = vmatmul.bf16.vlgmr.msra.gmra.mxu3 %v2069_v50  ;;  %vm1079_vm8 = vweird.f32 %v5337_v56  ;;  %v1083_v32 = vand.u32 2147483647, %v5337_v56  ;;  %vm5493_vm10 = vmor %vm1544_vm4, %vm1545_vm7 }
 0x104   : > { %v630_v5 = vpop.f32.mrf.mxu0  ;;  %v5448_v24 = vpop.eup %4414  ;;  %4420 = vrcp.f32 %v5429_v8  ;;  %v1072_v37 = vsel %vm5405_vm15, %v1071_v20, %v1067_v25  ;;  %v5475_v13 = vadd.f32 1.0, %v4413_v19  ;;  %v1078_v44 = vadd.f32 %v5397_v42, %v1077_v30  ;;  %vm5483_vm9 = vmor %vm1079_vm8, %vm1080_vm6 }
 0x105   : > { %v811_v22 = vsub.f32 0.0, %v5441_v10  ;;  %v5459_v15 = vpop.eup %4416  ;;  %v1090_v40 = vmul.f32 %v5448_v24, %v5392_v39  ;;  %v1100_v48 = vand.u32 2147483648, %v5392_v39  ;;  %v5498_v52 = vadd.f32 %v5233_v28, %v630_v5 }
 0x106   : > { %v1555_v47 = vmul.f32 %v5459_v15, %v5399_v43  ;;  %v1082_v58 = vsel %vm5483_vm9, %v5397_v42, %v1078_v44  ;;  %v1086_v60 = vor.u32 1.1754944e-38, %v1085_v26  ;;  %v1991_v62 = vmul.f32 %v1072_v37, %v5259_v55 }
 0x107   : > { %v913_v59 = vmul.f32 1.442695, %v811_v22  ;;  %v1547_v36 = vsel %vm5493_vm10, %v5365_v14, %v1543_v31  ;;  %vm1094_vm11 = vweird.f32 %v5392_v39  ;;  %vm1084_vm12 = vcmp.eq.f32.partialorder %v1083_v32, 8.507059e+37 }
 0x108   : > { %v1091_v63 = vsub.f32 1.0, %v1090_v40  ;;  %v1098_v1 = vand.u32 2147483647, %v5392_v39  ;;  %v1087_v42 = vsel %vm1084_vm12, %v1086_v60, %v1082_v58  ;;  %v1556_v5 = vsub.f32 1.0, %v1555_v47 }
 0x109   : > { %v4419_v33 = vpop.eup %4418  ;;  %4422 = vpow2.f32 %v913_v59  ;;  %v1992_v3 = vmul.f32 %v1087_v42, %v5276_v4  ;;  %v1552_v14 = vsel %vm5453_vm5, %v1551_v21, %v1547_v36  ;;  %v5519_v6 = vor.u32 1.1754944e-38, %v1100_v48  ;;  %v4078_v42 = vld [vmem:[%s5204_s28 + $0xe8] sm:$0xff] }
 0x10a   : > { %v5463_v54 = vpop.f32.mrf.mxu2  ;;  %v5479_v49 = vadd.f32 1.0, %v4419_v33  ;;  %4424 = vpow2.f32 %v911_v29  ;;  %v5503_v61 = vpop.eup %4420  ;;  %v780_v9 = vsub.f32 0.0, %v5498_v52  ;;  %v1557_v4 = vmul.f32 %v5459_v15, %v1556_v5 }
 0x10b   : > { %4426 = vrcp.f32 %v5475_v13  ;;  %v1570_v7 = vmul.f32 %v5503_v61, %v5429_v8  ;;  %v2054_v11 = vpack.c.bf16 %v1992_v3, %v1991_v62  ;;  %vm1560_vm13 = vweird.f32 %v5459_v15  ;;  %v4062_v62 = vld [vmem:[%s5204_s28 + $0x68] sm:$0xff] }
 0x10c   : > { %v633_v46 = vpop.f32.mrf.mxu0  ;;  %4428 = vrcp.f32 %v5479_v49  ;;  %v1092_v18 = vmul.f32 %v5448_v24, %v1091_v63  ;;  %vm1559_vm14 = vweird.f32 %v5399_v43  ;;  %v1565_v20 = vand.u32 2147483648, %v5399_v43 }
 0x10d   : > { %v5515_v55 = vadd.f32 %v5233_v28, %v633_v46  ;;  %2166 = vmatmul.bf16.gmra.mxu1 %v2054_v11  ;;  %v1558_v25 = vadd.f32 %v5459_v15, %v1557_v4  ;;  %v1563_v38 = vand.u32 2147483647, %v5399_v43  ;;  %vm5539_vm15 = vcmp.eq.f32.partialorder %v1098_v1, 8.507059e+37  ;;  %vm5548_vm0 = vmor %vm1559_vm14, %vm1560_vm13 }
 0x10e   : > { %v1578_v59 = vand.u32 2147483647, %v5429_v8  ;;  %v1580_v30 = vand.u32 2147483648, %v5429_v8  ;;  %vm1095_vm1 = vweird.f32 %v5448_v24  ;;  %v2023_v37 = vmul.f32 %v1552_v14, %v5272_v2 }
 0x10f   : > { %672 = vmatmul.bf16.gmra.mxu0 %v4061_v34  ;;  %752 = vmatmul.bf16.gmra.mxu2 %v4077_v35  ;;  %v4423_v27 = vpop.eup %4422  ;;  %v781_v12 = vsub.f32 0.0, %v5515_v55  ;;  %v1571_v34 = vsub.f32 1.0, %v1570_v7  ;;  %v1562_v33 = vsel %vm5548_vm0, %v5459_v15, %v1558_v25  ;;  %v851_v40 = vmul.f32 1.442695, %v780_v9  ;;  %vm5572_vm3 = vmor %vm1094_vm11, %vm1095_vm1 }
 0x110   : > { %v4425_v17 = vpop.eup %4424  ;;  %v5528_v19 = vadd.f32 1.0, %v4423_v27  ;;  %v1566_v44 = vor.u32 1.1754944e-38, %v1565_v20  ;;  %v1093_v46 = vadd.f32 %v5448_v24, %v1092_v18  ;;  %v5567_v48 = vadd.f32 %v5233_v28, %v5463_v54 }
 0x111   : > { %v853_v22 = vmul.f32 1.442695, %v781_v12  ;;  %v5537_v26 = vpop.eup %4426  ;;  %v5558_v35 = vadd.f32 1.0, %v4425_v17  ;;  %vm1564_vm2 = vcmp.eq.f32.partialorder %v1563_v38, 8.507059e+37  ;;  %vm1574_vm4 = vweird.f32 %v5429_v8 }
 0x112   : > { %v713_v0 = vpop.f32.mrf.mxu2  ;;  %4430 = vrcp.f32 %v5528_v19  ;;  %v5555_v32 = vpop.eup %4428  ;;  %v1567_v15 = vsel %vm1564_vm2, %v1566_v44, %v1562_v33  ;;  %v1105_v54 = vmul.f32 %v5537_v26, %v5475_v13  ;;  %v1572_v58 = vmul.f32 %v5503_v61, %v1571_v34 }
 0x113   : > { %v5535_v50 = vadd.f32 %v5233_v28, %v713_v0  ;;  %4432 = vpow2.f32 %v853_v22  ;;  %v1120_v2 = vmul.f32 %v5555_v32, %v5479_v49  ;;  %v2024_v39 = vmul.f32 %v1567_v15, %v5288_v16 }
 0x114   : > { %v635_v21 = vpop.f32.mrf.mxu0  ;;  %4434 = vrcp.f32 %v5558_v35  ;;  %vm1575_vm5 = vweird.f32 %v5503_v61  ;;  %v1106_v1 = vsub.f32 1.0, %v1105_v54  ;;  %v1097_v3 = vsel %vm5572_vm3, %v5448_v24, %v1093_v46 }
 0x115   : > { %v5553_v43 = vadd.f32 %v5233_v28, %v635_v21  ;;  %v813_v56 = vsub.f32 0.0, %v5535_v50  ;;  %4436 = vpow2.f32 %v851_v40  ;;  %v812_v5 = vsub.f32 0.0, %v5567_v48  ;;  %vm5632_vm11 = vmor %vm1574_vm4, %vm1575_vm5 }
 0x116   : > { %v2070_v14 = vpack.c.bf16 %v2024_v39, %v2023_v37  ;;  %v1121_v9 = vsub.f32 1.0, %v1120_v2  ;;  %v1107_v0 = vmul.f32 %v5537_v26, %v1106_v1  ;;  %vm1110_vm6 = vweird.f32 %v5537_v26 }
 0x117   : > { %v782_v51 = vsub.f32 0.0, %v5553_v43  ;;  %v917_v60 = vmul.f32 1.442695, %v813_v56  ;;  %v1573_v27 = vadd.f32 %v5503_v61, %v1572_v58  ;;  %v1113_v24 = vand.u32 2147483647, %v5475_v13 }
 0x118   : > { %v5586_v36 = vpop.eup %4430  ;;  %2246 = vmatmul.bf16.gmra.mxu3 %v2070_v14  ;;  %v1115_v12 = vand.u32 2147483648, %v5475_v13  ;;  %v1108_v17 = vadd.f32 %v5537_v26, %v1107_v0  ;;  %vm1109_vm7 = vweird.f32 %v5475_v13  ;;  %v1102_v22 = vsel %vm5539_vm15, %v5519_v6, %v1097_v3 }
 0x119   : > { %v855_v63 = vmul.f32 1.442695, %v782_v51  ;;  %4438 = vpow2.f32 %v917_v60  ;;  %v4433_v16 = vpop.eup %4432  ;;  %v1600_v11 = vmul.f32 %v5586_v36, %v5528_v19  ;;  %vm5613_vm8 = vcmp.eq.f32.partialorder %v1578_v59, 8.507059e+37  ;;  %vm5620_vm10 = vmor %vm1109_vm7, %vm1110_vm6 }
 0x11a   : > { %v715_v7 = vpop.f32.mrf.mxu2  ;;  %v5601_v4 = vadd.f32 1.0, %v4433_v16  ;;  %v5608_v21 = vpop.eup %4434  ;;  %v1581_v38 = vor.u32 1.1754944e-38, %v1580_v30  ;;  %vm1124_vm9 = vweird.f32 %v5479_v49  ;;  %v1122_v34 = vmul.f32 %v5555_v32, %v1121_v9 }
 0x11b   : > { %4440 = vpow2.f32 %v855_v63  ;;  %v5606_v18 = vadd.f32 %v5233_v28, %v715_v7  ;;  %v4437_v31 = vpop.eup %4436  ;;  %v915_v33 = vmul.f32 1.442695, %v812_v5  ;;  %v1112_v6 = vsel %vm5620_vm10, %v5537_v26, %v1108_v17 }
 0x11c   : > { %v638_v20 = vpop.f32.mrf.mxu0  ;;  %v1116_v29 = vor.u32 1.1754944e-38, %v1115_v12  ;;  %v1601_v37 = vsub.f32 1.0, %v1600_v11  ;;  %vm1114_vm12 = vcmp.eq.f32.partialorder %v1113_v24, 8.507059e+37  ;;  %v1577_v26 = vsel %vm5632_vm11, %v5503_v61, %v1573_v27 }
 0x11d   : > { %v814_v40 = vsub.f32 0.0, %v5606_v18  ;;  %v5638_v44 = vadd.f32 %v5233_v28, %v638_v20  ;;  %v1128_v56 = vand.u32 2147483647, %v5479_v49  ;;  %4442 = vrcp.f32 %v5601_v4 }
 0x11e   : > { %v1117_v8 = vsel %vm1114_vm12, %v1116_v29, %v1112_v6  ;;  %vm1125_vm13 = vweird.f32 %v5555_v32  ;;  %v1130_v51 = vand.u32 2147483648, %v5479_v49  ;;  %4444 = vpow2.f32 %v915_v33 }
 0x11f   : > { %677 = vmatmul.bf16.gmra.mxu0 %v4062_v62  ;;  %757 = vmatmul.bf16.gmra.mxu2 %v4078_v42  ;;  %v4439_v59 = vpop.eup %4438  ;;  %v1994_v15 = vmul.f32 %v1117_v8, %v5340_v57  ;;  %v783_v54 = vsub.f32 0.0, %v5638_v44  ;;  %v1585_v61 = vmul.f32 %v5608_v21, %v5558_v35  ;;  %v1993_v58 = vmul.f32 %v1102_v22, %v5300_v23  ;;  %vm5662_vm14 = vmor %vm1124_vm9, %vm1125_vm13  ;;  %v4079_v8 = vld [vmem:[%s5204_s28 + $0xf0] sm:$0xff] }
 0x120   : > { %v5646_v47 = vadd.f32 1.0, %v4439_v59  ;;  %v1123_v39 = vadd.f32 %v5555_v32, %v1122_v34  ;;  %v1602_v60 = vmul.f32 %v5586_v36, %v1601_v37  ;;  %v919_v62 = vmul.f32 1.442695, %v814_v40 }
 0x121   : > { %v4441_v46 = vpop.eup %4440  ;;  %v1582_v63 = vsel %vm5613_vm8, %v1581_v38, %v1577_v26  ;;  %vm5667_vm15 = vcmp.eq.f32.partialorder %v1128_v56, 8.507059e+37  ;;  %v5671_v23 = vadd.f32 1.0, %v4437_v31  ;;  %v2055_v42 = vpack.c.bf16 %v1994_v15, %v1993_v58  ;;  %v4063_v56 = vld [vmem:[%s5204_s28 + $0x70] sm:$0xff] }
 0x122   : > { %v5648_v2 = vadd.f32 1.0, %v4441_v46  ;;  %v1131_v5 = vor.u32 1.1754944e-38, %v1130_v51  ;;  %vm1604_vm0 = vweird.f32 %v5528_v19  ;;  %v857_v49 = vmul.f32 1.442695, %v783_v54  ;;  %v718_v7 = vpop.f32.mrf.mxu2 }
 0x123   : > { %v5674_v3 = vpop.eup %4442  ;;  %v1586_v14 = vsub.f32 1.0, %v1585_v61  ;;  %v1127_v16 = vsel %vm5662_vm14, %v5555_v32, %v1123_v39  ;;  %v1603_v9 = vadd.f32 %v5586_v36, %v1602_v60  ;;  %vm1605_vm1 = vweird.f32 %v5586_v36  ;;  %2171 = vmatmul.bf16.gmra.mxu1 %v2055_v42 }
 0x124   : > { %4446 = vrcp.f32 %v5648_v2  ;;  %v4445_v0 = vpop.eup %4444  ;;  %vm1590_vm2 = vweird.f32 %v5608_v21  ;;  %v1593_v11 = vand.u32 2147483647, %v5558_v35  ;;  %v1595_v24 = vand.u32 2147483648, %v5558_v35  ;;  %v640_v20 = vpop.f32.mrf.mxu0  ;;  %vm5697_vm3 = vmor %vm1604_vm0, %vm1605_vm1 }
 0x125   : > { %4448 = vrcp.f32 %v5646_v47  ;;  %v1587_v27 = vmul.f32 %v5608_v21, %v1586_v14  ;;  %v1608_v12 = vand.u32 2147483647, %v5528_v19  ;;  %v1150_v32 = vmul.f32 %v5674_v3, %v5601_v4 }
 0x126   : > { %4450 = vpow2.f32 %v919_v62  ;;  %v5691_v17 = vadd.f32 %v5233_v28, %v718_v7  ;;  %v1610_v38 = vand.u32 2147483648, %v5528_v19  ;;  %vm1589_vm4 = vweird.f32 %v5558_v35 }
 0x127   : > { %4452 = vrcp.f32 %v5671_v23  ;;  %v1588_v13 = vadd.f32 %v5608_v21, %v1587_v27  ;;  %v1132_v34 = vsel %vm5667_vm15, %v1131_v5, %v1127_v16  ;;  %v5708_v33 = vadd.f32 1.0, %v4445_v0  ;;  %vm1591_vm5 = vmor %vm1589_vm4, %vm1590_vm2 }
 0x128   : > { %4454 = vpow2.f32 %v857_v49  ;;  %v1596_v6 = vor.u32 1.1754944e-38, %v1595_v24  ;;  %v815_v19 = vsub.f32 0.0, %v5691_v17  ;;  %v1607_v29 = vsel %vm5697_vm3, %v5586_v36, %v1603_v9 }
 0x129   : > { %v1592_v35 = vsel %vm1591_vm5, %v5608_v21, %v1588_v13  ;;  %vm1594_vm6 = vcmp.eq.f32.partialorder %v1593_v11, 8.507059e+37  ;;  %v5718_v59 = vadd.f32 %v5233_v28, %v640_v20  ;;  %v1151_v37 = vsub.f32 1.0, %v1150_v32 }
 0x12a   : > { %v5693_v22 = vpop.eup %4446  ;;  %v1597_v46 = vsel %vm1594_vm6, %v1596_v6, %v1592_v35  ;;  %v921_v26 = vmul.f32 1.442695, %v815_v19  ;;  %v1611_v15 = vor.u32 1.1754944e-38, %v1610_v38  ;;  %v1158_v51 = vand.u32 2147483647, %v5601_v4  ;;  %v720_v14 = vpop.f32.mrf.mxu2 }
 0x12b   : > { %v5704_v31 = vpop.eup %4448  ;;  %v1165_v40 = vmul.f32 %v5693_v22, %v5648_v2  ;;  %v1160_v36 = vand.u32 2147483648, %v5601_v4  ;;  %v2025_v61 = vmul.f32 %v1582_v63, %v5323_v45  ;;  %v5732_v58 = vmul.f32 %v1132_v34, %v5395_v41 }
 0x12c   : > { %v4451_v30 = vpop.eup %4450  ;;  %v1630_v21 = vmul.f32 %v5704_v31, %v5646_v47  ;;  %vm1609_vm7 = vcmp.eq.f32.partialorder %v1608_v12, 8.507059e+37  ;;  %4456 = vrcp.f32 %v5708_v33  ;;  %v2026_v62 = vmul.f32 %v1597_v46, %v5415_v53  ;;  %v643_v11 = vpop.f32.mrf.mxu0 }
 0x12d   : > { %v5728_v54 = vpop.eup %4452  ;;  %v1612_v60 = vsel %vm1609_vm7, %v1611_v15, %v1607_v29  ;;  %4458 = vpow2.f32 %v921_v26  ;;  %v784_v57 = vsub.f32 0.0, %v5718_v59  ;;  %v1152_v1 = vmul.f32 %v5674_v3, %v1151_v37 }
 0x12e   : > { %v4455_v39 = vpop.eup %4454  ;;  %vm1154_vm8 = vweird.f32 %v5601_v4  ;;  %v1166_v45 = vsub.f32 1.0, %v1165_v40  ;;  %v5739_v63 = vadd.f32 1.0, %v4451_v30  ;;  %vm5741_vm9 = vcmp.eq.f32.partialorder %v1158_v51, 8.507059e+37 }
 0x12f   : > { %682 = vmatmul.bf16.gmra.mxu0 %v4063_v56  ;;  %762 = vmatmul.bf16.gmra.mxu2 %v4079_v8  ;;  %v1161_v42 = vor.u32 1.1754944e-38, %v1160_v36  ;;  %v1631_v5 = vsub.f32 1.0, %v1630_v21  ;;  %v1638_v49 = vand.u32 2147483647, %v5646_v47  ;;  %v5747_v53 = vmul.f32 %v1612_v60, %v5441_v10 }
 0x130   : > { %vm1155_vm10 = vweird.f32 %v5674_v3  ;;  %v5750_v7 = vadd.f32 1.0, %v4455_v39  ;;  %v2071_v16 = vpack.c.bf16 %v2026_v62, %v2025_v61  ;;  %vm1634_vm11 = vweird.f32 %v5646_v47 }
 0x131   : > { %v1640_v9 = vand.u32 2147483648, %v5646_v47  ;;  %vm1169_vm12 = vweird.f32 %v5648_v2  ;;  %v859_v0 = vmul.f32 1.442695, %v784_v57  ;;  %v1135_v27 = vmul.f32 %v5728_v54, %v5671_v23  ;;  %vm5767_vm13 = vmor %vm1154_vm8, %vm1155_vm10 }
 0x132   : > { %v5757_v24 = vpop.eup %4456  ;;  %v1153_v10 = vadd.f32 %v5674_v3, %v1152_v1  ;;  %v1167_v12 = vmul.f32 %v5693_v22, %v1166_v45  ;;  %v1173_v32 = vand.u32 2147483647, %v5648_v2  ;;  %4460 = vrcp.f32 %v5739_v63  ;;  %2251 = vmatmul.bf16.gmra.mxu3 %v2071_v16  ;;  %v723_v57 = vpop.f32.mrf.mxu2 }
 0x133   : > { %v4459_v20 = vpop.eup %4458  ;;  %v1632_v38 = vmul.f32 %v5704_v31, %v1631_v5  ;;  %v1175_v13 = vand.u32 2147483648, %v5648_v2  ;;  %4462 = vpow2.f32 %v859_v0  ;;  %v1136_v34 = vsub.f32 1.0, %v1135_v27 }
 0x134   : > { %4464 = vrcp.f32 %v5750_v7  ;;  %v5774_v6 = vadd.f32 1.0, %v4459_v20  ;;  %v1145_v19 = vand.u32 2147483648, %v5671_v23  ;;  %v5778_v29 = vadd.f32 %v5233_v28, %v720_v14  ;;  %v645_v14 = vpop.f32.mrf.mxu0 }
 0x135   : > { %vm5780_vm14 = vcmp.eq.f32.partialorder %v1638_v49, 8.507059e+37  ;;  %v1641_v35 = vor.u32 1.1754944e-38, %v1640_v9  ;;  %v1137_v30 = vmul.f32 %v5728_v54, %v1136_v34  ;;  %vm1140_vm15 = vweird.f32 %v5728_v54 }
 0x136   : > { %v1143_v37 = vand.u32 2147483647, %v5671_v23  ;;  %v1157_v40 = vsel %vm5767_vm13, %v5674_v3, %v1153_v10  ;;  %v1168_v46 = vadd.f32 %v5693_v22, %v1167_v12  ;;  %vm1170_vm0 = vweird.f32 %v5693_v22 }
 0x137   : > { %4466 = vrcp.f32 %v5774_v6  ;;  %v1633_v26 = vadd.f32 %v5704_v31, %v1632_v38  ;;  %vm1635_vm1 = vweird.f32 %v5704_v31  ;;  %v1138_v56 = vadd.f32 %v5728_v54, %v1137_v30  ;;  %vm5811_vm4 = vmor %vm1169_vm12, %vm1170_vm0 }
 0x138   : > { %vm1139_vm2 = vweird.f32 %v5671_v23  ;;  %v5797_v8 = vpop.eup %4460  ;;  %v1176_v15 = vor.u32 1.1754944e-38, %v1175_v13  ;;  %v1146_v3 = vor.u32 1.1754944e-38, %v1145_v19  ;;  %v816_v36 = vsub.f32 0.0, %v5778_v29  ;;  %vm5825_vm6 = vmor %vm1634_vm11, %vm1635_vm1  ;;  %v5875_v19 = vld [vmem:[%s9174_s2] ss:$0 sm:$0xff]  ;;  %v4064_v23 = vld [vmem:[%s5204_s28 + $0x78] sm:$0xff] }
 0x139   : > { %vm5799_vm3 = vmor %vm1139_vm2, %vm1140_vm15  ;;  %v5805_v21 = vadd.f32 %v5233_v28, %v643_v11  ;;  %v4463_v61 = vpop.eup %4462  ;;  %v1162_v39 = vsel %vm5741_vm9, %v1161_v42, %v1157_v40  ;;  %v1655_v60 = vand.u32 2147483648, %v5739_v63  ;;  %vm1144_vm5 = vcmp.eq.f32.partialorder %v1143_v37, 8.507059e+37 }
 0x13a   : > { %v1142_v62 = vsel %vm5799_vm3, %v5728_v54, %v1138_v56  ;;  %v5819_v28 = vpop.eup %4464  ;;  %v1172_v1 = vsel %vm5811_vm4, %v5693_v22, %v1168_v46  ;;  %v5832_v45 = vadd.f32 1.0, %v4463_v61  ;;  %v923_v54 = vmul.f32 1.442695, %v816_v36  ;;  %v725_v4 = vpop.f32.mrf.mxu2 }
 0x13b   : > { %v1147_v41 = vsel %vm1144_vm5, %v1146_v3, %v1142_v62  ;;  %v1637_v42 = vsel %vm5825_vm6, %v5704_v31, %v1633_v26  ;;  %v1645_v5 = vmul.f32 %v5797_v8, %v5739_v63  ;;  %v785_v49 = vsub.f32 0.0, %v5805_v21 }
 0x13c   : > { %v1996_v47 = vmul.f32 %v1147_v41, %v5498_v52  ;;  %vm1174_vm7 = vcmp.eq.f32.partialorder %v1173_v32, 8.507059e+37  ;;  %v1190_v22 = vand.u32 2147483648, %v5750_v7  ;;  %4468 = vrcp.f32 %v5832_v45  ;;  %v648_v51 = vpop.f32.mrf.mxu0 }
 0x13d   : > { %v5841_v16 = vpop.eup %4466  ;;  %v1615_v9 = vmul.f32 %v5757_v24, %v5708_v33  ;;  %v5848_v31 = vmul.f32 %v1162_v39, %v5515_v55  ;;  %v1177_v0 = vsel %vm1174_vm7, %v1176_v15, %v1172_v1  ;;  %v1653_v27 = vand.u32 2147483647, %v5739_v63 }
 0x13e   : > { %v1180_v52 = vmul.f32 %v5819_v28, %v5750_v7  ;;  %v5855_v11 = vsel %vm5780_vm14, %v1641_v35, %v1637_v42  ;;  %v5857_v10 = vor.u32 1.1754944e-38, %v1655_v60  ;;  %v2056_v12 = vpack.c.bf16 %v1996_v47, %v5732_v58  ;;  %v4080_v60 = vld [vmem:[%s5204_s28 + $0xf8] sm:$0xff] }
 0x13f   : > { %4470 = vpow2.f32 %v923_v54  ;;  %v1646_v32 = vsub.f32 1.0, %v1645_v5  ;;  %vm1184_vm8 = vweird.f32 %v5750_v7  ;;  %v1188_v55 = vand.u32 2147483647, %v5750_v7  ;;  %687 = vmatmul.bf16.gmra.mxu0 %v4064_v23  ;;  %767 = vmatmul.bf16.gmra.mxu2 %v4080_v60 }
 0x140   : > { %v1660_v20 = vmul.f32 %v5841_v16, %v5774_v6  ;;  %v861_v25 = vmul.f32 1.442695, %v785_v49  ;;  %v5865_v38 = vmul.f32 %v1177_v0, %v5553_v43  ;;  %vm1649_vm9 = vweird.f32 %v5739_v63  ;;  %2176 = vmatmul.bf16.gmra.mxu1 %v2056_v12 }
 0x141   : > { %vm1650_vm10 = vweird.f32 %v5797_v8  ;;  %v5869_v13 = vor.u32 1.1754944e-38, %v1190_v22  ;;  %v1616_v58 = vsub.f32 1.0, %v1615_v9  ;;  %v1181_v34 = vsub.f32 1.0, %v1180_v52 }
 0x142   : > { %vm1185_vm11 = vweird.f32 %v5819_v28  ;;  %4472 = vpow2.f32 %v861_v25  ;;  %v5878_v43 = vadd.f32 %v5875_v19, %v723_v57  ;;  %v5880_v35 = vpop.eup %4468  ;;  %vm1620_vm12 = vweird.f32 %v5757_v24  ;;  %vm5934_vm2 = vmor %vm1649_vm9, %vm1650_vm10 }
 0x143   : > { %v1617_v30 = vmul.f32 %v5757_v24, %v1616_v58  ;;  %v1625_v37 = vand.u32 2147483648, %v5708_v33  ;;  %v5886_v40 = vadd.f32 %v5875_v19, %v645_v14  ;;  %v1647_v46 = vmul.f32 %v5797_v8, %v1646_v32  ;;  %vm5945_vm3 = vmor %vm1184_vm8, %vm1185_vm11 }
 0x144   : > { %v1661_v26 = vsub.f32 1.0, %v1660_v20  ;;  %v1195_v56 = vmul.f32 %v5880_v35, %v5832_v45  ;;  %v1623_v15 = vand.u32 2147483647, %v5708_v33  ;;  %vm1619_vm13 = vweird.f32 %v5708_v33 }
 0x145   : > { %v4471_v3 = vpop.eup %4470  ;;  %v1618_v36 = vadd.f32 %v5757_v24, %v1617_v30  ;;  %v817_v61 = vsub.f32 0.0, %v5878_v43  ;;  %v786_v39 = vsub.f32 0.0, %v5886_v40  ;;  %v1182_v62 = vmul.f32 %v5819_v28, %v1181_v34  ;;  %vm5904_vm14 = vmor %vm1619_vm13, %vm1620_vm12 }
 0x146   : > { %v1670_v57 = vand.u32 2147483648, %v5774_v6  ;;  %v5900_v2 = vadd.f32 1.0, %v4471_v3  ;;  %v5909_v33 = vadd.f32 %v5875_v19, %v725_v4  ;;  %vm5911_vm15 = vcmp.eq.f32.partialorder %v1653_v27, 8.507059e+37  ;;  %v728_v4 = vpop.f32.mrf.mxu2 }
 0x147   : > { %vm5915_vm0 = vcmp.eq.f32.partialorder %v1188_v55, 8.507059e+37  ;;  %v1196_v42 = vsub.f32 1.0, %v1195_v56  ;;  %v1622_v5 = vsel %vm5904_vm14, %v5757_v24, %v1618_v36  ;;  %v1626_v47 = vor.u32 1.1754944e-38, %v1625_v37 }
 0x148   : > { %v925_v49 = vmul.f32 1.442695, %v817_v61  ;;  %v4473_v14 = vpop.eup %4472  ;;  %v1648_v22 = vadd.f32 %v5797_v8, %v1647_v46  ;;  %v1662_v9 = vmul.f32 %v5841_v16, %v1661_v26  ;;  %4474 = vrcp.f32 %v5900_v2 }
 0x149   : > { %vm1624_vm1 = vcmp.eq.f32.partialorder %v1623_v15, 8.507059e+37  ;;  %v5925_v0 = vadd.f32 1.0, %v4473_v14  ;;  %v863_v52 = vmul.f32 1.442695, %v786_v39  ;;  %v5928_v12 = vadd.f32 %v5875_v19, %v648_v51 }
 0x14a   : > { %v1627_v27 = vsel %vm1624_vm1, %v1626_v47, %v1622_v5  ;;  %v1183_v32 = vadd.f32 %v5819_v28, %v1182_v62  ;;  %4476 = vpow2.f32 %v925_v49  ;;  %v818_v20 = vsub.f32 0.0, %v5909_v33 }
 0x14b   : > { %v2028_v55 = vmul.f32 %v1627_v27, %v5567_v48  ;;  %vm1664_vm4 = vweird.f32 %v5774_v6  ;;  %v1668_v63 = vand.u32 2147483647, %v5774_v6  ;;  %v1197_v58 = vmul.f32 %v5880_v35, %v1196_v42 }
 0x14c   : > { %4478 = vrcp.f32 %v5925_v0  ;;  %v1652_v48 = vsel %vm5934_vm2, %v5797_v8, %v1648_v22  ;;  %vm1665_vm5 = vweird.f32 %v5841_v16  ;;  %v2057_v34 = vpack.c.bf16 %v5865_v38, %v5848_v31  ;;  %v650_v31 = vpop.f32.mrf.mxu0 }
 0x14d   : > { %v2072_v7 = vpack.c.bf16 %v2028_v55, %v5747_v53  ;;  %v1663_v30 = vadd.f32 %v5841_v16, %v1662_v9  ;;  %4480 = vpow2.f32 %v863_v52  ;;  %v927_v37 = vmul.f32 1.442695, %v818_v20  ;;  %vm5979_vm7 = vmor %vm1664_vm4, %vm1665_vm5 }
 0x14e   : > { %v787_v46 = vsub.f32 0.0, %v5928_v12  ;;  %v5962_v26 = vpop.eup %4474  ;;  %v1187_v8 = vsel %vm5945_vm3, %v5819_v28, %v1183_v32  ;;  %v1671_v56 = vor.u32 1.1754944e-38, %v1670_v57  ;;  %vm1200_vm6 = vweird.f32 %v5880_v35  ;;  %v730_v52 = vpop.f32.mrf.mxu2 }
 0x14f   : > { %v1205_v53 = vand.u32 2147483648, %v5832_v45  ;;  %2256 = vmatmul.bf16.gmra.mxu3 %v2072_v7  ;;  %v1198_v38 = vadd.f32 %v5880_v35, %v1197_v58  ;;  %v1675_v15 = vmul.f32 %v5962_v26, %v5900_v2  ;;  %4482 = vpow2.f32 %v927_v37 }
 0x150   : > { %v865_v51 = vmul.f32 1.442695, %v787_v46  ;;  %v4477_v3 = vpop.eup %4476  ;;  %v1657_v36 = vsel %vm5911_vm15, %v5857_v10, %v1652_v48  ;;  %vm1199_vm8 = vweird.f32 %v5832_v45  ;;  %v1203_v61 = vand.u32 2147483647, %v5832_v45  ;;  %2181 = vmatmul.bf16.gmra.mxu1 %v2057_v34 }
 0x151   : > { %v5986_v39 = vadd.f32 %v5875_v19, %v728_v4  ;;  %v1667_v10 = vsel %vm5979_vm7, %v5841_v16, %v1663_v30  ;;  %v1676_v60 = vsub.f32 1.0, %v1675_v15  ;;  %v5993_v62 = vadd.f32 1.0, %v4477_v3  ;;  %vm6000_vm9 = vmor %vm1199_vm8, %vm1200_vm6 }
 0x152   : > { %v5988_v23 = vpop.eup %4478  ;;  %4484 = vpow2.f32 %v865_v51  ;;  %v1192_v6 = vsel %vm5915_vm0, %v5869_v13, %v1187_v8  ;;  %v6008_v1 = vadd.f32 %v5875_v19, %v650_v31  ;;  %v2029_v42 = vmul.f32 %v5855_v11, %v5535_v50 }
 0x153   : > { %v1210_v57 = vmul.f32 %v5988_v23, %v5925_v0  ;;  %v819_v16 = vsub.f32 0.0, %v5986_v39  ;;  %v4481_v41 = vpop.eup %4480  ;;  %vm1669_vm10 = vcmp.eq.f32.partialorder %v1668_v63, 8.507059e+37  ;;  %v1202_v13 = vsel %vm6000_vm9, %v5880_v35, %v1198_v38 }
 0x154   : > { %v1206_v54 = vor.u32 1.1754944e-38, %v1205_v53  ;;  %v1672_v5 = vsel %vm1669_vm10, %v1671_v56, %v1667_v10  ;;  %v1677_v47 = vmul.f32 %v5962_v26, %v1676_v60  ;;  %v6016_v49 = vadd.f32 1.0, %v4481_v41  ;;  %v653_v63 = vpop.f32.mrf.mxu0 }
 0x155   : > { %v929_v14 = vmul.f32 1.442695, %v819_v16  ;;  %v4483_v22 = vpop.eup %4482  ;;  %v2030_v9 = vmul.f32 %v1657_v36, %v5606_v18  ;;  %v1999_v27 = vmul.f32 %v1192_v6, %v5638_v44  ;;  %vm1204_vm11 = vcmp.eq.f32.partialorder %v1203_v61, 8.507059e+37 }
 0x156   : > { %4486 = vrcp.f32 %v5993_v62  ;;  %v1207_v50 = vsel %vm1204_vm11, %v1206_v54, %v1202_v13  ;;  %v1211_v11 = vsub.f32 1.0, %v1210_v57  ;;  %v788_v35 = vsub.f32 0.0, %v6008_v1 }
 0x157   : > { %4488 = vrcp.f32 %v6016_v49  ;;  %v6024_v32 = vmul.f32 %v1672_v5, %v5691_v17  ;;  %v1683_v55 = vand.u32 2147483647, %v5900_v2  ;;  %v1685_v18 = vand.u32 2147483648, %v5900_v2 }
 0x158   : > { %v4485_v24 = vpop.eup %4484  ;;  %v6028_v20 = vadd.f32 1.0, %v4483_v22  ;;  %v1678_v44 = vadd.f32 %v5962_v26, %v1677_v47  ;;  %vm1680_vm12 = vweird.f32 %v5962_v26  ;;  %4490 = vpow2.f32 %v929_v14 }
 0x159   : > { %v6032_v25 = vadd.f32 1.0, %v4485_v24  ;;  %v2000_v58 = vmul.f32 %v1207_v50, %v5718_v59  ;;  %v1218_v48 = vand.u32 2147483647, %v5925_v0  ;;  %v1220_v17 = vand.u32 2147483648, %v5925_v0 }
 0x15a   : > { %4492 = vrcp.f32 %v6028_v20  ;;  %vm1679_vm13 = vweird.f32 %v5900_v2  ;;  %v1212_v7 = vmul.f32 %v5988_v23, %v1211_v11  ;;  %v2073_v34 = vpack.c.bf16 %v2030_v9, %v2029_v42 }
 0x15b   : > { %v867_v4 = vmul.f32 1.442695, %v788_v35  ;;  %vm6042_vm14 = vmor %vm1679_vm13, %vm1680_vm12  ;;  %vm6046_vm15 = vcmp.eq.f32.partialorder %v1683_v55, 8.507059e+37  ;;  %v1686_v46 = vor.u32 1.1754944e-38, %v1685_v18  ;;  %vm1214_vm0 = vweird.f32 %v5925_v0  ;;  %v733_v0 = vpop.f32.mrf.mxu2 }
 0x15c   : > { %v6040_v30 = vpop.eup %4486  ;;  %4494 = vrcp.f32 %v6032_v25  ;;  %v1682_v8 = vsel %vm6042_vm14, %v5962_v26, %v1678_v44  ;;  %vm1215_vm1 = vweird.f32 %v5988_v23  ;;  %v1700_v56 = vand.u32 2147483648, %v5993_v62  ;;  %v655_v50 = vpop.f32.mrf.mxu0 }
 0x15d   : > { %v4489_v2 = vpop.eup %4488  ;;  %v6058_v53 = vadd.f32 %v5875_v19, %v730_v52  ;;  %vm6060_vm2 = vcmp.eq.f32.partialorder %v1218_v48, 8.507059e+37  ;;  %v1221_v38 = vor.u32 1.1754944e-38, %v1220_v17  ;;  %v2058_v51 = vpack.c.bf16 %v2000_v58, %v1999_v27  ;;  %vm6076_vm3 = vmor %vm1214_vm0, %vm1215_vm1 }
 0x15e   : > { %v1225_v15 = vmul.f32 %v4489_v2, %v6016_v49  ;;  %v4491_v3 = vpop.eup %4490  ;;  %v1213_v36 = vadd.f32 %v5988_v23, %v1212_v7  ;;  %v1698_v26 = vand.u32 2147483647, %v5993_v62  ;;  %v1233_v28 = vand.u32 2147483647, %v6016_v49 }
 0x15f   : > { %2261 = vmatmul.bf16.gmra.mxu3 %v2073_v34  ;;  %4496 = vpow2.f32 %v867_v4  ;;  %v1687_v10 = vsel %vm6046_vm15, %v1686_v46, %v1682_v8  ;;  %v1690_v6 = vmul.f32 %v6040_v30, %v5993_v62  ;;  %v6082_v57 = vadd.f32 1.0, %v4491_v3 }
 0x160   : > { %v6068_v61 = vpop.eup %4492  ;;  %v1226_v45 = vsub.f32 1.0, %v1225_v15  ;;  %v6084_v16 = vor.u32 1.1754944e-38, %v1700_v56  ;;  %v1235_v41 = vand.u32 2147483648, %v6016_v49  ;;  %v820_v13 = vsub.f32 0.0, %v6058_v53  ;;  %2186 = vmatmul.bf16.gmra.mxu1 %v2058_v51 }
 0x161   : > { %v1705_v42 = vmul.f32 %v6068_v61, %v6028_v20  ;;  %vm1229_vm4 = vweird.f32 %v6016_v49  ;;  %vm1230_vm5 = vweird.f32 %v4489_v2  ;;  %v6094_v47 = vadd.f32 %v5875_v19, %v653_v63 }
 0x162   : > { %v6090_v54 = vpop.eup %4494  ;;  %v1227_v5 = vmul.f32 %v4489_v2, %v1226_v45  ;;  %v6097_v14 = vmul.f32 %v1687_v10, %v5778_v29  ;;  %v1217_v22 = vsel %vm6076_vm3, %v5988_v23, %v1213_v36  ;;  %v1691_v11 = vsub.f32 1.0, %v1690_v6  ;;  %vm1231_vm8 = vmor %vm1229_vm4, %vm1230_vm5 }
 0x163   : > { %v1706_v9 = vsub.f32 1.0, %v1705_v42  ;;  %v1240_v27 = vmul.f32 %v6090_v54, %v6032_v25  ;;  %vm1234_vm6 = vcmp.eq.f32.partialorder %v1233_v28, 8.507059e+37  ;;  %4498 = vrcp.f32 %v6082_v57 }
 0x164   : > { %v1228_v35 = vadd.f32 %v4489_v2, %v1227_v5  ;;  %vm1694_vm7 = vweird.f32 %v5993_v62  ;;  %v1236_v29 = vor.u32 1.1754944e-38, %v1235_v41  ;;  %v931_v55 = vmul.f32 1.442695, %v820_v13  ;;  %v658_v60 = vpop.f32.mrf.mxu0 }
 0x165   : > { %v4497_v52 = vpop.eup %4496  ;;  %v1707_v24 = vmul.f32 %v6068_v61, %v1706_v9  ;;  %v1241_v23 = vsub.f32 1.0, %v1240_v27  ;;  %v1222_v18 = vsel %vm6060_vm2, %v1221_v38, %v1217_v22  ;;  %v789_v58 = vsub.f32 0.0, %v6094_v47 }
 0x166   : > { %v1232_v44 = vsel %vm1231_vm8, %v4489_v2, %v1228_v35  ;;  %v6111_v63 = vadd.f32 1.0, %v4497_v52  ;;  %v1713_v17 = vand.u32 2147483647, %v6028_v20  ;;  %v1715_v7 = vand.u32 2147483648, %v6028_v20 }
 0x167   : > { %v1237_v48 = vsel %vm1234_vm6, %v1236_v29, %v1232_v44  ;;  %4500 = vpow2.f32 %v931_v55  ;;  %v1692_v49 = vmul.f32 %v6040_v30, %v1691_v11  ;;  %vm1695_vm9 = vweird.f32 %v6040_v30 }
 0x168   : > { %vm1709_vm10 = vweird.f32 %v6028_v20  ;;  %4502 = vrcp.f32 %v6111_v63  ;;  %v2001_v34 = vmul.f32 %v1222_v18, %v5805_v21  ;;  %v1708_v4 = vadd.f32 %v6068_v61, %v1707_v24  ;;  %vm6164_vm1 = vmor %vm1694_vm7, %vm1695_vm9 }
 0x169   : > { %vm1710_vm11 = vweird.f32 %v6068_v61  ;;  %v1242_v37 = vmul.f32 %v6090_v54, %v1241_v23  ;;  %v6124_v59 = vpop.eup %4498  ;;  %v2002_v46 = vmul.f32 %v1237_v48, %v5886_v40  ;;  %vm1244_vm12 = vweird.f32 %v6032_v25  ;;  %v735_v40 = vpop.f32.mrf.mxu2 }
 0x16a   : > { %v1248_v2 = vand.u32 2147483647, %v6032_v25  ;;  %v869_v8 = vmul.f32 1.442695, %v789_v58  ;;  %vm6129_vm13 = vcmp.eq.f32.partialorder %v1698_v26, 8.507059e+37  ;;  %vm6133_vm14 = vcmp.eq.f32.partialorder %v1713_v17, 8.507059e+37  ;;  %vm6143_vm15 = vmor %vm1709_vm10, %vm1710_vm11 }
 0x16b   : > { %v1716_v31 = vor.u32 1.1754944e-38, %v1715_v7  ;;  %v1250_v38 = vand.u32 2147483648, %v6032_v25  ;;  %v2074_v15 = vpack.c.bf16 %v6097_v14, %v6024_v32  ;;  %v1693_v51 = vadd.f32 %v6040_v30, %v1692_v49 }
 0x16c   : > { %vm1245_vm0 = vweird.f32 %v6090_v54  ;;  %4504 = vpow2.f32 %v869_v8  ;;  %v6149_v36 = vadd.f32 %v5875_v19, %v733_v0  ;;  %v1712_v32 = vsel %vm6143_vm15, %v6068_v61, %v1708_v4 }
 0x16d   : > { %v4501_v26 = vpop.eup %4500  ;;  %v1243_v28 = vadd.f32 %v6090_v54, %v1242_v37  ;;  %v1720_v20 = vmul.f32 %v6124_v59, %v6082_v57  ;;  %v6158_v10 = vadd.f32 %v5875_v19, %v655_v50  ;;  %v2059_v42 = vpack.c.bf16 %v2002_v46, %v2001_v34  ;;  %vm6178_vm2 = vmor %vm1244_vm12, %vm1245_vm0 }
 0x16e   : > { %v4503_v6 = vpop.eup %4502  ;;  %v6168_v41 = vadd.f32 1.0, %v4501_v26  ;;  %v821_v61 = vsub.f32 0.0, %v6149_v36  ;;  %v6172_v13 = vadd.f32 %v5875_v19, %v735_v40  ;;  %vm6182_vm3 = vcmp.eq.f32.partialorder %v1248_v2, 8.507059e+37  ;;  %v660_v2 = vpop.f32.mrf.mxu0 }
 0x16f   : > { %v1251_v5 = vor.u32 1.1754944e-38, %v1250_v38  ;;  %v1255_v14 = vmul.f32 %v4503_v6, %v6111_v63  ;;  %2266 = vmatmul.bf16.gmra.mxu3 %v2074_v15  ;;  %v790_v22 = vsub.f32 0.0, %v6158_v10  ;;  %v1697_v9 = vsel %vm6164_vm1, %v6040_v30, %v1693_v51 }
 0x170   : > { %v1263_v25 = vand.u32 2147483647, %v6111_v63  ;;  %4506 = vrcp.f32 %v6168_v41  ;;  %v6194_v27 = vadd.f32 %v5875_v19, %v658_v60  ;;  %v1717_v50 = vsel %vm6133_vm14, %v1716_v31, %v1712_v32  ;;  %2191 = vmatmul.bf16.gmra.mxu1 %v2059_v42 }
 0x171   : > { %v1256_v11 = vsub.f32 1.0, %v1255_v14  ;;  %v933_v35 = vmul.f32 1.442695, %v821_v61  ;;  %v871_v52 = vmul.f32 1.442695, %v790_v22  ;;  %v1247_v24 = vsel %vm6178_vm2, %v6090_v54, %v1243_v28  ;;  %v738_v49 = vpop.f32.mrf.mxu2 }
 0x172   : > { %v4505_v29 = vpop.eup %4504  ;;  %v1721_v23 = vsub.f32 1.0, %v1720_v20  ;;  %v1265_v30 = vand.u32 2147483648, %v6111_v63  ;;  %v822_v55 = vsub.f32 0.0, %v6172_v13  ;;  %vm1260_vm4 = vweird.f32 %v4503_v6 }
 0x173   : > { %v1257_v18 = vmul.f32 %v4503_v6, %v1256_v11  ;;  %v6203_v44 = vadd.f32 1.0, %v4505_v29  ;;  %4508 = vpow2.f32 %v933_v35  ;;  %v1702_v58 = vsel %vm6129_vm13, %v6084_v16, %v1697_v9 }
 0x174   : > { %4510 = vpow2.f32 %v871_v52  ;;  %v935_v48 = vmul.f32 1.442695, %v822_v55  ;;  %v791_v17 = vsub.f32 0.0, %v6194_v27  ;;  %v2034_v54 = vmul.f32 %v1717_v50, %v5909_v33 }
 0x175   : > { %v1258_v7 = vadd.f32 %v4503_v6, %v1257_v18  ;;  %vm1259_vm5 = vweird.f32 %v6111_v63  ;;  %4512 = vrcp.f32 %v6203_v44  ;;  %v1252_v4 = vsel %vm6182_vm3, %v1251_v5, %v1247_v24 }
 0x176   : > { %v6212_v34 = vpop.eup %4506  ;;  %v1722_v37 = vmul.f32 %v6124_v59, %v1721_v23  ;;  %vm1261_vm6 = vmor %vm1259_vm5, %vm1260_vm4  ;;  %v1266_v16 = vor.u32 1.1754944e-38, %v1265_v30  ;;  %4514 = vpow2.f32 %v935_v48  ;;  %vm1264_vm7 = vcmp.eq.f32.partialorder %v1263_v25, 8.507059e+37  ;;  %v663_v24 = vpop.f32.mrf.mxu0 }
 0x177   : > { %v1262_v46 = vsel %vm1261_vm6, %v4503_v6, %v1258_v7  ;;  %v1735_v33 = vmul.f32 %v6212_v34, %v6168_v41  ;;  %v873_v63 = vmul.f32 1.442695, %v791_v17  ;;  %v2033_v8 = vmul.f32 %v1702_v58, %v5878_v43 }
 0x178   : > { %vm1724_vm8 = vweird.f32 %v6082_v57  ;;  %v1267_v56 = vsel %vm1264_vm7, %v1266_v16, %v1262_v46  ;;  %v6223_v21 = vadd.f32 %v5875_v19, %v738_v49  ;;  %v2003_v38 = vmul.f32 %v1252_v4, %v5928_v12 }
 0x179   : > { %v4509_v31 = vpop.eup %4508  ;;  %vm1725_vm9 = vweird.f32 %v6124_v59  ;;  %v1730_v15 = vand.u32 2147483648, %v6082_v57  ;;  %v1736_v40 = vsub.f32 1.0, %v1735_v33  ;;  %v1723_v3 = vadd.f32 %v6124_v59, %v1722_v37  ;;  %v740_v52 = vpop.f32.mrf.mxu2 }
 0x17a   : > { %v4511_v51 = vpop.eup %4510  ;;  %v2004_v26 = vmul.f32 %v1267_v56, %v6008_v1  ;;  %v6230_v43 = vadd.f32 1.0, %v4509_v31  ;;  %v2075_v32 = vpack.c.bf16 %v2034_v54, %v2033_v8  ;;  %4516 = vpow2.f32 %v873_v63  ;;  %vm6253_vm11 = vmor %vm1724_vm8, %vm1725_vm9 }
 0x17b   : > { %v6232_v28 = vpop.eup %4512  ;;  %v1737_v20 = vmul.f32 %v6212_v34, %v1736_v40  ;;  %v6235_v60 = vadd.f32 1.0, %v4511_v51  ;;  %v6238_v12 = vadd.f32 %v5875_v19, %v660_v2  ;;  %vm1740_vm10 = vweird.f32 %v6212_v34 }
 0x17c   : > { %v4515_v6 = vpop.eup %4514  ;;  %v1270_v45 = vmul.f32 %v6232_v28, %v6203_v44  ;;  %4518 = vrcp.f32 %v6230_v43  ;;  %v823_v1 = vsub.f32 0.0, %v6223_v21  ;;  %v1728_v61 = vand.u32 2147483647, %v6082_v57 }
 0x17d   : > { %v1738_v42 = vadd.f32 %v6212_v34, %v1737_v20  ;;  %v1745_v0 = vand.u32 2147483648, %v6168_v41  ;;  %4520 = vrcp.f32 %v6235_v60  ;;  %vm1739_vm12 = vweird.f32 %v6168_v41 }
 0x17e   : > { %v1743_v5 = vand.u32 2147483647, %v6168_v41  ;;  %v2060_v14 = vpack.c.bf16 %v2004_v26, %v2003_v38  ;;  %v1727_v22 = vsel %vm6253_vm11, %v6124_v59, %v1723_v3  ;;  %vm6262_vm13 = vmor %vm1739_vm12, %vm1740_vm10  ;;  %v1271_v25 = vsub.f32 1.0, %v1270_v45 }
 0x17f   : > { %v6266_v50 = vadd.f32 1.0, %v4515_v6  ;;  %2271 = vmatmul.bf16.gmra.mxu3 %v2075_v32  ;;  %v792_v57 = vsub.f32 0.0, %v6238_v12  ;;  %v1731_v11 = vor.u32 1.1754944e-38, %v1730_v15  ;;  %v1742_v41 = vsel %vm6262_vm13, %v6212_v34, %v1738_v42 }
 0x180   : > { %v937_v35 = vmul.f32 1.442695, %v823_v1  ;;  %v4517_v29 = vpop.eup %4516  ;;  %vm1729_vm14 = vcmp.eq.f32.partialorder %v1728_v61, 8.507059e+37  ;;  %v1746_v59 = vor.u32 1.1754944e-38, %v1745_v0  ;;  %vm1744_vm15 = vcmp.eq.f32.partialorder %v1743_v5, 8.507059e+37  ;;  %2196 = vmatmul.bf16.gmra.mxu1 %v2060_v14 }
 0x181   : > { %4522 = vrcp.f32 %v6266_v50  ;;  %v1732_v30 = vsel %vm1729_vm14, %v1731_v11, %v1727_v22  ;;  %vm1274_vm0 = vweird.f32 %v6203_v44  ;;  %v1272_v58 = vmul.f32 %v6232_v28, %v1271_v25  ;;  %v743_v62 = vpop.f32.mrf.mxu2 }
 0x182   : > { %v6273_v23 = vpop.eup %4518  ;;  %v1747_v18 = vsel %vm1744_vm15, %v1746_v59, %v1742_v41  ;;  %v875_v48 = vmul.f32 1.442695, %v792_v57  ;;  %v6278_v17 = vadd.f32 %v5875_v19, %v740_v52  ;;  %v6281_v7 = vadd.f32 1.0, %v4517_v29  ;;  %v665_v57 = vpop.f32.mrf.mxu0 }
 0x183   : > { %v4521_v55 = vpop.eup %4520  ;;  %4524 = vpow2.f32 %v937_v35  ;;  %v6284_v49 = vadd.f32 %v5875_v19, %v663_v24  ;;  %vm1275_vm1 = vweird.f32 %v6232_v28  ;;  %v1278_v34 = vand.u32 2147483647, %v6203_v44  ;;  %v6346_v24 = vld [vmem:[%s9176_s4] ss:$0 sm:$0xff] }
 0x184   : > { %v1285_v54 = vmul.f32 %v4521_v55, %v6235_v60  ;;  %v1280_v4 = vand.u32 2147483648, %v6203_v44  ;;  %v1293_v37 = vand.u32 2147483647, %v6235_v60  ;;  %v2036_v16 = vmul.f32 %v1747_v18, %v6058_v53  ;;  %vm6307_vm3 = vmor %vm1274_vm0, %vm1275_vm1  ;;  %v2162_v18 = vpop.f32.mrf.mxu1 }
 0x185   : > { %v1750_v46 = vmul.f32 %v6273_v23, %v6230_v43  ;;  %v1295_v63 = vand.u32 2147483648, %v6235_v60  ;;  %v1273_v8 = vadd.f32 %v6232_v28, %v1272_v58  ;;  %vm1290_vm2 = vweird.f32 %v4521_v55 }
 0x186   : > { %v1286_v33 = vsub.f32 1.0, %v1285_v54  ;;  %4526 = vpow2.f32 %v875_v48  ;;  %v824_v56 = vsub.f32 0.0, %v6278_v17  ;;  %v793_v53 = vsub.f32 0.0, %v6284_v49 }
 0x187   : > { %v6294_v2 = vpop.eup %4522  ;;  %4528 = vrcp.f32 %v6281_v7  ;;  %v2035_v15 = vmul.f32 %v1732_v30, %v5986_v39  ;;  %vm6311_vm4 = vcmp.eq.f32.partialorder %v1278_v34, 8.507059e+37  ;;  %v1281_v3 = vor.u32 1.1754944e-38, %v1280_v4 }
 0x188   : > { %v1287_v31 = vmul.f32 %v4521_v55, %v1286_v33  ;;  %v1765_v38 = vmul.f32 %v6294_v2, %v6266_v50  ;;  %v1751_v32 = vsub.f32 1.0, %v1750_v46  ;;  %vm1289_vm5 = vweird.f32 %v6235_v60 }
 0x189   : > { %v4525_v26 = vpop.eup %4524  ;;  %vm1291_vm6 = vmor %vm1289_vm5, %vm1290_vm2  ;;  %vm1294_vm7 = vcmp.eq.f32.partialorder %v1293_v37, 8.507059e+37  ;;  %v1296_v39 = vor.u32 1.1754944e-38, %v1295_v63  ;;  %v939_v44 = vmul.f32 1.442695, %v824_v56  ;;  %v2076_v45 = vpack.c.bf16 %v2036_v16, %v2035_v15 }
 0x18a   : > { %v1288_v20 = vadd.f32 %v4521_v55, %v1287_v31  ;;  %v1766_v6 = vsub.f32 1.0, %v1765_v38  ;;  %v1277_v1 = vsel %vm6307_vm3, %v6232_v28, %v1273_v8  ;;  %v877_v0 = vmul.f32 1.442695, %v793_v53  ;;  %v745_v31 = vpop.f32.mrf.mxu2 }
 0x18b   : > { %v6321_v22 = vadd.f32 1.0, %v4525_v26  ;;  %v1752_v9 = vmul.f32 %v6273_v23, %v1751_v32  ;;  %vm1769_vm8 = vweird.f32 %v6266_v50  ;;  %v1773_v25 = vand.u32 2147483647, %v6266_v50 }
 0x18c   : > { %v1292_v61 = vsel %vm1291_vm6, %v4521_v55, %v1288_v20  ;;  %v1767_v42 = vmul.f32 %v6294_v2, %v1766_v6  ;;  %v4527_v5 = vpop.eup %4526  ;;  %v1282_v28 = vsel %vm6311_vm4, %v1281_v3, %v1277_v1  ;;  %4530 = vpow2.f32 %v939_v44  ;;  %v668_v3 = vpop.f32.mrf.mxu0 }
 0x18d   : > { %v1297_v14 = vsel %vm1294_vm7, %v1296_v39, %v1292_v61  ;;  %v6323_v60 = vpop.eup %4528  ;;  %v6330_v11 = vadd.f32 1.0, %v4527_v5  ;;  %v6333_v41 = vadd.f32 %v5875_v19, %v743_v62  ;;  %vm1770_vm9 = vweird.f32 %v6294_v2 }
 0x18e   : > { %v2006_v35 = vmul.f32 %v1297_v14, %v6158_v10  ;;  %v1768_v52 = vadd.f32 %v6294_v2, %v1767_v42  ;;  %4532 = vpow2.f32 %v877_v0  ;;  %vm1755_vm10 = vweird.f32 %v6273_v23  ;;  %vm6357_vm11 = vmor %vm1769_vm8, %vm1770_vm9 }
 0x18f   : > { %2276 = vmatmul.bf16.gmra.mxu3 %v2076_v45  ;;  %v1775_v29 = vand.u32 2147483648, %v6266_v50  ;;  %v1300_v59 = vmul.f32 %v6323_v60, %v6281_v7  ;;  %4534 = vrcp.f32 %v6321_v22  ;;  %v2005_v10 = vmul.f32 %v1282_v28, %v6094_v47 }
 0x190   : > { %v1753_v30 = vadd.f32 %v6273_v23, %v1752_v9  ;;  %4536 = vrcp.f32 %v6330_v11  ;;  %v6352_v55 = vadd.f32 %v5875_v19, %v665_v57  ;;  %v1760_v58 = vand.u32 2147483648, %v6230_v43 }
 0x191   : > { %v825_v54 = vsub.f32 0.0, %v6333_v41  ;;  %vm1754_vm12 = vweird.f32 %v6230_v43  ;;  %v1758_v47 = vand.u32 2147483647, %v6230_v43  ;;  %v1772_v34 = vsel %vm6357_vm11, %v6294_v2, %v1768_v52 }
 0x192   : > { %v2061_v4 = vpack.c.bf16 %v2006_v35, %v2005_v10  ;;  %v4531_v37 = vpop.eup %4530  ;;  %vm6369_vm13 = vmor %vm1754_vm12, %vm1755_vm10  ;;  %v1776_v16 = vor.u32 1.1754944e-38, %v1775_v29  ;;  %v1301_v46 = vsub.f32 1.0, %v1300_v59  ;;  %v6374_v63 = vadd.f32 %v6346_v24, %v2162_v18  ;;  %v2164_v59 = vpop.f32.mrf.mxu1 }
 0x193   : > { %v941_v33 = vmul.f32 1.442695, %v825_v54  ;;  %v1757_v43 = vsel %vm6369_vm13, %v6273_v23, %v1753_v30  ;;  %vm1774_vm14 = vcmp.eq.f32.partialorder %v1773_v25, 8.507059e+37  ;;  %v6379_v2 = vadd.f32 1.0, %v4531_v37 }
 0x194   : > { %v4533_v8 = vpop.eup %4532  ;;  %v794_v56 = vsub.f32 0.0, %v6352_v55  ;;  %2201 = vmatmul.bf16.gmra.mxu1 %v2061_v4  ;;  %v1761_v53 = vor.u32 1.1754944e-38, %v1760_v58  ;;  %v1777_v15 = vsel %vm1774_vm14, %v1776_v16, %v1772_v34  ;;  %vm1759_vm15 = vcmp.eq.f32.partialorder %v1758_v47, 8.507059e+37  ;;  %v670_v50 = vpop.f32.mrf.mxu0 }
 0x195   : > { %v6382_v38 = vpop.eup %4534  ;;  %v6384_v40 = vadd.f32 1.0, %v4533_v8  ;;  %4538 = vpow2.f32 %v941_v33  ;;  %v1302_v23 = vmul.f32 %v6323_v60, %v1301_v46  ;;  %v2322_v32 = vsub.f32 0.0, %v6374_v63 }
 0x196   : > { %v6386_v51 = vpop.eup %4536  ;;  %v1762_v26 = vsel %vm1759_vm15, %v1761_v53, %v1757_v43  ;;  %v6391_v20 = vadd.f32 %v5875_v19, %v745_v31  ;;  %v2038_v6 = vmul.f32 %v1777_v15, %v6172_v13  ;;  %v1780_v39 = vmul.f32 %v6382_v38, %v6321_v22 }
 0x197   : > { %4540 = vrcp.f32 %v6379_v2  ;;  %v879_v44 = vmul.f32 1.442695, %v794_v56  ;;  %v1315_v45 = vmul.f32 %v6386_v51, %v6330_v11  ;;  %v6401_v1 = vadd.f32 %v5875_v19, %v668_v3 }
 0x198   : > { %4542 = vrcp.f32 %v6384_v40  ;;  %v2037_v61 = vmul.f32 %v1762_v26, %v6149_v36  ;;  %vm1304_vm0 = vweird.f32 %v6281_v7  ;;  %v1308_v13 = vand.u32 2147483647, %v6281_v7  ;;  %v748_v26 = vpop.f32.mrf.mxu2 }
 0x199   : > { %vm1305_vm1 = vweird.f32 %v6323_v60  ;;  %v1310_v42 = vand.u32 2147483648, %v6281_v7  ;;  %v2386_v0 = vmul.f32 1.442695, %v2322_v32  ;;  %v826_v62 = vsub.f32 0.0, %v6391_v20 }
 0x19a   : > { %v1303_v14 = vadd.f32 %v6323_v60, %v1302_v23  ;;  %v1781_v9 = vsub.f32 1.0, %v1780_v39  ;;  %4544 = vpow2.f32 %v879_v44  ;;  %v2077_v25 = vpack.c.bf16 %v2038_v6, %v2037_v61  ;;  %vm6415_vm2 = vmor %vm1304_vm0, %vm1305_vm1 }
 0x19b   : > { %v4539_v5 = vpop.eup %4538  ;;  %v1316_v57 = vsub.f32 1.0, %v1315_v45  ;;  %4546 = vpow2.f32 %v2386_v0  ;;  %v943_v36 = vmul.f32 1.442695, %v826_v62  ;;  %v795_v28 = vsub.f32 0.0, %v6401_v1  ;;  %v2167_v45 = vpop.f32.mrf.mxu1 }
 0x19c   : > { %v1788_v29 = vand.u32 2147483647, %v6321_v22  ;;  %vm6422_vm3 = vcmp.eq.f32.partialorder %v1308_v13, 8.507059e+37  ;;  %v6426_v18 = vadd.f32 1.0, %v4539_v5  ;;  %v1311_v58 = vor.u32 1.1754944e-38, %v1310_v42 }
 0x19d   : > { %v6411_v35 = vpop.eup %4540  ;;  %v1782_v48 = vmul.f32 %v6382_v38, %v1781_v9  ;;  %v1790_v7 = vand.u32 2147483648, %v6321_v22  ;;  %4548 = vpow2.f32 %v943_v36  ;;  %v1307_v54 = vsel %vm6415_vm2, %v6323_v60, %v1303_v14  ;;  %v2242_v9 = vpop.f32.mrf.mxu3 }
 0x19e   : > { %v6420_v10 = vpop.eup %4542  ;;  %v1317_v47 = vmul.f32 %v6386_v51, %v1316_v57  ;;  %v881_v34 = vmul.f32 1.442695, %v795_v28  ;;  %v6435_v4 = vadd.f32 %v6346_v24, %v2164_v59  ;;  %vm1784_vm4 = vweird.f32 %v6321_v22 }
 0x19f   : > { %2281 = vmatmul.bf16.gmra.mxu3 %v2077_v25  ;;  %vm6438_vm5 = vcmp.eq.f32.partialorder %v1788_v29, 8.507059e+37  ;;  %v1795_v16 = vmul.f32 %v6411_v35, %v6379_v2  ;;  %v1330_v46 = vmul.f32 %v6420_v10, %v6384_v40  ;;  %vm1785_vm6 = vweird.f32 %v6382_v38 }
 0x1a0   : > { %v4545_v37 = vpop.eup %4544  ;;  %v1323_v33 = vand.u32 2147483647, %v6330_v11  ;;  %v1325_v8 = vand.u32 2147483648, %v6330_v11  ;;  %4550 = vrcp.f32 %v6426_v18  ;;  %v1312_v43 = vsel %vm6422_vm3, %v1311_v58, %v1307_v54  ;;  %vm6468_vm8 = vmor %vm1784_vm4, %vm1785_vm6 }
 0x1a1   : > { %v4547_v60 = vpop.eup %4546  ;;  %v1783_v56 = vadd.f32 %v6382_v38, %v1782_v48  ;;  %4552 = vpow2.f32 %v881_v34  ;;  %v1791_v53 = vor.u32 1.1754944e-38, %v1790_v7  ;;  %v1318_v15 = vadd.f32 %v6386_v51, %v1317_v47 }
 0x1a2   : > { %v6453_v31 = vadd.f32 1.0, %v4547_v60  ;;  %vm1320_vm7 = vweird.f32 %v6386_v51  ;;  %v2323_v3 = vsub.f32 0.0, %v6435_v4  ;;  %v1796_v32 = vsub.f32 1.0, %v1795_v16 }
 0x1a3   : > { %v4549_v23 = vpop.eup %4548  ;;  %v1331_v6 = vsub.f32 1.0, %v1330_v46  ;;  %v6458_v39 = vadd.f32 1.0, %v4545_v37  ;;  %v6462_v44 = vmul.f32 %v1312_v43, %v6194_v27  ;;  %vm1319_vm9 = vweird.f32 %v6330_v11 }
 0x1a4   : > { %4554 = vrcp.f32 %v6453_v31  ;;  %vm6473_vm10 = vcmp.eq.f32.partialorder %v1323_v33, 8.507059e+37  ;;  %v1326_v13 = vor.u32 1.1754944e-38, %v1325_v8  ;;  %v1787_v27 = vsel %vm6468_vm8, %v6382_v38, %v1783_v56  ;;  %vm6491_vm12 = vmor %vm1319_vm9, %vm1320_vm7 }
 0x1a5   : > { %vm1799_vm11 = vweird.f32 %v6379_v2  ;;  %v1803_v42 = vand.u32 2147483647, %v6379_v2  ;;  %v6482_v22 = vadd.f32 1.0, %v4549_v23  ;;  %v6485_v0 = vadd.f32 %v5875_v19, %v748_v26 }
 0x1a6   : > { %v6487_v62 = vpop.eup %4550  ;;  %v1805_v5 = vand.u32 2147483648, %v6379_v2  ;;  %vm1334_vm13 = vweird.f32 %v6384_v40  ;;  %v1338_v38 = vand.u32 2147483647, %v6384_v40  ;;  %v2388_v14 = vmul.f32 1.442695, %v2323_v3 }
 0x1a7   : > { %v4553_v25 = vpop.eup %4552  ;;  %v1322_v19 = vsel %vm6491_vm12, %v6386_v51, %v1318_v15  ;;  %v1797_v57 = vmul.f32 %v6411_v35, %v1796_v32  ;;  %v1332_v36 = vmul.f32 %v6420_v10, %v1331_v6  ;;  %4556 = vrcp.f32 %v6458_v39 }
 0x1a8   : > { %v6506_v28 = vsel %vm6438_vm5, %v1791_v53, %v1787_v27  ;;  %vm1335_vm14 = vweird.f32 %v6420_v10  ;;  %v1340_v52 = vand.u32 2147483648, %v6384_v40  ;;  %4558 = vrcp.f32 %v6482_v22 }
 0x1a9   : > { %v1810_v51 = vmul.f32 %v6487_v62, %v6426_v18  ;;  %4560 = vpow2.f32 %v2388_v14  ;;  %v827_v59 = vsub.f32 0.0, %v6485_v0  ;;  %v6517_v30 = vadd.f32 %v6346_v24, %v2242_v9  ;;  %vm6535_vm1 = vmor %vm1334_vm13, %vm1335_vm14 }
 0x1aa   : > { %v6511_v29 = vpop.eup %4554  ;;  %v1327_v58 = vsel %vm6473_vm10, %v1326_v13, %v1322_v19  ;;  %vm6521_vm15 = vcmp.eq.f32.partialorder %v1803_v42, 8.507059e+37  ;;  %v1820_v7 = vand.u32 2147483648, %v6426_v18  ;;  %v6526_v54 = vadd.f32 1.0, %v4553_v25 }
 0x1ab   : > { %v1798_v47 = vadd.f32 %v6411_v35, %v1797_v57  ;;  %vm1800_vm0 = vweird.f32 %v6411_v35  ;;  %v1806_v34 = vor.u32 1.1754944e-38, %v1805_v5  ;;  %v1333_v37 = vadd.f32 %v6420_v10, %v1332_v36 }
 0x1ac   : > { %vm6539_vm2 = vcmp.eq.f32.partialorder %v1338_v38, 8.507059e+37  ;;  %v1341_v60 = vor.u32 1.1754944e-38, %v1340_v52  ;;  %v1818_v33 = vand.u32 2147483647, %v6426_v18  ;;  %v2579_v8 = vmul.f32 %v6511_v29, %v6453_v31  ;;  %vm6556_vm3 = vmor %vm1799_vm11, %vm1800_vm0 }
 0x1ad   : > { %v6546_v43 = vpop.eup %4556  ;;  %v2008_v56 = vmul.f32 %v1327_v58, %v6238_v12  ;;  %v1811_v53 = vsub.f32 1.0, %v1810_v51  ;;  %v945_v40 = vmul.f32 1.442695, %v827_v59  ;;  %v2354_v15 = vsub.f32 0.0, %v6517_v30  ;;  %v6567_v12 = vld [vmem:[%s9174_s2] ss:$0 sm:$0xff]  ;;  %v750_v51 = vpop.f32.mrf.mxu2 }
 0x1ae   : > { %v6550_v3 = vpop.eup %4558  ;;  %v6560_v23 = vor.u32 1.1754944e-38, %v1820_v7  ;;  %v1353_v32 = vand.u32 2147483647, %v6458_v39  ;;  %4562 = vrcp.f32 %v6526_v54  ;;  %v6570_v6 = vadd.f32 %v6567_v12, %v670_v50 }
 0x1af   : > { %v4561_v2 = vpop.eup %4560  ;;  %v1802_v61 = vsel %vm6556_vm3, %v6411_v35, %v1798_v47  ;;  %v1337_v13 = vsel %vm6535_vm1, %v6420_v10, %v1333_v37  ;;  %vm1814_vm4 = vweird.f32 %v6426_v18  ;;  %vm1815_vm5 = vweird.f32 %v6487_v62 }
 0x1b0   : > { %v1355_v27 = vand.u32 2147483648, %v6458_v39  ;;  %v1345_v42 = vmul.f32 %v6546_v43, %v6458_v39  ;;  %v2580_v11 = vsub.f32 1.0, %v2579_v8  ;;  %v6583_v5 = vadd.f32 1.0, %v4561_v2  ;;  %vm6632_vm10 = vmor %vm1814_vm4, %vm1815_vm5 }
 0x1b1   : > { %4564 = vpow2.f32 %v945_v40  ;;  %v1812_v38 = vmul.f32 %v6487_v62, %v1811_v53  ;;  %v2450_v35 = vmul.f32 1.442695, %v2354_v15  ;;  %v796_v14 = vsub.f32 0.0, %v6570_v6 }
 0x1b2   : > { %v6588_v10 = vadd.f32 %v6346_v24, %v2167_v45  ;;  %v6592_v9 = vsel %vm6521_vm15, %v1806_v34, %v1802_v61  ;;  %v2589_v25 = vand.u32 2147483648, %v6453_v31  ;;  %v1825_v19 = vmul.f32 %v6550_v3, %v6482_v22  ;;  %v2244_v45 = vpop.f32.mrf.mxu3 }
 0x1b3   : > { %4566 = vrcp.f32 %v6583_v5  ;;  %v6600_v57 = vsel %vm6539_vm2, %v1341_v60, %v1337_v13  ;;  %v6602_v36 = vor.u32 1.1754944e-38, %v1355_v27  ;;  %vm2583_vm6 = vweird.f32 %v6453_v31 }
 0x1b4   : > { %v2587_v52 = vand.u32 2147483647, %v6453_v31  ;;  %v6606_v59 = vpop.eup %4562  ;;  %v1346_v58 = vsub.f32 1.0, %v1345_v42  ;;  %vm1350_vm7 = vweird.f32 %v6546_v43  ;;  %v2581_v48 = vmul.f32 %v6511_v29, %v2580_v11 }
 0x1b5   : > { %4568 = vpow2.f32 %v2450_v35  ;;  %v6611_v7 = vadd.f32 %v6487_v62, %v1812_v38  ;;  %v1835_v47 = vand.u32 2147483648, %v6482_v22  ;;  %v883_v34 = vmul.f32 1.442695, %v796_v14 }
 0x1b6   : > { %v2324_v37 = vsub.f32 0.0, %v6588_v10  ;;  %vm1349_vm8 = vweird.f32 %v6458_v39  ;;  %v2590_v16 = vor.u32 1.1754944e-38, %v2589_v25  ;;  %v1826_v46 = vsub.f32 1.0, %v1825_v19 }
 0x1b7   : > { %v4565_v50 = vpop.eup %4564  ;;  %v2062_v60 = vpack.c.bf16 %v2008_v56, %v6462_v44  ;;  %v6618_v8 = vadd.f32 %v6567_v12, %v750_v51  ;;  %vm6620_vm9 = vcmp.eq.f32.partialorder %v2587_v52, 8.507059e+37  ;;  %v1360_v40 = vmul.f32 %v6606_v59, %v6526_v54  ;;  %vm6689_vm3 = vmor %vm1349_vm8, %vm1350_vm7 }
 0x1b8   : > { %v6626_v15 = vadd.f32 1.0, %v4565_v50  ;;  %4570 = vpow2.f32 %v883_v34  ;;  %v2390_v26 = vmul.f32 1.442695, %v2324_v37  ;;  %v1347_v56 = vmul.f32 %v6546_v43, %v1346_v58 }
 0x1b9   : > { %v4567_v2 = vpop.eup %4566  ;;  %v2582_v61 = vadd.f32 %v6511_v29, %v2581_v48  ;;  %vm2584_vm11 = vweird.f32 %v6511_v29  ;;  %vm1829_vm12 = vweird.f32 %v6482_v22  ;;  %2206 = vmatmul.bf16.gmra.mxu1 %v2062_v60  ;;  %v828_v13 = vsub.f32 0.0, %v6618_v8 }
 0x1ba   : > { %v1817_v27 = vsel %vm6632_vm10, %v6487_v62, %v6611_v7  ;;  %v1833_v42 = vand.u32 2147483647, %v6482_v22  ;;  %v6646_v11 = vor.u32 1.1754944e-38, %v1835_v47  ;;  %v2594_v38 = vmul.f32 %v4567_v2, %v6583_v5  ;;  %vm6663_vm15 = vmor %vm2583_vm6, %vm2584_vm11 }
 0x1bb   : > { %v4569_v35 = vpop.eup %4568  ;;  %v1827_v14 = vmul.f32 %v6550_v3, %v1826_v46  ;;  %vm1364_vm13 = vweird.f32 %v6526_v54  ;;  %4572 = vrcp.f32 %v6626_v15  ;;  %v6653_v25 = vadd.f32 %v6346_v24, %v2244_v45 }
 0x1bc   : > { %vm6657_vm14 = vcmp.eq.f32.partialorder %v1818_v33, 8.507059e+37  ;;  %v1361_v52 = vsub.f32 1.0, %v1360_v40  ;;  %v2595_v51 = vsub.f32 1.0, %v2594_v38  ;;  %v6667_v58 = vadd.f32 1.0, %v4569_v35 }
 0x1bd   : > { %4574 = vpow2.f32 %v2390_v26  ;;  %v1348_v48 = vadd.f32 %v6546_v43, %v1347_v56  ;;  %vm6672_vm0 = vcmp.eq.f32.partialorder %v1353_v32, 8.507059e+37  ;;  %v2586_v31 = vsel %vm6663_vm15, %v6511_v29, %v2582_v61  ;;  %v673_v26 = vpop.f32.mrf.mxu0 }
 0x1be   : > { %v2604_v33 = vand.u32 2147483648, %v6583_v5  ;;  %v947_v7 = vmul.f32 1.442695, %v828_v13  ;;  %v4571_v47 = vpop.eup %4570  ;;  %v2596_v34 = vmul.f32 %v4567_v2, %v2595_v51  ;;  %vm2599_vm1 = vweird.f32 %v4567_v2 }
 0x1bf   : > { %v2602_v37 = vand.u32 2147483647, %v6583_v5  ;;  %4576 = vrcp.f32 %v6667_v58  ;;  %v1828_v50 = vadd.f32 %v6550_v3, %v1827_v14  ;;  %vm1830_vm2 = vweird.f32 %v6550_v3 }
 0x1c0   : > { %4578 = vpow2.f32 %v947_v7  ;;  %v2355_v32 = vsub.f32 0.0, %v6653_v25  ;;  %v1362_v46 = vmul.f32 %v6606_v59, %v1361_v52  ;;  %v1368_v60 = vand.u32 2147483647, %v6526_v54  ;;  %vm6711_vm6 = vmor %vm1829_vm12, %vm1830_vm2 }
 0x1c1   : > { %v2597_v40 = vadd.f32 %v4567_v2, %v2596_v34  ;;  %vm2598_vm4 = vweird.f32 %v6583_v5  ;;  %v6696_v45 = vpop.eup %4572  ;;  %v2591_v44 = vsel %vm6620_vm9, %v2590_v16, %v2586_v31  ;;  %v1370_v56 = vand.u32 2147483648, %v6526_v54 }
 0x1c2   : > { %vm2600_vm5 = vmor %vm2598_vm4, %vm2599_vm1  ;;  %v2605_v39 = vor.u32 1.1754944e-38, %v2604_v33  ;;  %v6702_v61 = vadd.f32 1.0, %v4571_v47  ;;  %v1352_v38 = vsel %vm6689_vm3, %v6546_v43, %v1348_v48  ;;  %vm1365_vm7 = vweird.f32 %v6606_v59 }
 0x1c3   : > { %v4575_v13 = vpop.eup %4574  ;;  %v2601_v16 = vsel %vm2600_vm5, %v4567_v2, %v2597_v40  ;;  %vm2603_vm8 = vcmp.eq.f32.partialorder %v2602_v37, 8.507059e+37  ;;  %v1832_v53 = vsel %vm6711_vm6, %v6550_v3, %v1828_v50  ;;  %v2452_v14 = vmul.f32 1.442695, %v2355_v32  ;;  %v2169_v2 = vpop.f32.mrf.mxu1  ;;  %vm6736_vm10 = vmor %vm1364_vm13, %vm1365_vm7 }
 0x1c4   : > { %v2606_v35 = vsel %vm2603_vm8, %v2605_v39, %v2601_v16  ;;  %v6720_v43 = vadd.f32 %v6567_v12, %v673_v26  ;;  %v3538_v22 = vmul.f32 %v2591_v44, %v6374_v63  ;;  %v1363_v52 = vadd.f32 %v6606_v59, %v1362_v46 }
 0x1c5   : > { %v6722_v19 = vpop.eup %4576  ;;  %v3539_v51 = vmul.f32 %v2606_v35, %v6435_v4  ;;  %v6727_v48 = vadd.f32 1.0, %v4575_v13  ;;  %v1822_v3 = vsel %vm6657_vm14, %v6560_v23, %v1817_v27  ;;  %vm1834_vm9 = vcmp.eq.f32.partialorder %v1833_v42, 8.507059e+37  ;;  %v2247_v35 = vpop.f32.mrf.mxu3 }
 0x1c6   : > { %v4579_v31 = vpop.eup %4578  ;;  %v1840_v4 = vmul.f32 %v6696_v45, %v6626_v15  ;;  %4580 = vrcp.f32 %v6702_v61  ;;  %v1357_v62 = vsel %vm6672_vm0, %v6602_v36, %v1352_v38  ;;  %v1837_v23 = vsel %vm1834_vm9, %v6646_v11, %v1832_v53 }
 0x1c7   : > { %v1371_v27 = vor.u32 1.1754944e-38, %v1370_v56  ;;  %v4101_v42 = vpack.c.bf16 %v3539_v51, %v3538_v22  ;;  %v3059_v54 = vmul.f32 %v6722_v19, %v6667_v58  ;;  %4582 = vpow2.f32 %v2452_v14  ;;  %v675_v14 = vpop.f32.mrf.mxu0 }
 0x1c8   : > { %v797_v33 = vsub.f32 0.0, %v6720_v43  ;;  %v6751_v7 = vadd.f32 %v6346_v24, %v2169_v2  ;;  %v1367_v47 = vsel %vm6736_vm10, %v6606_v59, %v1363_v52  ;;  %vm1369_vm11 = vcmp.eq.f32.partialorder %v1368_v60, 8.507059e+37 }
 0x1c9   : > { %4102 = vst [vmem:[%s6758_s30] sm:$0xff] %v4101_v42   ;;  %4584 = vrcp.f32 %v6727_v48  ;;  %v6762_v36 = vadd.f32 1.0, %v4579_v31  ;;  %v2039_v11 = vmul.f32 %v6506_v28, %v6223_v21  ;;  %v2040_v18 = vmul.f32 %v6592_v9, %v6278_v17 }
 0x1ca   : > { %v1841_v34 = vsub.f32 1.0, %v1840_v4  ;;  %v6770_v59 = vmul.f32 %v6600_v57, %v6284_v49  ;;  %v6773_v37 = vmul.f32 %v1822_v3, %v6333_v41  ;;  %v6776_v50 = vmul.f32 %v1357_v62, %v6352_v55  ;;  %v753_v55 = vpop.f32.mrf.mxu2 }
 0x1cb   : > { %v6779_v32 = vmul.f32 %v1837_v23, %v6391_v20  ;;  %v1372_v21 = vsel %vm1369_vm11, %v1371_v27, %v1367_v47  ;;  %v3060_v28 = vsub.f32 1.0, %v3059_v54  ;;  %v885_v46 = vmul.f32 1.442695, %v797_v33 }
 0x1cc   : > { %v6781_v29 = vpop.eup %4580  ;;  %v2325_v17 = vsub.f32 0.0, %v6751_v7  ;;  %vm1844_vm12 = vweird.f32 %v6626_v15  ;;  %v1848_v49 = vand.u32 2147483647, %v6626_v15  ;;  %v1850_v41 = vand.u32 2147483648, %v6626_v15 }
 0x1cd   : > { %4586 = vrcp.f32 %v6762_v36  ;;  %v4583_v9 = vpop.eup %4582  ;;  %v1842_v20 = vmul.f32 %v6696_v45, %v1841_v34  ;;  %v3067_v57 = vand.u32 2147483647, %v6667_v58  ;;  %v6793_v26 = vmul.f32 %v1372_v21, %v6401_v1 }
 0x1ce   : > { %4588 = vpow2.f32 %v885_v46  ;;  %v2392_v60 = vmul.f32 1.442695, %v2325_v17  ;;  %v3069_v44 = vand.u32 2147483648, %v6667_v58  ;;  %v1375_v56 = vmul.f32 %v6781_v29, %v6702_v61 }
 0x1cf   : > { %v6790_v40 = vpop.eup %4584  ;;  %v6798_v39 = vadd.f32 1.0, %v4583_v9  ;;  %v3061_v13 = vmul.f32 %v6722_v19, %v3060_v28  ;;  %v2078_v38 = vpack.c.bf16 %v2040_v18, %v2039_v11  ;;  %v6802_v5 = vadd.f32 %v6567_v12, %v753_v55 }
 0x1d0   : > { %4590 = vpow2.f32 %v2392_v60  ;;  %vm6804_vm13 = vcmp.eq.f32.partialorder %v1848_v49, 8.507059e+37  ;;  %v1851_v1 = vor.u32 1.1754944e-38, %v1850_v41  ;;  %vm3063_vm14 = vweird.f32 %v6667_v58 }
 0x1d1   : > { %v1385_v53 = vand.u32 2147483648, %v6702_v61  ;;  %v1843_v22 = vadd.f32 %v6696_v45, %v1842_v20  ;;  %vm1845_vm15 = vweird.f32 %v6696_v45  ;;  %vm6812_vm0 = vcmp.eq.f32.partialorder %v3067_v57, 8.507059e+37  ;;  %2286 = vmatmul.bf16.gmra.mxu3 %v2078_v38 }
 0x1d2   : > { %v2609_v51 = vmul.f32 %v6790_v40, %v6727_v48  ;;  %4592 = vrcp.f32 %v6798_v39  ;;  %vm3064_vm1 = vweird.f32 %v6722_v19  ;;  %v3070_v31 = vor.u32 1.1754944e-38, %v3069_v44  ;;  %vm6835_vm2 = vmor %vm1844_vm12, %vm1845_vm15 }
 0x1d3   : > { %v6819_v2 = vpop.eup %4586  ;;  %v1376_v3 = vsub.f32 1.0, %v1375_v56  ;;  %v2619_v63 = vand.u32 2147483648, %v6727_v48  ;;  %v3062_v62 = vadd.f32 %v6722_v19, %v3061_v13  ;;  %v829_v23 = vsub.f32 0.0, %v6802_v5  ;;  %vm6854_vm4 = vmor %vm3063_vm14, %vm3064_vm1  ;;  %v2172_v56 = vpop.f32.mrf.mxu1 }
 0x1d4   : > { %v4589_v4 = vpop.eup %4588  ;;  %v6826_v27 = vadd.f32 %v6346_v24, %v2247_v35  ;;  %v6829_v42 = vadd.f32 %v6567_v12, %v675_v14  ;;  %v1383_v33 = vand.u32 2147483647, %v6702_v61  ;;  %v6840_v47 = vor.u32 1.1754944e-38, %v1385_v53 }
 0x1d5   : > { %v2617_v11 = vand.u32 2147483647, %v6727_v48  ;;  %v6843_v18 = vadd.f32 1.0, %v4589_v4  ;;  %v1847_v21 = vsel %vm6835_vm2, %v6696_v45, %v1843_v22  ;;  %vm1379_vm3 = vweird.f32 %v6702_v61 }
 0x1d6   : > { %v4591_v34 = vpop.eup %4590  ;;  %v2610_v15 = vsub.f32 1.0, %v2609_v51  ;;  %v949_v28 = vmul.f32 1.442695, %v829_v23  ;;  %v2356_v46 = vsub.f32 0.0, %v6826_v27  ;;  %v1377_v49 = vmul.f32 %v6781_v29, %v1376_v3  ;;  %v755_v3 = vpop.f32.mrf.mxu2 }
 0x1d7   : > { %vm1380_vm5 = vweird.f32 %v6781_v29  ;;  %v6860_v41 = vor.u32 1.1754944e-38, %v2619_v63  ;;  %v1855_v45 = vmul.f32 %v6819_v2, %v6762_v36  ;;  %v3066_v9 = vsel %vm6854_vm4, %v6722_v19, %v3062_v62 }
 0x1d8   : > { %v4593_v55 = vpop.eup %4592  ;;  %vm2613_vm6 = vweird.f32 %v6727_v48  ;;  %v6868_v58 = vadd.f32 1.0, %v4591_v34  ;;  %4594 = vpow2.f32 %v949_v28  ;;  %v798_v20 = vsub.f32 0.0, %v6829_v42  ;;  %vm6908_vm12 = vmor %vm1379_vm3, %vm1380_vm5 }
 0x1d9   : > { %v6873_v57 = vsel %vm6804_vm13, %v1851_v1, %v1847_v21  ;;  %v3074_v60 = vmul.f32 %v4593_v55, %v6798_v39  ;;  %4596 = vrcp.f32 %v6843_v18  ;;  %v2454_v44 = vmul.f32 1.442695, %v2356_v46 }
 0x1da   : > { %v2611_v13 = vmul.f32 %v6790_v40, %v2610_v15  ;;  %v1863_v19 = vand.u32 2147483647, %v6762_v36  ;;  %v1865_v38 = vand.u32 2147483648, %v6762_v36  ;;  %4598 = vrcp.f32 %v6868_v58 }
 0x1db   : > { %v3071_v53 = vsel %vm6812_vm0, %v3070_v31, %v3066_v9  ;;  %v6884_v16 = vadd.f32 %v6781_v29, %v1377_v49  ;;  %v1856_v1 = vsub.f32 1.0, %v1855_v45  ;;  %v3075_v35 = vsub.f32 1.0, %v3074_v60 }
 0x1dc   : > { %v3084_v14 = vand.u32 2147483648, %v6798_v39  ;;  %4600 = vpow2.f32 %v2454_v44  ;;  %v887_v22 = vmul.f32 1.442695, %v798_v20  ;;  %v6888_v51 = vadd.f32 %v6346_v24, %v2172_v56  ;;  %v2249_v56 = vpop.f32.mrf.mxu3 }
 0x1dd   : > { %vm6890_vm7 = vcmp.eq.f32.partialorder %v2617_v11, 8.507059e+37  ;;  %v3076_v4 = vmul.f32 %v4593_v55, %v3075_v35  ;;  %vm3079_vm8 = vweird.f32 %v4593_v55  ;;  %v3082_v52 = vand.u32 2147483647, %v6798_v39  ;;  %v678_v35 = vpop.f32.mrf.mxu0 }
 0x1de   : > { %v2063_v31 = vpack.c.bf16 %v6776_v50, %v6770_v59  ;;  %v4595_v62 = vpop.eup %4594  ;;  %v3570_v23 = vmul.f32 %v3071_v53, %v6517_v30  ;;  %v2612_v54 = vadd.f32 %v6790_v40, %v2611_v13  ;;  %vm2614_vm9 = vweird.f32 %v6790_v40 }
 0x1df   : > { %vm1859_vm10 = vweird.f32 %v6762_v36  ;;  %vm3078_vm11 = vweird.f32 %v6798_v39  ;;  %v6902_v11 = vpop.eup %4596  ;;  %vm6912_vm13 = vcmp.eq.f32.partialorder %v1383_v33, 8.507059e+37  ;;  %v3077_v59 = vadd.f32 %v4593_v55, %v3076_v4  ;;  %vm6932_vm15 = vmor %vm2613_vm6, %vm2614_vm9 }
 0x1e0   : > { %v6916_v50 = vadd.f32 1.0, %v4595_v62  ;;  %4602 = vpow2.f32 %v887_v22  ;;  %2211 = vmatmul.bf16.gmra.mxu1 %v2063_v31  ;;  %v6919_v39 = vadd.f32 %v6567_v12, %v755_v3  ;;  %v4599_v21 = vpop.eup %4598  ;;  %v1382_v61 = vsel %vm6908_vm12, %v6781_v29, %v6884_v16  ;;  %vm3080_vm14 = vmor %vm3078_vm11, %vm3079_vm8 }
 0x1e1   : > { %v1857_v15 = vmul.f32 %v6819_v2, %v1856_v1  ;;  %v3085_v33 = vor.u32 1.1754944e-38, %v3084_v14  ;;  %v2326_v28 = vsub.f32 0.0, %v6888_v51  ;;  %v3081_v17 = vsel %vm3080_vm14, %v4593_v55, %v3077_v59 }
 0x1e2   : > { %vm3083_vm0 = vcmp.eq.f32.partialorder %v3082_v52, 8.507059e+37  ;;  %v2624_v49 = vmul.f32 %v4599_v21, %v6868_v58  ;;  %4604 = vrcp.f32 %v6916_v50  ;;  %v4601_v29 = vpop.eup %4600  ;;  %v2616_v45 = vsel %vm6932_vm15, %v6790_v40, %v2612_v54 }
 0x1e3   : > { %vm1860_vm1 = vweird.f32 %v6819_v2  ;;  %v3086_v9 = vsel %vm3083_vm0, %v3085_v33, %v3081_v17  ;;  %v1390_v48 = vmul.f32 %v6902_v11, %v6843_v18  ;;  %v6945_v55 = vadd.f32 1.0, %v4601_v29 }
 0x1e4   : > { %v3571_v20 = vmul.f32 %v3086_v9, %v6653_v25  ;;  %v2625_v60 = vsub.f32 1.0, %v2624_v49  ;;  %v830_v44 = vsub.f32 0.0, %v6919_v39  ;;  %v1858_v13 = vadd.f32 %v6819_v2, %v1857_v15  ;;  %vm6969_vm5 = vmor %vm1859_vm10, %vm1860_vm1  ;;  %v758_v9 = vpop.f32.mrf.mxu2 }
 0x1e5   : > { %vm6949_vm2 = vcmp.eq.f32.partialorder %v1863_v19, 8.507059e+37  ;;  %v2632_v40 = vand.u32 2147483647, %v6868_v58  ;;  %v2634_v16 = vand.u32 2147483648, %v6868_v58  ;;  %v2394_v1 = vmul.f32 1.442695, %v2326_v28 }
 0x1e6   : > { %v4603_v25 = vpop.eup %4602  ;;  %v4181_v14 = vpack.c.bf16 %v3571_v20, %v3570_v23  ;;  %v2626_v22 = vmul.f32 %v4599_v21, %v2625_v60  ;;  %vm2629_vm3 = vweird.f32 %v4599_v21  ;;  %4606 = vrcp.f32 %v6945_v55 }
 0x1e7   : > { %v2621_v19 = vsel %vm6890_vm7, %v6860_v41, %v2616_v45  ;;  %v1391_v3 = vsub.f32 1.0, %v1390_v48  ;;  %vm2628_vm4 = vweird.f32 %v6868_v58  ;;  %v6961_v4 = vadd.f32 %v6346_v24, %v2249_v56  ;;  %v2174_v58 = vpop.f32.mrf.mxu1 }
 0x1e8   : > { %v6963_v52 = vpop.eup %4604  ;;  %4273 = vst [vmem:[%s6758_s30 + $0x80] sm:$0xff] %v4181_v14   ;;  %v2627_v62 = vadd.f32 %v4599_v21, %v2626_v22  ;;  %4608 = vpow2.f32 %v2394_v1  ;;  %v951_v41 = vmul.f32 1.442695, %v830_v44  ;;  %v6975_v63 = vadd.f32 %v6567_v12, %v678_v35  ;;  %vm2630_vm6 = vmor %vm2628_vm4, %vm2629_vm3 }
 0x1e9   : > { %v1387_v23 = vsel %vm6912_vm13, %v6840_v47, %v1382_v61  ;;  %v1866_v54 = vor.u32 1.1754944e-38, %v1865_v38  ;;  %v2635_v34 = vor.u32 1.1754944e-38, %v2634_v16  ;;  %v6983_v59 = vadd.f32 1.0, %v4603_v25  ;;  %v2252_v25 = vpop.f32.mrf.mxu3 }
 0x1ea   : > { %v3540_v15 = vmul.f32 %v2621_v19, %v6588_v10  ;;  %v1862_v33 = vsel %vm6969_vm5, %v6819_v2, %v1858_v13  ;;  %v2631_v28 = vsel %vm2630_vm6, %v4599_v21, %v2627_v62  ;;  %vm2633_vm7 = vcmp.eq.f32.partialorder %v2632_v40, 8.507059e+37 }
 0x1eb   : > { %v1392_v46 = vmul.f32 %v6902_v11, %v1391_v3  ;;  %v2636_v30 = vsel %vm2633_vm7, %v2635_v34, %v2631_v28  ;;  %v1870_v36 = vmul.f32 %v6963_v52, %v6916_v50  ;;  %v6993_v47 = vadd.f32 %v6346_v24, %v2174_v58 }
 0x1ec   : > { %v6995_v38 = vpop.eup %4606  ;;  %v3541_v61 = vmul.f32 %v2636_v30, %v6751_v7  ;;  %4610 = vpow2.f32 %v951_v41  ;;  %v2357_v10 = vsub.f32 0.0, %v6961_v4  ;;  %v799_v2 = vsub.f32 0.0, %v6975_v63 }
 0x1ed   : > { %vm1394_vm8 = vweird.f32 %v6843_v18  ;;  %vm1395_vm9 = vweird.f32 %v6902_v11  ;;  %v1398_v21 = vand.u32 2147483647, %v6843_v18  ;;  %4612 = vrcp.f32 %v6983_v59 }
 0x1ee   : > { %v4609_v17 = vpop.eup %4608  ;;  %v1867_v49 = vsel %vm6949_vm2, %v1866_v54, %v1862_v33  ;;  %v1400_v7 = vand.u32 2147483648, %v6843_v18  ;;  %v4106_v29 = vpack.c.bf16 %v3541_v61, %v3540_v15  ;;  %v2456_v45 = vmul.f32 1.442695, %v2357_v10  ;;  %vm7012_vm10 = vmor %vm1394_vm8, %vm1395_vm9 }
 0x1ef   : > { %v1393_v48 = vadd.f32 %v6902_v11, %v1392_v46  ;;  %v1871_v20 = vsub.f32 1.0, %v1870_v36  ;;  %v3089_v60 = vmul.f32 %v6995_v38, %v6945_v55  ;;  %v7010_v44 = vadd.f32 1.0, %v4609_v17  ;;  %v680_v17 = vpop.f32.mrf.mxu0 }
 0x1f0   : > { %4258 = vst [vmem:[%s6758_s30 + $0x8] sm:$0xff] %v4106_v29   ;;  %4614 = vpow2.f32 %v2456_v45  ;;  %v889_v13 = vmul.f32 1.442695, %v799_v2  ;;  %v2327_v18 = vsub.f32 0.0, %v6993_v47  ;;  %v2079_v53 = vpack.c.bf16 %v6779_v32, %v6773_v37 }
 0x1f1   : > { %v7022_v40 = vmul.f32 %v6873_v57, %v6485_v0  ;;  %v7025_v16 = vmul.f32 %v1387_v23, %v6570_v6  ;;  %v1878_v1 = vand.u32 2147483647, %v6916_v50  ;;  %v7029_v35 = vadd.f32 %v6567_v12, %v758_v9 }
 0x1f2   : > { %v4611_v14 = vpop.eup %4610  ;;  %v7032_v22 = vmul.f32 %v1867_v49, %v6618_v8  ;;  %vm7034_vm11 = vcmp.eq.f32.partialorder %v1398_v21, 8.507059e+37  ;;  %v1401_v37 = vor.u32 1.1754944e-38, %v1400_v7  ;;  %4616 = vrcp.f32 %v7010_v44  ;;  %2291 = vmatmul.bf16.gmra.mxu3 %v2079_v53 }
 0x1f3   : > { %v7039_v0 = vpop.eup %4612  ;;  %v1397_v6 = vsel %vm7012_vm10, %v6902_v11, %v1393_v48  ;;  %v1872_v32 = vmul.f32 %v6963_v52, %v1871_v20  ;;  %v1880_v57 = vand.u32 2147483648, %v6916_v50  ;;  %v3090_v8 = vsub.f32 1.0, %v3089_v60 }
 0x1f4   : > { %v7046_v3 = vadd.f32 1.0, %v4611_v14  ;;  %4618 = vpow2.f32 %v889_v13  ;;  %v2396_v31 = vmul.f32 1.442695, %v2327_v18  ;;  %v7049_v62 = vadd.f32 %v6346_v24, %v2252_v25 }
 0x1f5   : > { %vm1874_vm12 = vweird.f32 %v6916_v50  ;;  %vm7052_vm13 = vcmp.eq.f32.partialorder %v1878_v1, 8.507059e+37  ;;  %v3097_v11 = vand.u32 2147483647, %v6945_v55  ;;  %v831_v58 = vsub.f32 0.0, %v7029_v35  ;;  %v2177_v1 = vpop.f32.mrf.mxu1 }
 0x1f6   : > { %v4615_v23 = vpop.eup %4614  ;;  %v1402_v54 = vsel %vm7034_vm11, %v1401_v37, %v1397_v6  ;;  %v3099_v34 = vand.u32 2147483648, %v6945_v55  ;;  %v1405_v24 = vmul.f32 %v7039_v0, %v6983_v59  ;;  %4620 = vrcp.f32 %v7046_v3 }
 0x1f7   : > { %v1873_v15 = vadd.f32 %v6963_v52, %v1872_v32  ;;  %vm1875_vm14 = vweird.f32 %v6963_v52  ;;  %v3091_v33 = vmul.f32 %v6995_v38, %v3090_v8  ;;  %v7067_v28 = vadd.f32 1.0, %v4615_v23 }
 0x1f8   : > { %v7069_v46 = vpop.eup %4616  ;;  %v1881_v30 = vor.u32 1.1754944e-38, %v1880_v57  ;;  %4622 = vpow2.f32 %v2396_v31  ;;  %v953_v36 = vmul.f32 1.442695, %v831_v58  ;;  %v2358_v61 = vsub.f32 0.0, %v7049_v62  ;;  %vm7081_vm0 = vmor %vm1874_vm12, %vm1875_vm14 }
 0x1f9   : > { %v7073_v10 = vmul.f32 %v1402_v54, %v6720_v43  ;;  %vm3093_vm15 = vweird.f32 %v6945_v55  ;;  %v1415_v2 = vand.u32 2147483648, %v6983_v59  ;;  %v2639_v21 = vmul.f32 %v7069_v46, %v7010_v44 }
 0x1fa   : > { %v4619_v49 = vpop.eup %4618  ;;  %vm7085_vm1 = vcmp.eq.f32.partialorder %v3097_v11, 8.507059e+37  ;;  %v3100_v43 = vor.u32 1.1754944e-38, %v3099_v34  ;;  %v1406_v45 = vsub.f32 1.0, %v1405_v24  ;;  %4624 = vrcp.f32 %v7067_v28  ;;  %v7131_v11 = vld [vmem:[%s9176_s4] ss:$0 sm:$0xff] }
 0x1fb   : > { %v1877_v9 = vsel %vm7081_vm0, %v6963_v52, %v1873_v15  ;;  %v3092_v48 = vadd.f32 %v6995_v38, %v3091_v33  ;;  %vm3094_vm2 = vweird.f32 %v6995_v38  ;;  %v2640_v50 = vsub.f32 1.0, %v2639_v21 }
 0x1fc   : > { %v7095_v20 = vpop.eup %4620  ;;  %v7097_v60 = vadd.f32 1.0, %v4619_v49  ;;  %4626 = vpow2.f32 %v953_v36  ;;  %v2458_v56 = vmul.f32 1.442695, %v2358_v61  ;;  %v7100_v13 = vadd.f32 %v6567_v12, %v680_v17  ;;  %vm7111_vm4 = vmor %vm3093_vm15, %vm3094_vm2 }
 0x1fd   : > { %vm1409_vm3 = vweird.f32 %v6983_v59  ;;  %v1413_v18 = vand.u32 2147483647, %v6983_v59  ;;  %v7104_v53 = vor.u32 1.1754944e-38, %v1415_v2  ;;  %v2649_v52 = vand.u32 2147483648, %v7010_v44 }
 0x1fe   : > { %v4623_v25 = vpop.eup %4622  ;;  %v1882_v14 = vsel %vm7052_vm13, %v1881_v30, %v1877_v9  ;;  %v1407_v37 = vmul.f32 %v7039_v0, %v1406_v45  ;;  %vm1410_vm5 = vweird.f32 %v7039_v0  ;;  %v2647_v6 = vand.u32 2147483647, %v7010_v44 }
 0x1ff   : > { %v3096_v32 = vsel %vm7111_vm4, %v6995_v38, %v3092_v48  ;;  %v1885_v57 = vmul.f32 %v7095_v20, %v7046_v3  ;;  %v7123_v8 = vadd.f32 1.0, %v4623_v25  ;;  %4628 = vpow2.f32 %v2458_v56  ;;  %vm7164_vm10 = vmor %vm1409_vm3, %vm1410_vm5 }
 0x200   : > { %v4625_v55 = vpop.eup %4624  ;;  %v2641_v31 = vmul.f32 %v7069_v46, %v2640_v50  ;;  %4630 = vrcp.f32 %v7097_v60  ;;  %v800_v41 = vsub.f32 0.0, %v7100_v13  ;;  %v7134_v38 = vadd.f32 %v7131_v11, %v2177_v1 }
 0x201   : > { %v7137_v58 = vmul.f32 %v1882_v14, %v6802_v5  ;;  %vm7139_vm6 = vcmp.eq.f32.partialorder %v1413_v18, 8.507059e+37  ;;  %vm2643_vm7 = vweird.f32 %v7010_v44  ;;  %v2650_v54 = vor.u32 1.1754944e-38, %v2649_v52 }
 0x202   : > { %v3104_v34 = vmul.f32 %v4625_v55, %v7067_v28  ;;  %v4627_v24 = vpop.eup %4626  ;;  %v3101_v15 = vsel %vm7085_vm1, %v3100_v43, %v3096_v32  ;;  %v1408_v33 = vadd.f32 %v7039_v0, %v1407_v37  ;;  %vm7148_vm8 = vcmp.eq.f32.partialorder %v2647_v6, 8.507059e+37 }
 0x203   : > { %v1895_v5 = vand.u32 2147483648, %v7046_v3  ;;  %4632 = vrcp.f32 %v7123_v8  ;;  %vm2644_vm9 = vweird.f32 %v7069_v46  ;;  %v1886_v36 = vsub.f32 1.0, %v1885_v57 }
 0x204   : > { %v3105_v61 = vsub.f32 1.0, %v3104_v34  ;;  %v3114_v2 = vand.u32 2147483648, %v7067_v28  ;;  %v2642_v21 = vadd.f32 %v7069_v46, %v2641_v31  ;;  %v7157_v17 = vadd.f32 1.0, %v4627_v24  ;;  %vm7184_vm13 = vmor %vm2643_vm7, %vm2644_vm9 }
 0x205   : > { %v891_v49 = vmul.f32 1.442695, %v800_v41  ;;  %v2328_v7 = vsub.f32 0.0, %v7134_v38  ;;  %v4629_v29 = vpop.eup %4628  ;;  %vm1889_vm11 = vweird.f32 %v7046_v3  ;;  %v1893_v45 = vand.u32 2147483647, %v7046_v3 }
 0x206   : > { %v3106_v9 = vmul.f32 %v4625_v55, %v3105_v61  ;;  %vm3109_vm12 = vweird.f32 %v4625_v55  ;;  %v3112_v48 = vand.u32 2147483647, %v7067_v28  ;;  %v7171_v50 = vpop.eup %4630  ;;  %v3572_v56 = vmul.f32 %v3101_v15, %v6826_v27 }
 0x207   : > { %v1412_v59 = vsel %vm7164_vm10, %v7039_v0, %v1408_v33  ;;  %v7177_v18 = vor.u32 1.1754944e-38, %v1895_v5  ;;  %4634 = vrcp.f32 %v7157_v17  ;;  %v1887_v1 = vmul.f32 %v7095_v20, %v1886_v36  ;;  %v2254_v36 = vpop.f32.mrf.mxu3 }
 0x208   : > { %v3107_v25 = vadd.f32 %v4625_v55, %v3106_v9  ;;  %vm3108_vm14 = vweird.f32 %v7067_v28  ;;  %v3115_v27 = vor.u32 1.1754944e-38, %v3114_v2  ;;  %v2646_v0 = vsel %vm7184_vm13, %v7069_v46, %v2642_v21 }
 0x209   : > { %v4633_v14 = vpop.eup %4632  ;;  %vm3110_vm15 = vmor %vm3108_vm14, %vm3109_vm12  ;;  %v7193_v19 = vadd.f32 1.0, %v4629_v29  ;;  %4636 = vpow2.f32 %v891_v49  ;;  %v2398_v44 = vmul.f32 1.442695, %v2328_v7  ;;  %vm7195_vm0 = vcmp.eq.f32.partialorder %v1893_v45, 8.507059e+37 }
 0x20a   : > { %v3111_v6 = vsel %vm3110_vm15, %v4625_v55, %v3107_v25  ;;  %vm3113_vm1 = vcmp.eq.f32.partialorder %v3112_v48, 8.507059e+37  ;;  %v1420_v28 = vmul.f32 %v7171_v50, %v7097_v60  ;;  %v2654_v32 = vmul.f32 %v4633_v14, %v7123_v8 }
 0x20b   : > { %v1417_v46 = vsel %vm7139_vm6, %v7104_v53, %v1412_v59  ;;  %vm1890_vm2 = vweird.f32 %v7095_v20  ;;  %v3116_v57 = vsel %vm3113_vm1, %v3115_v27, %v3111_v6  ;;  %4638 = vrcp.f32 %v7193_v19  ;;  %v2179_v59 = vpop.f32.mrf.mxu1 }
 0x20c   : > { %v2651_v31 = vsel %vm7148_vm8, %v2650_v54, %v2646_v0  ;;  %v1888_v55 = vadd.f32 %v7095_v20, %v1887_v1  ;;  %v3573_v41 = vmul.f32 %v3116_v57, %v6961_v4  ;;  %v2655_v34 = vsub.f32 1.0, %v2654_v32  ;;  %v760_v54 = vpop.f32.mrf.mxu2  ;;  %vm7221_vm4 = vmor %vm1889_vm11, %vm1890_vm2 }
 0x20d   : > { %v7211_v24 = vpop.eup %4634  ;;  %v2662_v15 = vand.u32 2147483647, %v7123_v8  ;;  %v2664_v23 = vand.u32 2147483648, %v7123_v8  ;;  %4640 = vpow2.f32 %v2398_v44  ;;  %v2064_v53 = vpack.c.bf16 %v7025_v16, %v6793_v26 }
 0x20e   : > { %v4186_v33 = vpack.c.bf16 %v3573_v41, %v3572_v56  ;;  %v1421_v5 = vsub.f32 1.0, %v1420_v28  ;;  %v2656_v30 = vmul.f32 %v4633_v14, %v2655_v34  ;;  %vm2659_vm3 = vweird.f32 %v4633_v14 }
 0x20f   : > { %v4637_v61 = vpop.eup %4636  ;;  %vm1424_vm5 = vweird.f32 %v7097_v60  ;;  %v1428_v2 = vand.u32 2147483647, %v7097_v60  ;;  %v1430_v26 = vand.u32 2147483648, %v7097_v60  ;;  %vm2658_vm6 = vweird.f32 %v7123_v8  ;;  %2216 = vmatmul.bf16.gmra.mxu1 %v2064_v53 }
 0x210   : > { %v1892_v16 = vsel %vm7221_vm4, %v7095_v20, %v1888_v55  ;;  %4274 = vst [vmem:[%s6758_s30 + $0x88] sm:$0xff] %v4186_v33   ;;  %v2657_v21 = vadd.f32 %v4633_v14, %v2656_v30  ;;  %v1900_v3 = vmul.f32 %v7211_v24, %v7157_v17  ;;  %v7235_v49 = vadd.f32 1.0, %v4637_v61  ;;  %vm2660_vm7 = vmor %vm2658_vm6, %vm2659_vm3  ;;  %v683_v20 = vpop.f32.mrf.mxu0 }
 0x211   : > { %v7237_v7 = vpop.eup %4638  ;;  %v3542_v29 = vmul.f32 %v2651_v31, %v6888_v51  ;;  %v2665_v43 = vor.u32 1.1754944e-38, %v2664_v23  ;;  %v7242_v8 = vadd.f32 %v6567_v12, %v760_v54  ;;  %v7245_v45 = vadd.f32 %v7131_v11, %v2254_v36 }
 0x212   : > { %v1422_v9 = vmul.f32 %v7171_v50, %v1421_v5  ;;  %v2661_v48 = vsel %vm2660_vm7, %v4633_v14, %v2657_v21  ;;  %vm2663_vm8 = vcmp.eq.f32.partialorder %v2662_v15, 8.507059e+37  ;;  %v3119_v56 = vmul.f32 %v7237_v7, %v7193_v19 }
 0x213   : > { %v4641_v52 = vpop.eup %4640  ;;  %v1897_v51 = vsel %vm7195_vm0, %v7177_v18, %v1892_v16  ;;  %vm1425_vm9 = vweird.f32 %v7171_v50  ;;  %v2666_v1 = vsel %vm2663_vm8, %v2665_v43, %v2661_v48  ;;  %4642 = vrcp.f32 %v7235_v49 }
 0x214   : > { %v3543_v25 = vmul.f32 %v2666_v1, %v6993_v47  ;;  %v1901_v27 = vsub.f32 1.0, %v1900_v3  ;;  %v1910_v14 = vand.u32 2147483648, %v7157_v17  ;;  %v7258_v0 = vadd.f32 %v6567_v12, %v683_v20  ;;  %vm7276_vm10 = vmor %vm1424_vm5, %vm1425_vm9  ;;  %v763_v61 = vpop.f32.mrf.mxu2  ;;  %v7318_v3 = vld [vmem:[%s9174_s2] ss:$0 sm:$0xff] }
 0x215   : > { %v7260_v44 = vadd.f32 1.0, %v4641_v52  ;;  %v832_v6 = vsub.f32 0.0, %v7242_v8  ;;  %v2359_v18 = vsub.f32 0.0, %v7245_v45  ;;  %v7265_v37 = vadd.f32 %v7131_v11, %v2179_v59 }
 0x216   : > { %v1423_v28 = vadd.f32 %v7171_v50, %v1422_v9  ;;  %v4111_v32 = vpack.c.bf16 %v3543_v25, %v3542_v29  ;;  %v1908_v47 = vand.u32 2147483647, %v7157_v17  ;;  %v3120_v57 = vsub.f32 1.0, %v3119_v56 }
 0x217   : > { %v7270_v31 = vmul.f32 %v1417_v46, %v6829_v42  ;;  %vm7280_vm11 = vcmp.eq.f32.partialorder %v1428_v2, 8.507059e+37  ;;  %v1431_v41 = vor.u32 1.1754944e-38, %v1430_v26  ;;  %4644 = vrcp.f32 %v7260_v44 }
 0x218   : > { %v7286_v34 = vmul.f32 %v1897_v51, %v6919_v39  ;;  %4259 = vst [vmem:[%s6758_s30 + $0x10] sm:$0xff] %v4111_v32   ;;  %v1902_v42 = vmul.f32 %v7211_v24, %v1901_v27  ;;  %vm1904_vm12 = vweird.f32 %v7157_v17  ;;  %v955_v60 = vmul.f32 1.442695, %v832_v6  ;;  %v685_v9 = vpop.f32.mrf.mxu0 }
 0x219   : > { %v7291_v46 = vpop.eup %4642  ;;  %v1911_v15 = vor.u32 1.1754944e-38, %v1910_v14  ;;  %v2460_v23 = vmul.f32 1.442695, %v2359_v18  ;;  %v801_v53 = vsub.f32 0.0, %v7258_v0  ;;  %v2329_v33 = vsub.f32 0.0, %v7265_v37 }
 0x21a   : > { %v1427_v5 = vsel %vm7276_vm10, %v7171_v50, %v1423_v28  ;;  %vm7298_vm13 = vcmp.eq.f32.partialorder %v1908_v47, 8.507059e+37  ;;  %v3121_v30 = vmul.f32 %v7237_v7, %v3120_v57  ;;  %v3127_v54 = vand.u32 2147483647, %v7193_v19 }
 0x21b   : > { %v3129_v36 = vand.u32 2147483648, %v7193_v19  ;;  %v1435_v4 = vmul.f32 %v7291_v46, %v7235_v49  ;;  %4646 = vpow2.f32 %v955_v60  ;;  %v893_v2 = vmul.f32 1.442695, %v801_v53  ;;  %v2182_v60 = vpop.f32.mrf.mxu1 }
 0x21c   : > { %v2400_v26 = vmul.f32 1.442695, %v2329_v33  ;;  %v1903_v16 = vadd.f32 %v7211_v24, %v1902_v42  ;;  %vm1905_vm14 = vweird.f32 %v7211_v24  ;;  %4648 = vpow2.f32 %v2460_v23  ;;  %v765_v33 = vpop.f32.mrf.mxu2 }
 0x21d   : > { %v2080_v50 = vpack.c.bf16 %v7032_v22, %v7022_v40  ;;  %v7311_v21 = vpop.eup %4644  ;;  %vm3123_vm15 = vweird.f32 %v7193_v19  ;;  %vm3124_vm0 = vweird.f32 %v7237_v7  ;;  %4650 = vpow2.f32 %v893_v2  ;;  %v2257_v22 = vpop.f32.mrf.mxu3  ;;  %vm7335_vm1 = vmor %vm1904_vm12, %vm1905_vm14 }
 0x21e   : > { %v7321_v29 = vadd.f32 %v7318_v3, %v763_v61  ;;  %v3122_v43 = vadd.f32 %v7237_v7, %v3121_v30  ;;  %v1445_v20 = vand.u32 2147483648, %v7235_v49  ;;  %v2669_v40 = vmul.f32 %v7311_v21, %v7260_v44  ;;  %vm7353_vm3 = vmor %vm3123_vm15, %vm3124_vm0 }
 0x21f   : > { %4652 = vpow2.f32 %v2400_v26  ;;  %2296 = vmatmul.bf16.gmra.mxu3 %v2080_v50  ;;  %v7329_v48 = vsel %vm7280_vm11, %v1431_v41, %v1427_v5  ;;  %vm7339_vm2 = vcmp.eq.f32.partialorder %v3127_v54, 8.507059e+37  ;;  %v1436_v52 = vsub.f32 1.0, %v1435_v4 }
 0x220   : > { %v833_v51 = vsub.f32 0.0, %v7321_v29  ;;  %v1907_v1 = vsel %vm7335_vm1, %v7211_v24, %v1903_v16  ;;  %v3130_v25 = vor.u32 1.1754944e-38, %v3129_v36  ;;  %v2670_v27 = vsub.f32 1.0, %v2669_v40 }
 0x221   : > { %v2065_v17 = vpack.c.bf16 %v7270_v31, %v7073_v10  ;;  %v4647_v14 = vpop.eup %4646  ;;  %vm1439_vm4 = vweird.f32 %v7235_v49  ;;  %v1443_v18 = vand.u32 2147483647, %v7235_v49  ;;  %v7360_v24 = vadd.f32 %v7131_v11, %v2257_v22 }
 0x222   : > { %v957_v28 = vmul.f32 1.442695, %v833_v51  ;;  %v7363_v32 = vadd.f32 %v7318_v3, %v685_v9  ;;  %v4649_v10 = vpop.eup %4648  ;;  %v3126_v19 = vsel %vm7353_vm3, %v7237_v7, %v3122_v43  ;;  %v7368_v47 = vor.u32 1.1754944e-38, %v1445_v20 }
 0x223   : > { %v2671_v57 = vmul.f32 %v7311_v21, %v2670_v27  ;;  %v7371_v31 = vadd.f32 1.0, %v4647_v14  ;;  %2221 = vmatmul.bf16.gmra.mxu1 %v2065_v17  ;;  %v4651_v12 = vpop.eup %4650  ;;  %v7375_v55 = vsel %vm7298_vm13, %v1911_v15, %v1907_v1  ;;  %v1437_v41 = vmul.f32 %v7291_v46, %v1436_v52 }
 0x224   : > { %v7378_v42 = vadd.f32 1.0, %v4649_v10  ;;  %4654 = vpow2.f32 %v957_v28  ;;  %vm2673_vm5 = vweird.f32 %v7260_v44  ;;  %v2677_v7 = vand.u32 2147483647, %v7260_v44 }
 0x225   : > { %v4653_v23 = vpop.eup %4652  ;;  %v2679_v53 = vand.u32 2147483648, %v7260_v44  ;;  %4656 = vrcp.f32 %v7371_v31  ;;  %v3131_v15 = vsel %vm7339_vm2, %v3130_v25, %v3126_v19  ;;  %v2360_v5 = vsub.f32 0.0, %v7360_v24  ;;  %v2259_v43 = vpop.f32.mrf.mxu3 }
 0x226   : > { %4658 = vrcp.f32 %v7378_v42  ;;  %v802_v39 = vsub.f32 0.0, %v7363_v32  ;;  %v2672_v30 = vadd.f32 %v7311_v21, %v2671_v57  ;;  %vm2674_vm6 = vweird.f32 %v7311_v21 }
 0x227   : > { %v7391_v54 = vadd.f32 1.0, %v4651_v12  ;;  %v7394_v36 = vadd.f32 %v7131_v11, %v2182_v60  ;;  %v7397_v61 = vadd.f32 %v7291_v46, %v1437_v41  ;;  %vm1440_vm7 = vweird.f32 %v7291_v46  ;;  %vm7415_vm9 = vmor %vm2673_vm5, %vm2674_vm6 }
 0x228   : > { %v7400_v4 = vadd.f32 1.0, %v4653_v23  ;;  %v7403_v2 = vadd.f32 %v7318_v3, %v765_v33  ;;  %v7406_v26 = vmul.f32 %v3131_v15, %v7049_v62  ;;  %vm7408_vm8 = vcmp.eq.f32.partialorder %v2677_v7, 8.507059e+37  ;;  %vm7427_vm10 = vmor %vm1439_vm4, %vm1440_vm7 }
 0x229   : > { %v2680_v50 = vor.u32 1.1754944e-38, %v2679_v53  ;;  %4660 = vrcp.f32 %v7391_v54  ;;  %v3142_v22 = vand.u32 2147483647, %v7378_v42  ;;  %v2462_v62 = vmul.f32 1.442695, %v2360_v5 }
 0x22a   : > { %v4655_v20 = vpop.eup %4654  ;;  %4662 = vrcp.f32 %v7400_v4  ;;  %v895_v9 = vmul.f32 1.442695, %v802_v39  ;;  %v2676_v44 = vsel %vm7415_vm9, %v7311_v21, %v2672_v30  ;;  %v3144_v52 = vand.u32 2147483648, %v7378_v42 }
 0x22b   : > { %v7421_v56 = vpop.eup %4656  ;;  %v7435_v51 = vadd.f32 1.0, %v4655_v20  ;;  %v2330_v1 = vsub.f32 0.0, %v7394_v36  ;;  %v1442_v27 = vsel %vm7427_vm10, %v7291_v46, %v7397_v61  ;;  %v834_v14 = vsub.f32 0.0, %v7403_v2 }
 0x22c   : > { %v4659_v25 = vpop.eup %4658  ;;  %v1915_v17 = vmul.f32 %v7421_v56, %v7371_v31  ;;  %v7446_v6 = vadd.f32 %v7131_v11, %v2259_v43  ;;  %v1923_v21 = vand.u32 2147483647, %v7371_v31  ;;  %v1925_v28 = vand.u32 2147483648, %v7371_v31 }
 0x22d   : > { %v3134_v10 = vmul.f32 %v4659_v25, %v7378_v42  ;;  %vm3138_vm11 = vweird.f32 %v7378_v42  ;;  %v2681_v19 = vsel %vm7408_vm8, %v2680_v50, %v2676_v44  ;;  %vm7454_vm12 = vcmp.eq.f32.partialorder %v3142_v22, 8.507059e+37 }
 0x22e   : > { %v1916_v57 = vsub.f32 1.0, %v1915_v17  ;;  %4664 = vrcp.f32 %v7435_v51  ;;  %v3145_v23 = vor.u32 1.1754944e-38, %v3144_v52  ;;  %v2402_v7 = vmul.f32 1.442695, %v2330_v1 }
 0x22f   : > { %v7459_v41 = vpop.eup %4660  ;;  %v3135_v60 = vsub.f32 1.0, %v3134_v10  ;;  %4666 = vpow2.f32 %v2462_v62  ;;  %vm1919_vm13 = vweird.f32 %v7371_v31  ;;  %vm1454_vm14 = vweird.f32 %v7391_v54  ;;  %v7563_v31 = vpop.f32.mrf.mxu3 }
 0x230   : > { %v4663_v53 = vpop.eup %4662  ;;  %v1450_v33 = vmul.f32 %v7459_v41, %v7391_v54  ;;  %v1458_v15 = vand.u32 2147483647, %v7391_v54  ;;  %v1460_v5 = vand.u32 2147483648, %v7391_v54  ;;  %vm3139_vm15 = vweird.f32 %v4659_v25 }
 0x231   : > { %v3136_v39 = vmul.f32 %v4659_v25, %v3135_v60  ;;  %v2684_v30 = vmul.f32 %v4663_v53, %v7400_v4  ;;  %vm2688_vm0 = vweird.f32 %v7400_v4  ;;  %v1917_v16 = vmul.f32 %v7421_v56, %v1916_v57  ;;  %vm3140_vm1 = vmor %vm3138_vm11, %vm3139_vm15 }
 0x232   : > { %v1451_v50 = vsub.f32 1.0, %v1450_v33  ;;  %4668 = vpow2.f32 %v895_v9  ;;  %v959_v43 = vmul.f32 1.442695, %v834_v14  ;;  %v2692_v22 = vand.u32 2147483647, %v7400_v4 }
 0x233   : > { %v3137_v20 = vadd.f32 %v4659_v25, %v3136_v39  ;;  %v2685_v40 = vsub.f32 1.0, %v2684_v30  ;;  %4670 = vpow2.f32 %v2402_v7  ;;  %vm2689_vm2 = vweird.f32 %v4663_v53 }
 0x234   : > { %v7471_v62 = vpop.eup %4664  ;;  %v2694_v44 = vand.u32 2147483648, %v7400_v4  ;;  %4672 = vpow2.f32 %v959_v43  ;;  %v2361_v52 = vsub.f32 0.0, %v7446_v6  ;;  %v1452_v9 = vmul.f32 %v7459_v41, %v1451_v50  ;;  %vm7497_vm6 = vmor %vm2688_vm0, %vm2689_vm2 }
 0x235   : > { %v4667_v1 = vpop.eup %4666  ;;  %v3141_v17 = vsel %vm3140_vm1, %v4659_v25, %v3137_v20  ;;  %v2686_v14 = vmul.f32 %v4663_v53, %v2685_v40  ;;  %v1930_v10 = vmul.f32 %v7471_v62, %v7435_v51  ;;  %vm7482_vm3 = vcmp.eq.f32.partialorder %v1443_v18, 8.507059e+37 }
 0x236   : > { %v1918_v42 = vadd.f32 %v7421_v56, %v1917_v16  ;;  %vm1920_vm4 = vweird.f32 %v7421_v56  ;;  %v3146_v60 = vsel %vm7454_vm12, %v3145_v23, %v3141_v17  ;;  %vm1455_vm5 = vweird.f32 %v7459_v41  ;;  %v688_v16 = vpop.f32.mrf.mxu0 }
 0x237   : > { %v3575_v25 = vmul.f32 %v3146_v60, %v7245_v45  ;;  %v2687_v7 = vadd.f32 %v4663_v53, %v2686_v14  ;;  %v1931_v33 = vsub.f32 1.0, %v1930_v10  ;;  %v7492_v39 = vadd.f32 1.0, %v4667_v1  ;;  %vm7505_vm8 = vmor %vm1919_vm13, %vm1920_vm4  ;;  %v2184_v10 = vpop.f32.mrf.mxu1 }
 0x238   : > { %v4669_v49 = vpop.eup %4668  ;;  %v1926_v18 = vor.u32 1.1754944e-38, %v1925_v28  ;;  %vm2693_vm7 = vcmp.eq.f32.partialorder %v2692_v22, 8.507059e+37  ;;  %v2695_v12 = vor.u32 1.1754944e-38, %v2694_v44  ;;  %v2464_v23 = vmul.f32 1.442695, %v2361_v52  ;;  %vm7519_vm9 = vmor %vm1454_vm14, %vm1455_vm5 }
 0x239   : > { %v4671_v50 = vpop.eup %4670  ;;  %v4191_v4 = vpack.c.bf16 %v3575_v25, %v7406_v26  ;;  %v1453_v28 = vadd.f32 %v7459_v41, %v1452_v9  ;;  %v2691_v43 = vsel %vm7497_vm6, %v4663_v53, %v2687_v7  ;;  %v1932_v20 = vmul.f32 %v7471_v62, %v1931_v33 }
 0x23a   : > { %v4673_v40 = vpop.eup %4672  ;;  %v3544_v22 = vmul.f32 %v2681_v19, %v7134_v38  ;;  %vm7523_vm11 = vcmp.eq.f32.partialorder %v1458_v15, 8.507059e+37  ;;  %v2696_v52 = vsel %vm2693_vm7, %v2695_v12, %v2691_v43  ;;  %4674 = vrcp.f32 %v7492_v39 }
 0x23b   : > { %v1922_v53 = vsel %vm7505_vm8, %v7421_v56, %v1918_v42  ;;  %4275 = vst [vmem:[%s6758_s30 + $0x90] sm:$0xff] %v4191_v4   ;;  %v1461_v38 = vor.u32 1.1754944e-38, %v1460_v5  ;;  %v3545_v19 = vmul.f32 %v2696_v52, %v7265_v37  ;;  %v7534_v54 = vadd.f32 %v7318_v3, %v688_v16 }
 0x23c   : > { %v7536_v1 = vadd.f32 1.0, %v4669_v49  ;;  %v7538_v15 = vadd.f32 1.0, %v4671_v50  ;;  %v7540_v17 = vadd.f32 1.0, %v4673_v40  ;;  %4676 = vpow2.f32 %v2464_v23  ;;  %v768_v49 = vpop.f32.mrf.mxu2 }
 0x23d   : > { %v1457_v9 = vsel %vm7519_vm9, %v7459_v41, %v1453_v28  ;;  %v4116_v56 = vpack.c.bf16 %v3545_v19, %v3544_v22  ;;  %v1933_v5 = vadd.f32 %v7471_v62, %v1932_v20  ;;  %vm1935_vm12 = vweird.f32 %v7471_v62  ;;  %v7643_v19 = vpop.f32.mrf.mxu3 }
 0x23e   : > { %vm1924_vm13 = vcmp.eq.f32.partialorder %v1923_v21, 8.507059e+37  ;;  %v1938_v37 = vand.u32 2147483647, %v7435_v51  ;;  %v1940_v14 = vand.u32 2147483648, %v7435_v51  ;;  %4678 = vrcp.f32 %v7536_v1 }
 0x23f   : > { %v1447_v41 = vsel %vm7482_vm3, %v7368_v47, %v1442_v27  ;;  %v1927_v42 = vsel %vm1924_vm13, %v1926_v18, %v1922_v53  ;;  %4260 = vst [vmem:[%s6758_s30 + $0x18] sm:$0xff] %v4116_v56   ;;  %vm1934_vm14 = vweird.f32 %v7435_v51  ;;  %4680 = vrcp.f32 %v7538_v15 }
 0x240   : > { %v7565_v21 = vpop.eup %4674  ;;  %v7569_v59 = vmul.f32 %v7329_v48, %v6975_v63  ;;  %v1462_v46 = vsel %vm7523_vm11, %v1461_v38, %v1457_v9  ;;  %vm7575_vm10 = vmor %vm1934_vm14, %vm1935_vm12  ;;  %4682 = vrcp.f32 %v7540_v17  ;;  %v803_v61 = vsub.f32 0.0, %v7534_v54 }
 0x241   : > { %v7583_v51 = vmul.f32 %v7375_v55, %v7029_v35  ;;  %v1937_v63 = vsel %vm7575_vm10, %v7471_v62, %v1933_v5  ;;  %v3149_v48 = vmul.f32 %v7565_v21, %v7492_v39  ;;  %v7591_v27 = vadd.f32 %v7131_v11, %v2184_v10 }
 0x242   : > { %v4677_v57 = vpop.eup %4676  ;;  %v7594_v60 = vmul.f32 %v1447_v41, %v7100_v13  ;;  %v7597_v25 = vmul.f32 %v1927_v42, %v7242_v8  ;;  %vm1939_vm15 = vcmp.eq.f32.partialorder %v1938_v37, 8.507059e+37  ;;  %v1941_v35 = vor.u32 1.1754944e-38, %v1940_v14 }
 0x243   : > { %v7600_v55 = vmul.f32 %v1462_v46, %v7258_v0  ;;  %v3150_v7 = vsub.f32 1.0, %v3149_v48  ;;  %v3159_v62 = vand.u32 2147483648, %v7492_v39  ;;  %v7603_v33 = vadd.f32 1.0, %v4677_v57  ;;  %v2187_v46 = vpop.f32.mrf.mxu1  ;;  %v690_v57 = vpop.f32.mrf.mxu0 }
 0x244   : > { %v7605_v18 = vpop.eup %4678  ;;  %v1942_v30 = vsel %vm1939_vm15, %v1941_v35, %v1937_v63  ;;  %v3157_v13 = vand.u32 2147483647, %v7492_v39  ;;  %v897_v12 = vmul.f32 1.442695, %v803_v61  ;;  %v2081_v8 = vpack.c.bf16 %v7286_v34, %v7137_v58 }
 0x245   : > { %v7610_v23 = vpop.eup %4680  ;;  %v1465_v0 = vmul.f32 %v7605_v18, %v7536_v1  ;;  %v1475_v16 = vand.u32 2147483648, %v7536_v1  ;;  %4684 = vrcp.f32 %v7603_v33  ;;  %v2331_v50 = vsub.f32 0.0, %v7591_v27 }
 0x246   : > { %v7617_v45 = vpop.eup %4682  ;;  %v3151_v4 = vmul.f32 %v7565_v21, %v3150_v7  ;;  %v2699_v28 = vmul.f32 %v7610_v23, %v7538_v15  ;;  %v2709_v58 = vand.u32 2147483648, %v7538_v15  ;;  %2301 = vmatmul.bf16.gmra.mxu3 %v2081_v8  ;;  %v7624_v34 = vadd.f32 %v7318_v3, %v768_v49 }
 0x247   : > { %vm3153_vm0 = vweird.f32 %v7492_v39  ;;  %v3160_v43 = vor.u32 1.1754944e-38, %v3159_v62  ;;  %v1466_v20 = vsub.f32 1.0, %v1465_v0  ;;  %v1945_v40 = vmul.f32 %v7617_v45, %v7540_v17 }
 0x248   : > { %v7630_v22 = vmul.f32 %v1942_v30, %v7321_v29  ;;  %vm7632_vm1 = vcmp.eq.f32.partialorder %v3157_v13, 8.507059e+37  ;;  %vm1469_vm2 = vweird.f32 %v7536_v1  ;;  %v1473_v26 = vand.u32 2147483647, %v7536_v1 }
 0x249   : > { %v2700_v52 = vsub.f32 1.0, %v2699_v28  ;;  %4686 = vpow2.f32 %v897_v12  ;;  %vm3154_vm3 = vweird.f32 %v7565_v21  ;;  %v7639_v53 = vor.u32 1.1754944e-38, %v1475_v16 }
 0x24a   : > { %vm2703_vm4 = vweird.f32 %v7538_v15  ;;  %v2707_v38 = vand.u32 2147483647, %v7538_v15  ;;  %v2404_v29 = vmul.f32 1.442695, %v2331_v50  ;;  %v3152_v9 = vadd.f32 %v7565_v21, %v3151_v4  ;;  %vm7663_vm7 = vmor %vm3153_vm0, %vm3154_vm3 }
 0x24b   : > { %v1467_v56 = vmul.f32 %v7605_v18, %v1466_v20  ;;  %v7647_v5 = vor.u32 1.1754944e-38, %v2709_v58  ;;  %v835_v37 = vsub.f32 0.0, %v7624_v34  ;;  %v4685_v14 = vpop.eup %4684  ;;  %v1946_v10 = vsub.f32 1.0, %v1945_v40 }
 0x24c   : > { %v1953_v41 = vand.u32 2147483647, %v7540_v17  ;;  %v1955_v42 = vand.u32 2147483648, %v7540_v17  ;;  %4688 = vpow2.f32 %v2404_v29  ;;  %vm1470_vm5 = vweird.f32 %v7605_v18 }
 0x24d   : > { %vm7653_vm6 = vcmp.eq.f32.partialorder %v1473_v26, 8.507059e+37  ;;  %v2701_v61 = vmul.f32 %v7610_v23, %v2700_v52  ;;  %v3164_v63 = vmul.f32 %v4685_v14, %v7603_v33  ;;  %v961_v48 = vmul.f32 1.442695, %v835_v37  ;;  %vm7698_vm14 = vmor %vm1469_vm2, %vm1470_vm5 }
 0x24e   : > { %vm2704_vm8 = vweird.f32 %v7610_v23  ;;  %vm1949_vm9 = vweird.f32 %v7540_v17  ;;  %vm3168_vm11 = vweird.f32 %v7603_v33  ;;  %v3174_v7 = vand.u32 2147483648, %v7603_v33 }
 0x24f   : > { %v7673_v62 = vadd.f32 %v7131_v11, %v7563_v31  ;;  %v4687_v49 = vpop.eup %4686  ;;  %v3156_v39 = vsel %vm7663_vm7, %v7565_v21, %v3152_v9  ;;  %v1468_v30 = vadd.f32 %v7605_v18, %v1467_v56  ;;  %vm7679_vm12 = vcmp.eq.f32.partialorder %v2707_v38, 8.507059e+37  ;;  %vm7711_vm15 = vmor %vm2703_vm4, %vm2704_vm8  ;;  %v7726_v9 = vpop.f32.mrf.mxu3 }
 0x250   : > { %v3165_v12 = vsub.f32 1.0, %v3164_v63  ;;  %4690 = vpow2.f32 %v961_v48  ;;  %v1947_v8 = vmul.f32 %v7617_v45, %v1946_v10  ;;  %v3172_v0 = vand.u32 2147483647, %v7603_v33 }
 0x251   : > { %v7685_v16 = vadd.f32 1.0, %v4687_v49  ;;  %v7688_v31 = vadd.f32 %v7318_v3, %v690_v57  ;;  %v2702_v50 = vadd.f32 %v7610_v23, %v2701_v61  ;;  %vm3169_vm13 = vweird.f32 %v4685_v14 }
 0x252   : > { %v3166_v21 = vmul.f32 %v4685_v14, %v3165_v12  ;;  %v2362_v4 = vsub.f32 0.0, %v7673_v62  ;;  %v4689_v28 = vpop.eup %4688  ;;  %v3161_v58 = vsel %vm7632_vm1, %v3160_v43, %v3156_v39  ;;  %vm1950_vm10 = vweird.f32 %v7617_v45  ;;  %vm3170_vm0 = vmor %vm3168_vm11, %vm3169_vm13 }
 0x253   : > { %v3175_v40 = vor.u32 1.1754944e-38, %v3174_v7  ;;  %4692 = vrcp.f32 %v7685_v16  ;;  %v1472_v26 = vsel %vm7698_vm14, %v7605_v18, %v1468_v30  ;;  %v7715_v44 = vadd.f32 1.0, %v4689_v28  ;;  %vm7742_vm2 = vmor %vm1949_vm9, %vm1950_vm10 }
 0x254   : > { %v3167_v1 = vadd.f32 %v4685_v14, %v3166_v21  ;;  %v2466_v52 = vmul.f32 1.442695, %v2362_v4  ;;  %v1948_v38 = vadd.f32 %v7617_v45, %v1947_v8  ;;  %v804_v29 = vsub.f32 0.0, %v7688_v31 }
 0x255   : > { %v7722_v18 = vadd.f32 %v7131_v11, %v2187_v46  ;;  %v2066_v15 = vpack.c.bf16 %v7594_v60, %v7569_v59  ;;  %v2706_v37 = vsel %vm7711_vm15, %v7610_v23, %v2702_v50  ;;  %vm3173_vm1 = vcmp.eq.f32.partialorder %v3172_v0, 8.507059e+37  ;;  %v2189_v59 = vpop.f32.mrf.mxu1 }
 0x256   : > { %v4691_v56 = vpop.eup %4690  ;;  %v3171_v10 = vsel %vm3170_vm0, %v4685_v14, %v3167_v1  ;;  %4694 = vrcp.f32 %v7715_v44  ;;  %v3576_v33 = vmul.f32 %v3161_v58, %v7360_v24  ;;  %v1477_v46 = vsel %vm7653_vm6, %v7639_v53, %v1472_v26  ;;  %v770_v53 = vpop.f32.mrf.mxu2 }
 0x257   : > { %v3176_v61 = vsel %vm3173_vm1, %v3175_v40, %v3171_v10  ;;  %v7736_v63 = vadd.f32 1.0, %v4691_v56  ;;  %2226 = vmatmul.bf16.gmra.mxu1 %v2066_v15  ;;  %4696 = vpow2.f32 %v2466_v52  ;;  %v899_v24 = vmul.f32 1.442695, %v804_v29  ;;  %v7795_v20 = vpop.f32.mrf.mxu3 }
 0x258   : > { %v3577_v23 = vmul.f32 %v3176_v61, %v7446_v6  ;;  %v2332_v14 = vsub.f32 0.0, %v7722_v18  ;;  %v2711_v48 = vsel %vm7679_vm12, %v7647_v5, %v2706_v37  ;;  %v1952_v57 = vsel %vm7742_vm2, %v7617_v45, %v1948_v38 }
 0x259   : > { %v7748_v47 = vpop.eup %4692  ;;  %v1488_v35 = vand.u32 2147483647, %v7685_v16  ;;  %4698 = vrcp.f32 %v7736_v63  ;;  %vm1954_vm3 = vcmp.eq.f32.partialorder %v1953_v41, 8.507059e+37  ;;  %v1956_v6 = vor.u32 1.1754944e-38, %v1955_v42 }
 0x25a   : > { %v4196_v7 = vpack.c.bf16 %v3577_v23, %v3576_v33  ;;  %v1480_v49 = vmul.f32 %v7748_v47, %v7685_v16  ;;  %v7765_v5 = vmul.f32 %v1477_v46, %v7363_v32  ;;  %4700 = vpow2.f32 %v899_v24 }
 0x25b   : > { %v2406_v39 = vmul.f32 1.442695, %v2332_v14  ;;  %v7768_v45 = vadd.f32 %v7318_v3, %v770_v53  ;;  %v7771_v13 = vmul.f32 %v2711_v48, %v7394_v36  ;;  %v1957_v41 = vsel %vm1954_vm3, %v1956_v6, %v1952_v57 }
 0x25c   : > { %v4695_v30 = vpop.eup %4694  ;;  %4276 = vst [vmem:[%s6758_s30 + $0x98] sm:$0xff] %v4196_v7   ;;  %v1481_v17 = vsub.f32 1.0, %v1480_v49  ;;  %vm1484_vm4 = vweird.f32 %v7685_v16  ;;  %vm7775_vm5 = vcmp.eq.f32.partialorder %v1488_v35, 8.507059e+37  ;;  %v1490_v32 = vand.u32 2147483648, %v7685_v16 }
 0x25d   : > { %v2714_v12 = vmul.f32 %v4695_v30, %v7715_v44  ;;  %4702 = vpow2.f32 %v2406_v39  ;;  %v4697_v3 = vpop.eup %4696  ;;  %vm1485_vm6 = vweird.f32 %v7748_v47  ;;  %v2722_v36 = vand.u32 2147483647, %v7715_v44 }
 0x25e   : > { %v1482_v8 = vmul.f32 %v7748_v47, %v1481_v17  ;;  %v836_v0 = vsub.f32 0.0, %v7768_v45  ;;  %v7787_v4 = vadd.f32 1.0, %v4697_v3  ;;  %v7791_v28 = vadd.f32 %v7131_v11, %v7643_v19  ;;  %vm7811_vm8 = vmor %vm1484_vm4, %vm1485_vm6  ;;  %v7861_v3 = vld [vmem:[%s9176_s4] ss:$0 sm:$0xff] }
 0x25f   : > { %v7785_v50 = vpop.eup %4698  ;;  %v2715_v21 = vsub.f32 1.0, %v2714_v12  ;;  %v2082_v58 = vpack.c.bf16 %v7597_v25, %v7583_v51  ;;  %v2724_v40 = vand.u32 2147483648, %v7715_v44  ;;  %v7801_v1 = vadd.f32 %v7131_v11, %v2189_v59  ;;  %v7805_v51 = vpop.f32.mrf.mxu1 }
 0x260   : > { %v1960_v26 = vmul.f32 %v7785_v50, %v7736_v63  ;;  %v963_v43 = vmul.f32 1.442695, %v836_v0  ;;  %v4701_v52 = vpop.eup %4700  ;;  %v1483_v38 = vadd.f32 %v7748_v47, %v1482_v8  ;;  %vm2719_vm7 = vweird.f32 %v4695_v30  ;;  %v7851_v17 = vpop.f32.mrf.mxu3 }
 0x261   : > { %v2716_v29 = vmul.f32 %v4695_v30, %v2715_v21  ;;  %4704 = vrcp.f32 %v7787_v4  ;;  %2306 = vmatmul.bf16.gmra.mxu3 %v2082_v58  ;;  %vm2718_vm9 = vweird.f32 %v7715_v44  ;;  %v1968_v19 = vand.u32 2147483647, %v7736_v63 }
 0x262   : > { %v1961_v11 = vsub.f32 1.0, %v1960_v26  ;;  %v7817_v15 = vadd.f32 1.0, %v4701_v52  ;;  %v1970_v10 = vand.u32 2147483648, %v7736_v63  ;;  %4706 = vpow2.f32 %v963_v43  ;;  %vm2720_vm11 = vmor %vm2718_vm9, %vm2719_vm7 }
 0x263   : > { %v4703_v56 = vpop.eup %4702  ;;  %v2717_v37 = vadd.f32 %v4695_v30, %v2716_v29  ;;  %v2363_v33 = vsub.f32 0.0, %v7791_v28  ;;  %v1491_v46 = vor.u32 1.1754944e-38, %v1490_v32  ;;  %vm2723_vm12 = vcmp.eq.f32.partialorder %v2722_v36, 8.507059e+37 }
 0x264   : > { %v2725_v16 = vor.u32 1.1754944e-38, %v2724_v40  ;;  %4708 = vrcp.f32 %v7817_v15  ;;  %v1487_v44 = vsel %vm7811_vm8, %v7748_v47, %v1483_v38  ;;  %v1962_v59 = vmul.f32 %v7785_v50, %v1961_v11 }
 0x265   : > { %v2721_v61 = vsel %vm2720_vm11, %v4695_v30, %v2717_v37  ;;  %v2333_v60 = vsub.f32 0.0, %v7801_v1  ;;  %v7829_v23 = vmul.f32 %v1957_v41, %v7403_v2  ;;  %vm1964_vm13 = vweird.f32 %v7736_v63 }
 0x266   : > { %v2726_v24 = vsel %vm2723_vm12, %v2725_v16, %v2721_v61  ;;  %v7832_v14 = vadd.f32 1.0, %v4703_v56  ;;  %vm7837_vm14 = vcmp.eq.f32.partialorder %v1968_v19, 8.507059e+37  ;;  %v1971_v47 = vor.u32 1.1754944e-38, %v1970_v10 }
 0x267   : > { %v7834_v53 = vpop.eup %4704  ;;  %v3547_v48 = vmul.f32 %v2726_v24, %v7591_v27  ;;  %v3187_v35 = vand.u32 2147483647, %v7787_v4  ;;  %v2468_v6 = vmul.f32 1.442695, %v2363_v33  ;;  %v1492_v2 = vsel %vm7775_vm5, %v1491_v46, %v1487_v44  ;;  %v2194_v21 = vpop.f32.mrf.mxu1 }
 0x268   : > { %v3179_v7 = vmul.f32 %v7834_v53, %v7787_v4  ;;  %v3189_v49 = vand.u32 2147483648, %v7787_v4  ;;  %4710 = vrcp.f32 %v7832_v14  ;;  %v4707_v27 = vpop.eup %4706  ;;  %v1963_v30 = vadd.f32 %v7785_v50, %v1962_v59 }
 0x269   : > { %v4121_v39 = vpack.c.bf16 %v3547_v48, %v7771_v13  ;;  %vm1965_vm10 = vweird.f32 %v7785_v50  ;;  %v2408_v41 = vmul.f32 1.442695, %v2333_v60  ;;  %vm3183_vm15 = vweird.f32 %v7787_v4 }
 0x26a   : > { %v7853_v42 = vpop.eup %4708  ;;  %v3180_v32 = vsub.f32 1.0, %v3179_v7  ;;  %v7856_v12 = vadd.f32 1.0, %v4707_v27  ;;  %v7865_v13 = vadd.f32 %v7861_v3, %v7726_v9  ;;  %v7868_v8 = vmul.f32 %v1492_v2, %v7534_v54  ;;  %vm7878_vm0 = vmor %vm1964_vm13, %vm1965_vm10 }
 0x26b   : > { %4261 = vst [vmem:[%s6758_s30 + $0x20] sm:$0xff] %v4121_v39   ;;  %v1495_v36 = vmul.f32 %v7853_v42, %v7817_v15  ;;  %v1505_v0 = vand.u32 2147483648, %v7817_v15  ;;  %4712 = vpow2.f32 %v2468_v6  ;;  %vm7883_vm1 = vcmp.eq.f32.partialorder %v3187_v35, 8.507059e+37  ;;  %v7939_v35 = vpop.f32.mrf.mxu3 }
 0x26c   : > { %v3181_v9 = vmul.f32 %v7834_v53, %v3180_v32  ;;  %v3190_v40 = vor.u32 1.1754944e-38, %v3189_v49  ;;  %v1503_v26 = vand.u32 2147483647, %v7817_v15  ;;  %4714 = vrcp.f32 %v7856_v12 }
 0x26d   : > { %v1967_v43 = vsel %vm7878_vm0, %v7785_v50, %v1963_v30  ;;  %vm3184_vm2 = vweird.f32 %v7834_v53  ;;  %v1496_v63 = vsub.f32 1.0, %v1495_v36  ;;  %4716 = vpow2.f32 %v2408_v41 }
 0x26e   : > { %v7893_v52 = vpop.eup %4710  ;;  %v3182_v38 = vadd.f32 %v7834_v53, %v3181_v9  ;;  %v2364_v29 = vsub.f32 0.0, %v7865_v13  ;;  %v7899_v25 = vadd.f32 %v7861_v3, %v7805_v51  ;;  %v2067_v11 = vpack.c.bf16 %v7765_v5, %v7600_v55  ;;  %vm7911_vm4 = vmor %vm3183_vm15, %vm3184_vm2 }
 0x26f   : > { %v1497_v19 = vmul.f32 %v7853_v42, %v1496_v63  ;;  %vm1499_vm3 = vweird.f32 %v7817_v15  ;;  %v1506_v50 = vor.u32 1.1754944e-38, %v1505_v0  ;;  %v2729_v56 = vmul.f32 %v7893_v52, %v7832_v14  ;;  %v7959_v27 = vpop.f32.mrf.mxu1 }
 0x270   : > { %v1972_v37 = vsel %vm7837_vm14, %v1971_v47, %v1967_v43  ;;  %vm7915_vm5 = vcmp.eq.f32.partialorder %v1503_v26, 8.507059e+37  ;;  %vm2733_vm6 = vweird.f32 %v7832_v14  ;;  %v2470_v55 = vmul.f32 1.442695, %v2364_v29  ;;  %2231 = vmatmul.bf16.gmra.mxu1 %v2067_v11 }
 0x271   : > { %v2334_v5 = vsub.f32 0.0, %v7899_v25  ;;  %v4713_v33 = vpop.eup %4712  ;;  %v3186_v46 = vsel %vm7911_vm4, %v7834_v53, %v3182_v38  ;;  %v1498_v4 = vadd.f32 %v7853_v42, %v1497_v19  ;;  %vm1500_vm7 = vweird.f32 %v7853_v42 }
 0x272   : > { %v2730_v16 = vsub.f32 1.0, %v2729_v56  ;;  %v7926_v44 = vpop.eup %4714  ;;  %v7928_v61 = vadd.f32 1.0, %v4713_v33  ;;  %4718 = vpow2.f32 %v2470_v55  ;;  %v7932_v60 = vadd.f32 %v7861_v3, %v7795_v20  ;;  %vm7946_vm8 = vmor %vm1499_vm3, %vm1500_vm7 }
 0x273   : > { %v2410_v59 = vmul.f32 1.442695, %v2334_v5  ;;  %v4717_v24 = vpop.eup %4716  ;;  %v2737_v53 = vand.u32 2147483647, %v7832_v14  ;;  %v2739_v57 = vand.u32 2147483648, %v7832_v14  ;;  %v1975_v47 = vmul.f32 %v7926_v44, %v7856_v12  ;;  %v8017_v33 = vpop.f32.mrf.mxu3 }
 0x274   : > { %v2731_v48 = vmul.f32 %v7893_v52, %v2730_v16  ;;  %v7942_v6 = vmul.f32 %v1972_v37, %v7624_v34  ;;  %v1983_v2 = vand.u32 2147483647, %v7856_v12  ;;  %v1985_v7 = vand.u32 2147483648, %v7856_v12 }
 0x275   : > { %4720 = vrcp.f32 %v7928_v61  ;;  %v3191_v49 = vsel %vm7883_vm1, %v3190_v40, %v3186_v46  ;;  %v1502_v34 = vsel %vm7946_vm8, %v7853_v42, %v1498_v4  ;;  %vm2734_vm9 = vweird.f32 %v7893_v52 }
 0x276   : > { %v1976_v15 = vsub.f32 1.0, %v1975_v47  ;;  %v2732_v39 = vadd.f32 %v7893_v52, %v2731_v48  ;;  %v7962_v30 = vadd.f32 1.0, %v4717_v24  ;;  %4722 = vpow2.f32 %v2410_v59  ;;  %vm7985_vm13 = vmor %vm2733_vm6, %vm2734_vm9 }
 0x277   : > { %v2365_v41 = vsub.f32 0.0, %v7932_v60  ;;  %vm7965_vm11 = vcmp.eq.f32.partialorder %v2737_v53, 8.507059e+37  ;;  %v2740_v36 = vor.u32 1.1754944e-38, %v2739_v57  ;;  %v7971_v42 = vadd.f32 %v7861_v3, %v2194_v21  ;;  %v2199_v53 = vpop.f32.mrf.mxu1 }
 0x278   : > { %v1977_v0 = vmul.f32 %v7926_v44, %v1976_v15  ;;  %v4719_v58 = vpop.eup %4718  ;;  %vm1979_vm12 = vweird.f32 %v7856_v12  ;;  %v1986_v9 = vor.u32 1.1754944e-38, %v1985_v7  ;;  %v3202_v54 = vand.u32 2147483647, %v7928_v61 }
 0x279   : > { %4724 = vrcp.f32 %v7962_v30  ;;  %v7977_v40 = vmul.f32 %v3191_v49, %v7673_v62  ;;  %v1507_v26 = vsel %vm7915_vm5, %v1506_v50, %v1502_v34  ;;  %vm7989_vm14 = vcmp.eq.f32.partialorder %v1983_v2, 8.507059e+37 }
 0x27a   : > { %v3204_v63 = vand.u32 2147483648, %v7928_v61  ;;  %v7994_v38 = vadd.f32 1.0, %v4719_v58  ;;  %v2736_v29 = vsel %vm7985_vm13, %v7893_v52, %v2732_v39  ;;  %v2472_v11 = vmul.f32 1.442695, %v2365_v41 }
 0x27b   : > { %v4721_v62 = vpop.eup %4720  ;;  %v2335_v14 = vsub.f32 0.0, %v7971_v42  ;;  %v2083_v19 = vpack.c.bf16 %v7829_v23, %v7630_v22  ;;  %v1978_v50 = vadd.f32 %v7926_v44, %v1977_v0  ;;  %vm1980_vm10 = vweird.f32 %v7926_v44 }
 0x27c   : > { %v3194_v56 = vmul.f32 %v4721_v62, %v7928_v61  ;;  %vm3198_vm15 = vweird.f32 %v7928_v61  ;;  %v4723_v37 = vpop.eup %4722  ;;  %v2020_v10 = vmul.f32 %v1507_v26, %v7688_v31  ;;  %vm8007_vm0 = vcmp.eq.f32.partialorder %v3202_v54, 8.507059e+37  ;;  %vm8023_vm1 = vmor %vm1979_vm12, %vm1980_vm10 }
 0x27d   : > { %v2752_v52 = vand.u32 2147483647, %v7962_v30  ;;  %4726 = vrcp.f32 %v7994_v38  ;;  %2311 = vmatmul.bf16.gmra.mxu3 %v2083_v19  ;;  %v2741_v22 = vsel %vm7965_vm11, %v2740_v36, %v2736_v29  ;;  %v3205_v55 = vor.u32 1.1754944e-38, %v3204_v63 }
 0x27e   : > { %v3195_v23 = vsub.f32 1.0, %v3194_v56  ;;  %v8015_v5 = vadd.f32 1.0, %v4723_v37  ;;  %v2754_v4 = vand.u32 2147483648, %v7962_v30  ;;  %4728 = vpow2.f32 %v2472_v11 }
 0x27f   : > { %v4725_v46 = vpop.eup %4724  ;;  %v2412_v16 = vmul.f32 1.442695, %v2335_v14  ;;  %v8030_v59 = vadd.f32 %v7861_v3, %v7851_v17  ;;  %v1982_v24 = vsel %vm8023_vm1, %v7926_v44, %v1978_v50  ;;  %vm3199_vm2 = vweird.f32 %v4721_v62  ;;  %v8079_v14 = vpop.f32.mrf.mxu3 }
 0x280   : > { %v3196_v48 = vmul.f32 %v4721_v62, %v3195_v23  ;;  %v2744_v12 = vmul.f32 %v4725_v46, %v7962_v30  ;;  %v8037_v57 = vmul.f32 %v2741_v22, %v7722_v18  ;;  %vm2748_vm3 = vweird.f32 %v7962_v30  ;;  %vm3200_vm5 = vmor %vm3198_vm15, %vm3199_vm2 }
 0x281   : > { %vm8040_vm4 = vcmp.eq.f32.partialorder %v2752_v52, 8.507059e+37  ;;  %4730 = vrcp.f32 %v8015_v5  ;;  %v2366_v44 = vsub.f32 0.0, %v8030_v59  ;;  %v1987_v7 = vsel %vm7989_vm14, %v1986_v9, %v1982_v24 }
 0x282   : > { %v3197_v17 = vadd.f32 %v4721_v62, %v3196_v48  ;;  %v2745_v20 = vsub.f32 1.0, %v2744_v12  ;;  %4732 = vpow2.f32 %v2412_v16  ;;  %v2755_v18 = vor.u32 1.1754944e-38, %v2754_v4 }
 0x283   : > { %v8046_v2 = vpop.eup %4726  ;;  %v8054_v49 = vadd.f32 %v7861_v3, %v7959_v27  ;;  %v2068_v34 = vpack.c.bf16 %v2020_v10, %v7868_v8  ;;  %vm2749_vm6 = vweird.f32 %v4725_v46  ;;  %v2474_v0 = vmul.f32 1.442695, %v2366_v44  ;;  %v2202_v10 = vpop.f32.mrf.mxu1 }
 0x284   : > { %v3201_v15 = vsel %vm3200_vm5, %v4721_v62, %v3197_v17  ;;  %v2746_v39 = vmul.f32 %v4725_v46, %v2745_v20  ;;  %v3209_v41 = vmul.f32 %v8046_v2, %v7994_v38  ;;  %v4729_v32 = vpop.eup %4728  ;;  %v8064_v27 = vadd.f32 %v7861_v3, %v7939_v35  ;;  %vm2750_vm7 = vmor %vm2748_vm3, %vm2749_vm6 }
 0x285   : > { %v3206_v36 = vsel %vm8007_vm0, %v3205_v55, %v3201_v15  ;;  %v2336_v61 = vsub.f32 0.0, %v8054_v49  ;;  %2236 = vmatmul.bf16.gmra.mxu1 %v2068_v34  ;;  %v8067_v54 = vadd.f32 1.0, %v4729_v32  ;;  %v3217_v21 = vand.u32 2147483647, %v7994_v38 }
 0x286   : > { %v3579_v8 = vmul.f32 %v3206_v36, %v7791_v28  ;;  %v2747_v58 = vadd.f32 %v4725_v46, %v2746_v39  ;;  %v3210_v9 = vsub.f32 1.0, %v3209_v41  ;;  %4734 = vpow2.f32 %v2474_v0 }
 0x287   : > { %v8069_v26 = vpop.eup %4730  ;;  %v2414_v43 = vmul.f32 1.442695, %v2336_v61  ;;  %v2367_v63 = vsub.f32 0.0, %v8064_v27  ;;  %v2052_v30 = vmul.f32 %v1987_v7, %v7768_v45  ;;  %v3219_v50 = vand.u32 2147483648, %v7994_v38  ;;  %v8136_v41 = vpop.f32.mrf.mxu3 }
 0x288   : > { %v4733_v35 = vpop.eup %4732  ;;  %v4201_v62 = vpack.c.bf16 %v3579_v8, %v7977_v40  ;;  %v2751_v28 = vsel %vm2750_vm7, %v4725_v46, %v2747_v58  ;;  %v3211_v29 = vmul.f32 %v8046_v2, %v3210_v9  ;;  %v2759_v11 = vmul.f32 %v8069_v26, %v8015_v5 }
 0x289   : > { %v2756_v19 = vsel %vm8040_vm4, %v2755_v18, %v2751_v28  ;;  %4736 = vrcp.f32 %v8067_v54  ;;  %vm3214_vm8 = vweird.f32 %v8046_v2  ;;  %v8090_v51 = vadd.f32 1.0, %v4733_v35 }
 0x28a   : > { %4277 = vst [vmem:[%s6758_s30 + $0xa0] sm:$0xff] %v4201_v62   ;;  %v3549_v40 = vmul.f32 %v2756_v19, %v7801_v1  ;;  %v3212_v56 = vadd.f32 %v8046_v2, %v3211_v29  ;;  %v2760_v37 = vsub.f32 1.0, %v2759_v11  ;;  %4738 = vpow2.f32 %v2414_v43 }
 0x28b   : > { %v2476_v45 = vmul.f32 1.442695, %v2367_v63  ;;  %v8093_v52 = vadd.f32 %v7861_v3, %v2199_v53  ;;  %vm3213_vm9 = vweird.f32 %v7994_v38  ;;  %v2767_v23 = vand.u32 2147483647, %v8015_v5  ;;  %v2204_v43 = vpop.f32.mrf.mxu1 }
 0x28c   : > { %v4126_v22 = vpack.c.bf16 %v3549_v40, %v8037_v57  ;;  %v2761_v1 = vmul.f32 %v8069_v26, %v2760_v37  ;;  %v4735_v55 = vpop.eup %4734  ;;  %vm8099_vm11 = vmor %vm3213_vm9, %vm3214_vm8  ;;  %vm8103_vm12 = vcmp.eq.f32.partialorder %v3217_v21, 8.507059e+37  ;;  %v3220_v4 = vor.u32 1.1754944e-38, %v3219_v50 }
 0x28d   : > { %v2769_v16 = vand.u32 2147483648, %v8015_v5  ;;  %4740 = vrcp.f32 %v8090_v51  ;;  %v3216_v38 = vsel %vm8099_vm11, %v8046_v2, %v3212_v56  ;;  %vm2763_vm13 = vweird.f32 %v8015_v5 }
 0x28e   : > { %4262 = vst [vmem:[%s6758_s30 + $0x28] sm:$0xff] %v4126_v22   ;;  %v3232_v24 = vand.u32 2147483647, %v8067_v54  ;;  %v3234_v48 = vand.u32 2147483648, %v8067_v54  ;;  %v8116_v53 = vadd.f32 1.0, %v4735_v55  ;;  %4742 = vpow2.f32 %v2476_v45 }
 0x28f   : > { %v4737_v12 = vpop.eup %4736  ;;  %v2337_v57 = vsub.f32 0.0, %v8093_v52  ;;  %v2084_v47 = vpack.c.bf16 %v2052_v30, %v7942_v6  ;;  %v2762_v17 = vadd.f32 %v8069_v26, %v2761_v1  ;;  %vm2764_vm14 = vweird.f32 %v8069_v26 }
 0x290   : > { %vm8122_vm10 = vcmp.eq.f32.partialorder %v2767_v23, 8.507059e+37  ;;  %v3224_v44 = vmul.f32 %v4737_v12, %v8067_v54  ;;  %v4739_v2 = vpop.eup %4738  ;;  %v2770_v7 = vor.u32 1.1754944e-38, %v2769_v16  ;;  %vm3228_vm15 = vweird.f32 %v8067_v54  ;;  %vm8142_vm1 = vmor %vm2763_vm13, %vm2764_vm14 }
 0x291   : > { %v2782_v18 = vand.u32 2147483647, %v8090_v51  ;;  %4744 = vrcp.f32 %v8116_v53  ;;  %2316 = vmatmul.bf16.gmra.mxu3 %v2084_v47  ;;  %v3221_v6 = vsel %vm8103_vm12, %v3220_v4, %v3216_v38  ;;  %vm8132_vm0 = vcmp.eq.f32.partialorder %v3232_v24, 8.507059e+37 }
 0x292   : > { %v3225_v34 = vsub.f32 1.0, %v3224_v44  ;;  %v3235_v39 = vor.u32 1.1754944e-38, %v3234_v48  ;;  %v2784_v0 = vand.u32 2147483648, %v8090_v51  ;;  %v8147_v61 = vadd.f32 1.0, %v4739_v2  ;;  %v8198_v48 = vpop.f32.mrf.mxu3 }
 0x293   : > { %v4741_v32 = vpop.eup %4740  ;;  %v2416_v8 = vmul.f32 1.442695, %v2337_v57  ;;  %v8151_v58 = vadd.f32 %v7861_v3, %v8017_v33  ;;  %v2766_v9 = vsel %vm8142_vm1, %v8069_v26, %v2762_v17  ;;  %vm3229_vm2 = vweird.f32 %v4737_v12  ;;  %v2207_v44 = vpop.f32.mrf.mxu1 }
 0x294   : > { %v3226_v21 = vmul.f32 %v4737_v12, %v3225_v34  ;;  %v2774_v5 = vmul.f32 %v4741_v32, %v8090_v51  ;;  %v4743_v63 = vpop.eup %4742  ;;  %v3580_v35 = vmul.f32 %v3221_v6, %v7865_v13  ;;  %vm2778_vm3 = vweird.f32 %v8090_v51  ;;  %vm3230_vm5 = vmor %vm3228_vm15, %vm3229_vm2 }
 0x295   : > { %vm8159_vm4 = vcmp.eq.f32.partialorder %v2782_v18, 8.507059e+37  ;;  %4746 = vrcp.f32 %v8147_v61  ;;  %v8164_v29 = vadd.f32 1.0, %v4743_v63  ;;  %v8167_v26 = vadd.f32 %v7861_v3, %v2202_v10 }
 0x296   : > { %v3227_v33 = vadd.f32 %v4737_v12, %v3226_v21  ;;  %v2775_v28 = vsub.f32 1.0, %v2774_v5  ;;  %v2771_v13 = vsel %vm8122_vm10, %v2770_v7, %v2766_v9  ;;  %v2785_v30 = vor.u32 1.1754944e-38, %v2784_v0 }
 0x297   : > { %v8169_v11 = vpop.eup %4744  ;;  %4748 = vpow2.f32 %v2416_v8  ;;  %v2368_v19 = vsub.f32 0.0, %v8151_v58  ;;  %vm2779_vm6 = vweird.f32 %v4741_v32  ;;  %vm3243_vm7 = vweird.f32 %v8116_v53 }
 0x298   : > { %v3231_v50 = vsel %vm3230_vm5, %v4737_v12, %v3227_v33  ;;  %v2776_v40 = vmul.f32 %v4741_v32, %v2775_v28  ;;  %v3239_v56 = vmul.f32 %v8169_v11, %v8116_v53  ;;  %v3247_v10 = vand.u32 2147483647, %v8116_v53  ;;  %vm2780_vm8 = vmor %vm2778_vm3, %vm2779_vm6 }
 0x299   : > { %v3236_v37 = vsel %vm8132_vm0, %v3235_v39, %v3231_v50  ;;  %4750 = vrcp.f32 %v8164_v29  ;;  %v2338_v1 = vsub.f32 0.0, %v8167_v26  ;;  %v3550_v55 = vmul.f32 %v2771_v13, %v7899_v25 }
 0x29a   : > { %v3581_v54 = vmul.f32 %v3236_v37, %v7932_v60  ;;  %v2777_v45 = vadd.f32 %v4741_v32, %v2776_v40  ;;  %v3240_v22 = vsub.f32 1.0, %v3239_v56  ;;  %v3249_v46 = vand.u32 2147483648, %v8116_v53 }
 0x29b   : > { %v8185_v23 = vpop.eup %4746  ;;  %v2478_v31 = vmul.f32 1.442695, %v2368_v19  ;;  %v8193_v4 = vadd.f32 %v7861_v3, %v8079_v14  ;;  %vm3244_vm9 = vweird.f32 %v8169_v11  ;;  %vm8203_vm11 = vcmp.eq.f32.partialorder %v3247_v10, 8.507059e+37 }
 0x29c   : > { %v4206_v60 = vpack.c.bf16 %v3581_v54, %v3580_v35  ;;  %v2781_v16 = vsel %vm2780_vm8, %v4741_v32, %v2777_v45  ;;  %v3241_v38 = vmul.f32 %v8169_v11, %v3240_v22  ;;  %v2789_v24 = vmul.f32 %v8185_v23, %v8147_v61  ;;  %vm8231_vm13 = vmor %vm3243_vm7, %vm3244_vm9  ;;  %v2209_v22 = vpop.f32.mrf.mxu1 }
 0x29d   : > { %v4749_v25 = vpop.eup %4748  ;;  %v2786_v51 = vsel %vm8159_vm4, %v2785_v30, %v2781_v16  ;;  %v2797_v14 = vand.u32 2147483647, %v8147_v61  ;;  %v2418_v20 = vmul.f32 1.442695, %v2338_v1  ;;  %4752 = vpow2.f32 %v2478_v31 }
 0x29e   : > { %4278 = vst [vmem:[%s6758_s30 + $0xa8] sm:$0xff] %v4206_v60   ;;  %v3551_v57 = vmul.f32 %v2786_v51, %v7971_v42  ;;  %v2790_v47 = vsub.f32 1.0, %v2789_v24  ;;  %v8210_v17 = vadd.f32 1.0, %v4749_v25  ;;  %v3242_v7 = vadd.f32 %v8169_v11, %v3241_v38 }
 0x29f   : > { %v4751_v2 = vpop.eup %4750  ;;  %v2369_v18 = vsub.f32 0.0, %v8193_v4  ;;  %v8215_v6 = vadd.f32 %v7861_v3, %v2204_v43  ;;  %v8221_v39 = vadd.f32 %v7861_v3, %v8136_v41  ;;  %v3250_v32 = vor.u32 1.1754944e-38, %v3249_v46 }
 0x2a0   : > { %v4131_v34 = vpack.c.bf16 %v3551_v57, %v3550_v55  ;;  %v2791_v15 = vmul.f32 %v8185_v23, %v2790_v47  ;;  %v3254_v42 = vmul.f32 %v4751_v2, %v8164_v29  ;;  %vm2793_vm12 = vweird.f32 %v8147_v61 }
 0x2a1   : > { %v2799_v36 = vand.u32 2147483648, %v8147_v61  ;;  %4754 = vrcp.f32 %v8210_v17  ;;  %vm2794_vm14 = vweird.f32 %v8185_v23  ;;  %vm8236_vm10 = vcmp.eq.f32.partialorder %v2797_v14, 8.507059e+37 }
 0x2a2   : > { %4263 = vst [vmem:[%s6758_s30 + $0x30] sm:$0xff] %v4131_v34   ;;  %v3255_v8 = vsub.f32 1.0, %v3254_v42  ;;  %v3262_v9 = vand.u32 2147483647, %v8164_v29  ;;  %v3264_v21 = vand.u32 2147483648, %v8164_v29  ;;  %v3246_v5 = vsel %vm8231_vm13, %v8169_v11, %v3242_v7  ;;  %vm8255_vm1 = vmor %vm2793_vm12, %vm2794_vm14 }
 0x2a3   : > { %4756 = vpow2.f32 %v2418_v20  ;;  %v2480_v53 = vmul.f32 1.442695, %v2369_v18  ;;  %v2339_v43 = vsub.f32 0.0, %v8215_v6  ;;  %v2792_v63 = vadd.f32 %v8185_v23, %v2791_v15  ;;  %v4753_v33 = vpop.eup %4752 }
 0x2a4   : > { %v3256_v35 = vmul.f32 %v4751_v2, %v3255_v8  ;;  %vm3259_vm15 = vweird.f32 %v4751_v2  ;;  %v2370_v62 = vsub.f32 0.0, %v8221_v39  ;;  %v2800_v28 = vor.u32 1.1754944e-38, %v2799_v36 }
 0x2a5   : > { %vm3258_vm0 = vweird.f32 %v8164_v29  ;;  %4758 = vpow2.f32 %v2480_v53  ;;  %v2420_v13 = vmul.f32 1.442695, %v2339_v43  ;;  %v3251_v30 = vsel %vm8203_vm11, %v3250_v32, %v3246_v5  ;;  %v8265_v29 = vpop.f32.mrf.mxu3 }
 0x2a6   : > { %v3257_v19 = vadd.f32 %v4751_v2, %v3256_v35  ;;  %vm8259_vm2 = vcmp.eq.f32.partialorder %v3262_v9, 8.507059e+37  ;;  %v8263_v40 = vadd.f32 1.0, %v4753_v33  ;;  %vm3260_vm3 = vmor %vm3258_vm0, %vm3259_vm15  ;;  %v3265_v37 = vor.u32 1.1754944e-38, %v3264_v21 }
 0x2a7   : > { %v4755_v56 = vpop.eup %4754  ;;  %vm2808_vm4 = vweird.f32 %v8210_v17  ;;  %4760 = vpow2.f32 %v2420_v13  ;;  %v2482_v61 = vmul.f32 1.442695, %v2370_v62  ;;  %v2796_v10 = vsel %vm8255_vm1, %v8185_v23, %v2792_v63 }
 0x2a8   : > { %v3261_v54 = vsel %vm3260_vm3, %v4751_v2, %v3257_v19  ;;  %v2804_v45 = vmul.f32 %v4755_v56, %v8210_v17  ;;  %4762 = vrcp.f32 %v8263_v40  ;;  %v3582_v55 = vmul.f32 %v3251_v30, %v8030_v59 }
 0x2a9   : > { %v4757_v1 = vpop.eup %4756  ;;  %v3266_v46 = vsel %vm8259_vm2, %v3265_v37, %v3261_v54  ;;  %v2812_v31 = vand.u32 2147483647, %v8210_v17  ;;  %v8278_v60 = vadd.f32 %v7861_v3, %v2207_v44  ;;  %v8285_v24 = vadd.f32 %v7861_v3, %v8198_v48 }
 0x2aa   : > { %v3583_v16 = vmul.f32 %v3266_v46, %v8064_v27  ;;  %v2805_v23 = vsub.f32 1.0, %v2804_v45  ;;  %v8281_v38 = vadd.f32 1.0, %v4757_v1  ;;  %v2801_v59 = vsel %vm8236_vm10, %v2800_v28, %v2796_v10  ;;  %v2212_v28 = vpop.f32.mrf.mxu1 }
 0x2ab   : > { %v4759_v25 = vpop.eup %4758  ;;  %vm2809_vm5 = vweird.f32 %v4755_v56  ;;  %v2814_v51 = vand.u32 2147483648, %v8210_v17  ;;  %4764 = vpow2.f32 %v2482_v61  ;;  %v3279_v27 = vand.u32 2147483648, %v8263_v40 }
 0x2ac   : > { %v4211_v12 = vpack.c.bf16 %v3583_v16, %v3582_v55  ;;  %v2806_v14 = vmul.f32 %v4755_v56, %v2805_v23  ;;  %4766 = vrcp.f32 %v8281_v38  ;;  %vm8292_vm6 = vcmp.eq.f32.partialorder %v2812_v31, 8.507059e+37  ;;  %vm2810_vm7 = vmor %vm2808_vm4, %vm2809_vm5 }
 0x2ad   : > { %v4761_v57 = vpop.eup %4760  ;;  %v3277_v48 = vand.u32 2147483647, %v8263_v40  ;;  %v8297_v20 = vadd.f32 1.0, %v4759_v25  ;;  %v2340_v44 = vsub.f32 0.0, %v8278_v60  ;;  %v2371_v34 = vsub.f32 0.0, %v8285_v24  ;;  %v8318_v9 = vpop.f32.mrf.mxu3 }
 0x2ae   : > { %v8300_v2 = vpop.eup %4762  ;;  %4279 = vst [vmem:[%s6758_s30 + $0xb0] sm:$0xff] %v4211_v12   ;;  %v2807_v7 = vadd.f32 %v4755_v56, %v2806_v14  ;;  %v8303_v18 = vadd.f32 1.0, %v4761_v57  ;;  %v8307_v15 = vadd.f32 %v7861_v3, %v2209_v22  ;;  %v3552_v42 = vmul.f32 %v2801_v59, %v8054_v49 }
 0x2af   : > { %v2815_v32 = vor.u32 1.1754944e-38, %v2814_v51  ;;  %v3269_v36 = vmul.f32 %v8300_v2, %v8263_v40  ;;  %vm3273_vm8 = vweird.f32 %v8263_v40  ;;  %v3280_v41 = vor.u32 1.1754944e-38, %v3279_v27 }
 0x2b0   : > { %v2811_v0 = vsel %vm2810_vm7, %v4755_v56, %v2807_v7  ;;  %v2827_v8 = vand.u32 2147483647, %v8281_v38  ;;  %4768 = vrcp.f32 %v8297_v20  ;;  %vm8322_vm9 = vcmp.eq.f32.partialorder %v3277_v48, 8.507059e+37 }
 0x2b1   : > { %v4765_v21 = vpop.eup %4764  ;;  %v2816_v49 = vsel %vm8292_vm6, %v2815_v32, %v2811_v0  ;;  %v3270_v17 = vsub.f32 1.0, %v3269_v36  ;;  %vm2823_vm11 = vweird.f32 %v8281_v38  ;;  %4770 = vrcp.f32 %v8303_v18 }
 0x2b2   : > { %v2422_v53 = vmul.f32 1.442695, %v2340_v44  ;;  %v4767_v43 = vpop.eup %4766  ;;  %v3553_v63 = vmul.f32 %v2816_v49, %v8093_v52  ;;  %v2829_v35 = vand.u32 2147483648, %v8281_v38  ;;  %v2484_v62 = vmul.f32 1.442695, %v2371_v34 }
 0x2b3   : > { %v2341_v33 = vsub.f32 0.0, %v8307_v15  ;;  %v3271_v13 = vmul.f32 %v8300_v2, %v3270_v17  ;;  %vm3274_vm12 = vweird.f32 %v8300_v2  ;;  %v2819_v30 = vmul.f32 %v4767_v43, %v8281_v38 }
 0x2b4   : > { %v3292_v11 = vand.u32 2147483647, %v8297_v20  ;;  %v4136_v19 = vpack.c.bf16 %v3553_v63, %v3552_v42  ;;  %v3294_v50 = vand.u32 2147483648, %v8297_v20  ;;  %v2842_v52 = vand.u32 2147483647, %v8303_v18  ;;  %vm8347_vm14 = vmor %vm3273_vm8, %vm3274_vm12 }
 0x2b5   : > { %v8337_v56 = vadd.f32 1.0, %v4765_v21  ;;  %v3272_v37 = vadd.f32 %v8300_v2, %v3271_v13  ;;  %v2820_v61 = vsub.f32 1.0, %v2819_v30  ;;  %vm8340_vm13 = vcmp.eq.f32.partialorder %v2827_v8, 8.507059e+37  ;;  %v8381_v44 = vpop.f32.mrf.mxu3 }
 0x2b6   : > { %4772 = vpow2.f32 %v2422_v53  ;;  %v4769_v54 = vpop.eup %4768  ;;  %4264 = vst [vmem:[%s6758_s30 + $0x38] sm:$0xff] %v4136_v19   ;;  %vm2824_vm10 = vweird.f32 %v4767_v43  ;;  %v2830_v22 = vor.u32 1.1754944e-38, %v2829_v35  ;;  %vm3288_vm15 = vweird.f32 %v8297_v20 }
 0x2b7   : > { %4774 = vrcp.f32 %v8337_v56  ;;  %v4771_v1 = vpop.eup %4770  ;;  %v3276_v55 = vsel %vm8347_vm14, %v8300_v2, %v3272_v37  ;;  %v2821_v46 = vmul.f32 %v4767_v43, %v2820_v61  ;;  %v3284_v31 = vmul.f32 %v4769_v54, %v8297_v20  ;;  %vm8373_vm4 = vmor %vm2823_vm11, %vm2824_vm10 }
 0x2b8   : > { %vm8357_vm0 = vcmp.eq.f32.partialorder %v3292_v11, 8.507059e+37  ;;  %v2424_v16 = vmul.f32 1.442695, %v2341_v33  ;;  %v3295_v23 = vor.u32 1.1754944e-38, %v3294_v50  ;;  %v2834_v25 = vmul.f32 %v4771_v1, %v8303_v18 }
 0x2b9   : > { %vm2838_vm1 = vweird.f32 %v8303_v18  ;;  %vm8363_vm2 = vcmp.eq.f32.partialorder %v2842_v52, 8.507059e+37  ;;  %v2822_v51 = vadd.f32 %v4767_v43, %v2821_v46  ;;  %v3285_v12 = vsub.f32 1.0, %v3284_v31 }
 0x2ba   : > { %vm3289_vm3 = vweird.f32 %v4769_v54  ;;  %v2844_v14 = vand.u32 2147483648, %v8303_v18  ;;  %v3281_v27 = vsel %vm8322_vm9, %v3280_v41, %v3276_v55  ;;  %v2835_v47 = vsub.f32 1.0, %v2834_v25 }
 0x2bb   : > { %4776 = vpow2.f32 %v2484_v62  ;;  %v8379_v48 = vadd.f32 %v7861_v3, %v8265_v29  ;;  %v2826_v7 = vsel %vm8373_vm4, %v4767_v43, %v2822_v51  ;;  %v3286_v34 = vmul.f32 %v4769_v54, %v3285_v12  ;;  %v2214_v29 = vpop.f32.mrf.mxu1  ;;  %vm3290_vm6 = vmor %vm3288_vm15, %vm3289_vm3 }
 0x2bc   : > { %v4773_v2 = vpop.eup %4772  ;;  %vm2839_vm5 = vweird.f32 %v4771_v1  ;;  %4778 = vpow2.f32 %v2424_v16  ;;  %v2836_v42 = vmul.f32 %v4771_v1, %v2835_v47  ;;  %v8391_v0 = vadd.f32 %v7861_v3, %v2212_v28 }
 0x2bd   : > { %v8385_v38 = vpop.eup %4774  ;;  %v8387_v32 = vadd.f32 1.0, %v4773_v2  ;;  %v2372_v36 = vsub.f32 0.0, %v8379_v48  ;;  %v2831_v41 = vsel %vm8340_vm13, %v2830_v22, %v2826_v7  ;;  %v3287_v8 = vadd.f32 %v4769_v54, %v3286_v34  ;;  %vm2840_vm7 = vmor %vm2838_vm1, %vm2839_vm5 }
 0x2be   : > { %v2845_v21 = vor.u32 1.1754944e-38, %v2844_v14  ;;  %v3299_v49 = vmul.f32 %v8385_v38, %v8337_v56  ;;  %v3584_v17 = vmul.f32 %v3281_v27, %v8151_v58  ;;  %v2837_v5 = vadd.f32 %v4771_v1, %v2836_v42 }
 0x2bf   : > { %v3307_v53 = vand.u32 2147483647, %v8337_v56  ;;  %4780 = vrcp.f32 %v8387_v32  ;;  %v3291_v43 = vsel %vm3290_vm6, %v4769_v54, %v3287_v8  ;;  %v3309_v35 = vand.u32 2147483648, %v8337_v56 }
 0x2c0   : > { %v3300_v63 = vsub.f32 1.0, %v3299_v49  ;;  %v2486_v62 = vmul.f32 1.442695, %v2372_v36  ;;  %v3554_v58 = vmul.f32 %v2831_v41, %v8167_v26  ;;  %v3296_v20 = vsel %vm8357_vm0, %v3295_v23, %v3291_v43 }
 0x2c1   : > { %v4777_v33 = vpop.eup %4776  ;;  %v2841_v28 = vsel %vm2840_vm7, %v4771_v1, %v2837_v5  ;;  %v2342_v13 = vsub.f32 0.0, %v8391_v0  ;;  %v3585_v11 = vmul.f32 %v3296_v20, %v8193_v4  ;;  %vm3304_vm8 = vweird.f32 %v8385_v38  ;;  %v8431_v1 = vpop.f32.mrf.mxu3 }
 0x2c2   : > { %v4779_v30 = vpop.eup %4778  ;;  %v2846_v18 = vsel %vm8363_vm2, %v2845_v21, %v2841_v28  ;;  %v3301_v19 = vmul.f32 %v8385_v38, %v3300_v63  ;;  %v8417_v26 = vadd.f32 1.0, %v4777_v33  ;;  %4782 = vpow2.f32 %v2486_v62 }
 0x2c3   : > { %v3555_v50 = vmul.f32 %v2846_v18, %v8215_v6  ;;  %v8419_v52 = vadd.f32 1.0, %v4779_v30  ;;  %v4216_v37 = vpack.c.bf16 %v3585_v11, %v3584_v17  ;;  %v2857_v4 = vand.u32 2147483647, %v8387_v32  ;;  %v2217_v40 = vpop.f32.mrf.mxu1 }
 0x2c4   : > { %v3302_v61 = vadd.f32 %v8385_v38, %v3301_v19  ;;  %v2859_v10 = vand.u32 2147483648, %v8387_v32  ;;  %4784 = vrcp.f32 %v8417_v26  ;;  %v2426_v22 = vmul.f32 1.442695, %v2342_v13 }
 0x2c5   : > { %v8424_v54 = vpop.eup %4780  ;;  %v4141_v45 = vpack.c.bf16 %v3555_v50, %v3554_v58  ;;  %v8429_v6 = vadd.f32 %v7861_v3, %v8318_v9  ;;  %4280 = vst [vmem:[%s6758_s30 + $0xb8] sm:$0xff] %v4216_v37   ;;  %vm3303_vm9 = vweird.f32 %v8337_v56  ;;  %vm8444_vm12 = vcmp.eq.f32.partialorder %v3307_v53, 8.507059e+37 }
 0x2c6   : > { %v2849_v55 = vmul.f32 %v8424_v54, %v8387_v32  ;;  %vm8440_vm11 = vmor %vm3303_vm9, %vm3304_vm8  ;;  %v3310_v9 = vor.u32 1.1754944e-38, %v3309_v35  ;;  %4786 = vrcp.f32 %v8419_v52  ;;  %vm2853_vm13 = vweird.f32 %v8387_v32 }
 0x2c7   : > { %4265 = vst [vmem:[%s6758_s30 + $0x40] sm:$0xff] %v4141_v45   ;;  %v3306_v56 = vsel %vm8440_vm11, %v8385_v38, %v3302_v61  ;;  %v2860_v23 = vor.u32 1.1754944e-38, %v2859_v10  ;;  %vm8453_vm14 = vcmp.eq.f32.partialorder %v2857_v4, 8.507059e+37  ;;  %v3322_v51 = vand.u32 2147483647, %v8417_v26 }
 0x2c8   : > { %v2850_v16 = vsub.f32 1.0, %v2849_v55  ;;  %v4783_v25 = vpop.eup %4782  ;;  %4788 = vpow2.f32 %v2426_v22  ;;  %v2373_v12 = vsub.f32 0.0, %v8429_v6  ;;  %v8460_v14 = vadd.f32 %v7861_v3, %v2214_v29 }
 0x2c9   : > { %vm2854_vm10 = vweird.f32 %v8424_v54  ;;  %v3324_v57 = vand.u32 2147483648, %v8417_v26  ;;  %v8465_v47 = vadd.f32 1.0, %v4783_v25  ;;  %v3311_v7 = vsel %vm8444_vm12, %v3310_v9, %v3306_v56  ;;  %v8502_v62 = vpop.f32.mrf.mxu3 }
 0x2ca   : > { %v2851_v27 = vmul.f32 %v8424_v54, %v2850_v16  ;;  %v4785_v2 = vpop.eup %4784  ;;  %v2872_v34 = vand.u32 2147483647, %v8419_v52  ;;  %v2488_v38 = vmul.f32 1.442695, %v2373_v12  ;;  %v2343_v42 = vsub.f32 0.0, %v8460_v14  ;;  %vm8489_vm2 = vmor %vm2853_vm13, %vm2854_vm10 }
 0x2cb   : > { %v3314_v29 = vmul.f32 %v4785_v2, %v8417_v26  ;;  %vm3318_vm15 = vweird.f32 %v8417_v26  ;;  %4790 = vrcp.f32 %v8465_v47  ;;  %vm8475_vm0 = vcmp.eq.f32.partialorder %v3322_v51, 8.507059e+37  ;;  %v2219_v30 = vpop.f32.mrf.mxu1  ;;  %v8535_v16 = vld [vmem:[%s9176_s4] ss:$0 sm:$0xff] }
 0x2cc   : > { %v2852_v36 = vadd.f32 %v8424_v54, %v2851_v27  ;;  %v4787_v41 = vpop.eup %4786  ;;  %vm2868_vm1 = vweird.f32 %v8419_v52  ;;  %4792 = vpow2.f32 %v2488_v38  ;;  %v8482_v21 = vadd.f32 %v7861_v3, %v8381_v44 }
 0x2cd   : > { %v3586_v49 = vmul.f32 %v3311_v7, %v8221_v39  ;;  %v3315_v5 = vsub.f32 1.0, %v3314_v29  ;;  %v3325_v53 = vor.u32 1.1754944e-38, %v3324_v57  ;;  %v2864_v43 = vmul.f32 %v4787_v41, %v8419_v52 }
 0x2ce   : > { %v4789_v63 = vpop.eup %4788  ;;  %v2856_v44 = vsel %vm8489_vm2, %v8424_v54, %v2852_v36  ;;  %vm8497_vm3 = vcmp.eq.f32.partialorder %v2872_v34, 8.507059e+37  ;;  %v2874_v39 = vand.u32 2147483648, %v8419_v52  ;;  %v2428_v32 = vmul.f32 1.442695, %v2343_v42 }
 0x2cf   : > { %v3316_v33 = vmul.f32 %v4785_v2, %v3315_v5  ;;  %vm3319_vm4 = vweird.f32 %v4785_v2  ;;  %v2865_v58 = vsub.f32 1.0, %v2864_v43  ;;  %v8504_v20 = vadd.f32 1.0, %v4789_v63 }
 0x2d0   : > { %vm2869_vm5 = vweird.f32 %v4787_v41  ;;  %4794 = vpow2.f32 %v2428_v32  ;;  %v2374_v28 = vsub.f32 0.0, %v8482_v21  ;;  %v8508_v13 = vadd.f32 %v7861_v3, %v2217_v40  ;;  %vm3320_vm6 = vmor %vm3318_vm15, %vm3319_vm4 }
 0x2d1   : > { %v8510_v11 = vpop.eup %4790  ;;  %v2861_v18 = vsel %vm8453_vm14, %v2860_v23, %v2856_v44  ;;  %v3317_v19 = vadd.f32 %v4785_v2, %v3316_v33  ;;  %v2866_v50 = vmul.f32 %v4787_v41, %v2865_v58  ;;  %4796 = vrcp.f32 %v8504_v20  ;;  %vm2870_vm7 = vmor %vm2868_vm1, %vm2869_vm5 }
 0x2d2   : > { %v4793_v37 = vpop.eup %4792  ;;  %v2875_v61 = vor.u32 1.1754944e-38, %v2874_v39  ;;  %v3329_v4 = vmul.f32 %v8510_v11, %v8465_v47  ;;  %v3337_v3 = vand.u32 2147483647, %v8465_v47  ;;  %v3339_v10 = vand.u32 2147483648, %v8465_v47 }
 0x2d3   : > { %v3321_v54 = vsel %vm3320_vm6, %v4785_v2, %v3317_v19  ;;  %v2867_v45 = vadd.f32 %v4787_v41, %v2866_v50  ;;  %v8521_v22 = vadd.f32 1.0, %v4793_v37  ;;  %v2490_v55 = vmul.f32 1.442695, %v2374_v28  ;;  %v8555_v2 = vpop.f32.mrf.mxu3  ;;  %v2222_v29 = vpop.f32.mrf.mxu1 }
 0x2d4   : > { %v3556_v46 = vmul.f32 %v2861_v18, %v8278_v60  ;;  %v3326_v31 = vsel %vm8475_vm0, %v3325_v53, %v3321_v54  ;;  %v3330_v26 = vsub.f32 1.0, %v3329_v4  ;;  %v2344_v9 = vsub.f32 0.0, %v8508_v13 }
 0x2d5   : > { %v3587_v40 = vmul.f32 %v3326_v31, %v8285_v24  ;;  %v2871_v56 = vsel %vm2870_vm7, %v4787_v41, %v2867_v45  ;;  %4798 = vrcp.f32 %v8521_v22  ;;  %v8539_v60 = vadd.f32 %v8535_v16, %v8431_v1 }
 0x2d6   : > { %v4795_v52 = vpop.eup %4794  ;;  %v2876_v23 = vsel %vm8497_vm3, %v2875_v61, %v2871_v56  ;;  %v3331_v25 = vmul.f32 %v8510_v11, %v3330_v26  ;;  %vm3334_vm8 = vweird.f32 %v8510_v11  ;;  %v2889_v24 = vand.u32 2147483648, %v8504_v20 }
 0x2d7   : > { %v8546_v59 = vpop.eup %4796  ;;  %v4221_v51 = vpack.c.bf16 %v3587_v40, %v3586_v49  ;;  %v3557_v12 = vmul.f32 %v2876_v23, %v8307_v15  ;;  %v8549_v27 = vadd.f32 1.0, %v4795_v52  ;;  %4800 = vpow2.f32 %v2490_v55 }
 0x2d8   : > { %v3332_v1 = vadd.f32 %v8510_v11, %v3331_v25  ;;  %vm3333_vm9 = vweird.f32 %v8465_v47  ;;  %v2879_v57 = vmul.f32 %v8546_v59, %v8504_v20  ;;  %vm8558_vm11 = vcmp.eq.f32.partialorder %v3337_v3, 8.507059e+37 }
 0x2d9   : > { %4281 = vst [vmem:[%s6758_s30 + $0xc0] sm:$0xff] %v4221_v51   ;;  %v4146_v7 = vpack.c.bf16 %v3557_v12, %v3556_v46  ;;  %v3340_v15 = vor.u32 1.1754944e-38, %v3339_v10  ;;  %4802 = vrcp.f32 %v8549_v27  ;;  %vm8565_vm12 = vmor %vm3333_vm9, %vm3334_vm8  ;;  %vm2883_vm13 = vweird.f32 %v8504_v20 }
 0x2da   : > { %v2880_v47 = vsub.f32 1.0, %v2879_v57  ;;  %v2887_v42 = vand.u32 2147483647, %v8504_v20  ;;  %v8571_v36 = vor.u32 1.1754944e-38, %v2889_v24  ;;  %v3336_v8 = vsel %vm8565_vm12, %v8510_v11, %v3332_v1 }
 0x2db   : > { %v4799_v41 = vpop.eup %4798  ;;  %4266 = vst [vmem:[%s6758_s30 + $0x48] sm:$0xff] %v4146_v7   ;;  %v2430_v49 = vmul.f32 1.442695, %v2344_v9  ;;  %v2375_v17 = vsub.f32 0.0, %v8539_v60  ;;  %v8579_v5 = vadd.f32 %v8535_v16, %v2219_v30  ;;  %vm3348_vm14 = vweird.f32 %v8521_v22  ;;  %v8622_v31 = vpop.f32.mrf.mxu3 }
 0x2dc   : > { %v2881_v53 = vmul.f32 %v8546_v59, %v2880_v47  ;;  %v3344_v43 = vmul.f32 %v4799_v41, %v8521_v22  ;;  %v3352_v63 = vand.u32 2147483647, %v8521_v22  ;;  %vm2884_vm10 = vweird.f32 %v8546_v59  ;;  %v8634_v25 = vpop.f32.mrf.mxu1 }
 0x2dd   : > { %v4801_v44 = vpop.eup %4800  ;;  %v3354_v35 = vand.u32 2147483648, %v8521_v22  ;;  %4804 = vpow2.f32 %v2430_v49  ;;  %v2492_v39 = vmul.f32 1.442695, %v2375_v17  ;;  %v3341_v32 = vsel %vm8558_vm11, %v3340_v15, %v3336_v8  ;;  %vm8617_vm3 = vmor %vm2883_vm13, %vm2884_vm10 }
 0x2de   : > { %v2882_v33 = vadd.f32 %v8546_v59, %v2881_v53  ;;  %vm8590_vm15 = vcmp.eq.f32.partialorder %v2887_v42, 8.507059e+37  ;;  %v3345_v28 = vsub.f32 1.0, %v3344_v43  ;;  %v8594_v30 = vadd.f32 1.0, %v4801_v44 }
 0x2df   : > { %v4803_v11 = vpop.eup %4802  ;;  %4806 = vpow2.f32 %v2492_v39  ;;  %v2345_v18 = vsub.f32 0.0, %v8579_v5  ;;  %v8599_v19 = vadd.f32 %v8535_v16, %v8502_v62  ;;  %v8602_v50 = vadd.f32 %v8535_v16, %v2222_v29 }
 0x2e0   : > { %v3346_v37 = vmul.f32 %v4799_v41, %v3345_v28  ;;  %vm3349_vm0 = vweird.f32 %v4799_v41  ;;  %vm8604_vm1 = vcmp.eq.f32.partialorder %v3352_v63, 8.507059e+37  ;;  %v2894_v4 = vmul.f32 %v4803_v11, %v8549_v27 }
 0x2e1   : > { %v3355_v3 = vor.u32 1.1754944e-38, %v3354_v35  ;;  %vm2898_vm2 = vweird.f32 %v8549_v27  ;;  %v2904_v10 = vand.u32 2147483648, %v8549_v27  ;;  %4808 = vrcp.f32 %v8594_v30  ;;  %vm3350_vm4 = vmor %vm3348_vm14, %vm3349_vm0 }
 0x2e2   : > { %v3588_v62 = vmul.f32 %v3341_v32, %v8379_v48  ;;  %v3347_v45 = vadd.f32 %v4799_v41, %v3346_v37  ;;  %v2895_v55 = vsub.f32 1.0, %v2894_v4  ;;  %v2902_v46 = vand.u32 2147483647, %v8549_v27 }
 0x2e3   : > { %v4805_v26 = vpop.eup %4804  ;;  %v2886_v9 = vsel %vm8617_vm3, %v8546_v59, %v2882_v33  ;;  %v2432_v48 = vmul.f32 1.442695, %v2345_v18  ;;  %v2376_v20 = vsub.f32 0.0, %v8599_v19  ;;  %v2346_v40 = vsub.f32 0.0, %v8602_v50 }
 0x2e4   : > { %v3351_v56 = vsel %vm3350_vm4, %v4799_v41, %v3347_v45  ;;  %v2896_v52 = vmul.f32 %v4803_v11, %v2895_v55  ;;  %vm2899_vm5 = vweird.f32 %v4803_v11  ;;  %v8632_v23 = vadd.f32 1.0, %v4805_v26  ;;  %v2227_v18 = vpop.f32.mrf.mxu1 }
 0x2e5   : > { %v4807_v24 = vpop.eup %4806  ;;  %v3356_v59 = vsel %vm8604_vm1, %v3355_v3, %v3351_v56  ;;  %v2905_v51 = vor.u32 1.1754944e-38, %v2904_v10  ;;  %4810 = vpow2.f32 %v2432_v48  ;;  %v2494_v22 = vmul.f32 1.442695, %v2376_v20  ;;  %vm2900_vm6 = vmor %vm2898_vm2, %vm2899_vm5 }
 0x2e6   : > { %v3589_v12 = vmul.f32 %v3356_v59, %v8429_v6  ;;  %v2897_v1 = vadd.f32 %v4803_v11, %v2896_v52  ;;  %4812 = vrcp.f32 %v8632_v23  ;;  %v8642_v57 = vadd.f32 %v8535_v16, %v8555_v2 }
 0x2e7   : > { %v4809_v7 = vpop.eup %4808  ;;  %v2891_v34 = vsel %vm8590_vm15, %v8571_v36, %v2886_v9  ;;  %v8649_v15 = vadd.f32 1.0, %v4807_v24  ;;  %4814 = vpow2.f32 %v2494_v22  ;;  %v2434_v6 = vmul.f32 1.442695, %v2346_v40 }
 0x2e8   : > { %v4226_v38 = vpack.c.bf16 %v3589_v12, %v3588_v62  ;;  %v2901_v47 = vsel %vm2900_vm6, %v4803_v11, %v2897_v1  ;;  %vm2903_vm7 = vcmp.eq.f32.partialorder %v2902_v46, 8.507059e+37  ;;  %v3359_v42 = vmul.f32 %v4809_v7, %v8594_v30 }
 0x2e9   : > { %v2906_v29 = vsel %vm2903_vm7, %v2905_v51, %v2901_v47  ;;  %v3367_v2 = vand.u32 2147483647, %v8594_v30  ;;  %4816 = vrcp.f32 %v8649_v15  ;;  %v3558_v41 = vmul.f32 %v2891_v34, %v8391_v0  ;;  %v8664_v0 = vpop.f32.mrf.mxu3 }
 0x2ea   : > { %4282 = vst [vmem:[%s6758_s30 + $0xc8] sm:$0xff] %v4226_v38   ;;  %v3559_v27 = vmul.f32 %v2906_v29, %v8460_v14  ;;  %v3360_v36 = vsub.f32 1.0, %v3359_v42  ;;  %v3369_v8 = vand.u32 2147483648, %v8594_v30  ;;  %vm3363_vm8 = vweird.f32 %v8594_v30 }
 0x2eb   : > { %v4811_v49 = vpop.eup %4810  ;;  %4818 = vpow2.f32 %v2434_v6  ;;  %v2377_v17 = vsub.f32 0.0, %v8642_v57  ;;  %vm3364_vm9 = vweird.f32 %v4809_v7  ;;  %vm8666_vm11 = vcmp.eq.f32.partialorder %v3367_v2, 8.507059e+37 }
 0x2ec   : > { %v8660_v53 = vpop.eup %4812  ;;  %v4151_v43 = vpack.c.bf16 %v3559_v27, %v3558_v41  ;;  %v3361_v63 = vmul.f32 %v4809_v7, %v3360_v36  ;;  %v8662_v44 = vadd.f32 1.0, %v4811_v49  ;;  %v2917_v32 = vand.u32 2147483647, %v8632_v23  ;;  %vm8679_vm12 = vmor %vm3363_vm8, %vm3364_vm9 }
 0x2ed   : > { %v4815_v14 = vpop.eup %4814  ;;  %v2909_v39 = vmul.f32 %v8660_v53, %v8632_v23  ;;  %v2496_v33 = vmul.f32 1.442695, %v2377_v17  ;;  %v3370_v28 = vor.u32 1.1754944e-38, %v3369_v8  ;;  %v2919_v11 = vand.u32 2147483648, %v8632_v23 }
 0x2ee   : > { %4267 = vst [vmem:[%s6758_s30 + $0x50] sm:$0xff] %v4151_v43   ;;  %v3362_v58 = vadd.f32 %v4809_v7, %v3361_v63  ;;  %4820 = vrcp.f32 %v8662_v44  ;;  %vm2913_vm13 = vweird.f32 %v8632_v23  ;;  %v8684_v3 = vadd.f32 1.0, %v4815_v14 }
 0x2ef   : > { %v4817_v37 = vpop.eup %4816  ;;  %v2910_v4 = vsub.f32 1.0, %v2909_v39  ;;  %4822 = vpow2.f32 %v2496_v33  ;;  %v3382_v54 = vand.u32 2147483647, %v8649_v15  ;;  %v3384_v45 = vand.u32 2147483648, %v8649_v15 }
 0x2f0   : > { %v3366_v10 = vsel %vm8679_vm12, %v4809_v7, %v3362_v58  ;;  %v3374_v62 = vmul.f32 %v4817_v37, %v8649_v15  ;;  %vm8692_vm14 = vcmp.eq.f32.partialorder %v2917_v32, 8.507059e+37  ;;  %v2932_v26 = vand.u32 2147483647, %v8662_v44 }
 0x2f1   : > { %v4819_v30 = vpop.eup %4818  ;;  %v2911_v55 = vmul.f32 %v8660_v53, %v2910_v4  ;;  %v2934_v9 = vand.u32 2147483648, %v8662_v44  ;;  %4824 = vrcp.f32 %v8684_v3  ;;  %v2920_v48 = vor.u32 1.1754944e-38, %v2919_v11  ;;  %v2307_v29 = vpop.f32.mrf.mxu3 }
 0x2f2   : > { %v3375_v20 = vsub.f32 1.0, %v3374_v62  ;;  %vm3378_vm10 = vweird.f32 %v8649_v15  ;;  %v8702_v40 = vadd.f32 %v8535_v16, %v8634_v25  ;;  %v3371_v56 = vsel %vm8666_vm11, %v3370_v28, %v3366_v10 }
 0x2f3   : > { %v2912_v52 = vadd.f32 %v8660_v53, %v2911_v55  ;;  %vm2914_vm15 = vweird.f32 %v8660_v53  ;;  %v8708_v24 = vadd.f32 1.0, %v4819_v30  ;;  %vm3379_vm0 = vweird.f32 %v4817_v37 }
 0x2f4   : > { %v4821_v59 = vpop.eup %4820  ;;  %v3376_v51 = vmul.f32 %v4817_v37, %v3375_v20  ;;  %vm8710_vm1 = vcmp.eq.f32.partialorder %v3382_v54, 8.507059e+37  ;;  %v3385_v12 = vor.u32 1.1754944e-38, %v3384_v45  ;;  %vm2928_vm2 = vweird.f32 %v8662_v44  ;;  %vm8723_vm4 = vmor %vm2913_vm13, %vm2914_vm15 }
 0x2f5   : > { %v4823_v1 = vpop.eup %4822  ;;  %v2924_v25 = vmul.f32 %v4821_v59, %v8662_v44  ;;  %vm8716_vm3 = vcmp.eq.f32.partialorder %v2932_v26, 8.507059e+37  ;;  %v2935_v34 = vor.u32 1.1754944e-38, %v2934_v9  ;;  %v3590_v6 = vmul.f32 %v3371_v56, %v8482_v21  ;;  %vm3380_vm5 = vmor %vm3378_vm10, %vm3379_vm0 }
 0x2f6   : > { %v3377_v47 = vadd.f32 %v4817_v37, %v3376_v51  ;;  %v3399_v42 = vand.u32 2147483648, %v8684_v3  ;;  %4826 = vrcp.f32 %v8708_v24  ;;  %v2916_v41 = vsel %vm8723_vm4, %v8660_v53, %v2912_v52  ;;  %v2229_v53 = vpop.f32.mrf.mxu1 }
 0x2f7   : > { %v8729_v2 = vpop.eup %4824  ;;  %v2925_v21 = vsub.f32 1.0, %v2924_v25  ;;  %v2347_v23 = vsub.f32 0.0, %v8702_v40  ;;  %v8740_v27 = vadd.f32 %v8535_v16, %v8622_v31  ;;  %v8744_v49 = vadd.f32 1.0, %v4823_v1 }
 0x2f8   : > { %v3381_v36 = vsel %vm3380_vm5, %v4817_v37, %v3377_v47  ;;  %v3389_v8 = vmul.f32 %v8729_v2, %v8684_v3  ;;  %v8747_v17 = vadd.f32 %v8535_v16, %v2227_v18  ;;  %vm2929_vm6 = vweird.f32 %v4821_v59 }
 0x2f9   : > { %v3386_v15 = vsel %vm8710_vm1, %v3385_v12, %v3381_v36  ;;  %v2926_v43 = vmul.f32 %v4821_v59, %v2925_v21  ;;  %v3397_v63 = vand.u32 2147483647, %v8684_v3  ;;  %v2921_v31 = vsel %vm8692_vm14, %v2920_v48, %v2916_v41  ;;  %vm2930_vm8 = vmor %vm2928_vm2, %vm2929_vm6  ;;  %v2309_v56 = vpop.f32.mrf.mxu3 }
 0x2fa   : > { %v3591_v14 = vmul.f32 %v3386_v15, %v8539_v60  ;;  %v3390_v35 = vsub.f32 1.0, %v3389_v8  ;;  %4828 = vrcp.f32 %v8744_v49  ;;  %vm3393_vm7 = vweird.f32 %v8684_v3 }
 0x2fb   : > { %v2927_v39 = vadd.f32 %v4821_v59, %v2926_v43  ;;  %v3400_v32 = vor.u32 1.1754944e-38, %v3399_v42  ;;  %v2436_v33 = vmul.f32 1.442695, %v2347_v23  ;;  %v2378_v18 = vsub.f32 0.0, %v8740_v27 }
 0x2fc   : > { %v8757_v58 = vpop.eup %4826  ;;  %v4231_v28 = vpack.c.bf16 %v3591_v14, %v3590_v6  ;;  %v3391_v11 = vmul.f32 %v8729_v2, %v3390_v35  ;;  %v2348_v60 = vsub.f32 0.0, %v8747_v17  ;;  %v3560_v37 = vmul.f32 %v2921_v31, %v8508_v13 }
 0x2fd   : > { %v2931_v61 = vsel %vm2930_vm8, %v4821_v59, %v2927_v39  ;;  %v2939_v4 = vmul.f32 %v8757_v58, %v8708_v24  ;;  %v2947_v10 = vand.u32 2147483647, %v8708_v24  ;;  %vm3394_vm9 = vweird.f32 %v8729_v2 }
 0x2fe   : > { %4283 = vst [vmem:[%s6758_s30 + $0xd0] sm:$0xff] %v4231_v28   ;;  %v2936_v62 = vsel %vm8716_vm3, %v2935_v34, %v2931_v61  ;;  %v3392_v44 = vadd.f32 %v8729_v2, %v3391_v11  ;;  %vm8773_vm11 = vcmp.eq.f32.partialorder %v3397_v63, 8.507059e+37  ;;  %vm2943_vm12 = vweird.f32 %v8708_v24  ;;  %vm8797_vm13 = vmor %vm3393_vm7, %vm3394_vm9  ;;  %v2232_v1 = vpop.f32.mrf.mxu1 }
 0x2ff   : > { %4830 = vpow2.f32 %v2436_v33  ;;  %v3561_v13 = vmul.f32 %v2936_v62, %v8579_v5  ;;  %v2940_v45 = vsub.f32 1.0, %v2939_v4  ;;  %v2498_v30 = vmul.f32 1.442695, %v2378_v18 }
 0x300   : > { %v2438_v55 = vmul.f32 1.442695, %v2348_v60  ;;  %v4829_v46 = vpop.eup %4828  ;;  %v2949_v26 = vand.u32 2147483648, %v8708_v24  ;;  %v8782_v9 = vadd.f32 %v8535_v16, %v8664_v0  ;;  %v8785_v48 = vadd.f32 %v8535_v16, %v2229_v53 }
 0x301   : > { %v8788_v20 = vadd.f32 %v8535_v16, %v2307_v29  ;;  %v4156_v52 = vpack.c.bf16 %v3561_v13, %v3560_v37  ;;  %v2941_v5 = vmul.f32 %v8757_v58, %v2940_v45  ;;  %v3404_v59 = vmul.f32 %v4829_v46, %v8744_v49 }
 0x302   : > { %v3412_v51 = vand.u32 2147483647, %v8744_v49  ;;  %vm2944_vm14 = vweird.f32 %v8757_v58  ;;  %v3414_v22 = vand.u32 2147483648, %v8744_v49  ;;  %4832 = vpow2.f32 %v2498_v30 }
 0x303   : > { %v2379_v12 = vsub.f32 0.0, %v8782_v9  ;;  %4268 = vst [vmem:[%s6758_s30 + $0x58] sm:$0xff] %v4156_v52   ;;  %v3396_v25 = vsel %vm8797_vm13, %v8729_v2, %v3392_v44  ;;  %v3405_v7 = vsub.f32 1.0, %v3404_v59  ;;  %4834 = vpow2.f32 %v2438_v55  ;;  %vm8826_vm0 = vmor %vm2943_vm12, %vm2944_vm14 }
 0x304   : > { %v2349_v3 = vsub.f32 0.0, %v8785_v48  ;;  %v2942_v6 = vadd.f32 %v8757_v58, %v2941_v5  ;;  %vm3409_vm10 = vweird.f32 %v4829_v46  ;;  %v2380_v47 = vsub.f32 0.0, %v8788_v20 }
 0x305   : > { %v4831_v34 = vpop.eup %4830  ;;  %v2500_v38 = vmul.f32 1.442695, %v2379_v12  ;;  %v3406_v42 = vmul.f32 %v4829_v46, %v3405_v7  ;;  %v8814_v21 = vadd.f32 %v8535_v16, %v2232_v1  ;;  %vm8816_vm15 = vcmp.eq.f32.partialorder %v2947_v10, 8.507059e+37 }
 0x306   : > { %v8811_v29 = vadd.f32 1.0, %v4831_v34  ;;  %v2440_v41 = vmul.f32 1.442695, %v2349_v3  ;;  %v2950_v23 = vor.u32 1.1754944e-38, %v2949_v26  ;;  %v2502_v36 = vmul.f32 1.442695, %v2380_v47 }
 0x307   : > { %4836 = vpow2.f32 %v2500_v38  ;;  %v3401_v8 = vsel %vm8773_vm11, %v3400_v32, %v3396_v25  ;;  %v3407_v15 = vadd.f32 %v4829_v46, %v3406_v42  ;;  %vm3408_vm1 = vweird.f32 %v8744_v49 }
 0x308   : > { %4838 = vrcp.f32 %v8811_v29  ;;  %v4833_v43 = vpop.eup %4832  ;;  %v2946_v63 = vsel %vm8826_vm0, %v8757_v58, %v2942_v6  ;;  %vm3410_vm2 = vmor %vm3408_vm1, %vm3409_vm10  ;;  %vm3413_vm3 = vcmp.eq.f32.partialorder %v3412_v51, 8.507059e+37  ;;  %v3415_v31 = vor.u32 1.1754944e-38, %v3414_v22  ;;  %v8845_v58 = vpop.f32.mrf.mxu3 }
 0x309   : > { %4840 = vpow2.f32 %v2440_v41  ;;  %v4835_v24 = vpop.eup %4834  ;;  %v3411_v14 = vsel %vm3410_vm2, %v4829_v46, %v3407_v15  ;;  %v8836_v35 = vadd.f32 1.0, %v4833_v43  ;;  %v2350_v39 = vsub.f32 0.0, %v8814_v21 }
 0x30a   : > { %4842 = vpow2.f32 %v2502_v36  ;;  %v3592_v49 = vmul.f32 %v3401_v8, %v8599_v19  ;;  %v3416_v32 = vsel %vm3413_vm3, %v3415_v31, %v3411_v14  ;;  %v8840_v33 = vadd.f32 1.0, %v4835_v24 }
 0x30b   : > { %v8843_v28 = vadd.f32 %v8535_v16, %v2309_v56  ;;  %v2951_v11 = vsel %vm8816_vm15, %v2950_v23, %v2946_v63  ;;  %v3593_v18 = vmul.f32 %v3416_v32, %v8642_v57  ;;  %v2962_v60 = vand.u32 2147483647, %v8811_v29  ;;  %v2234_v56 = vpop.f32.mrf.mxu1 }
 0x30c   : > { %4844 = vrcp.f32 %v8836_v35  ;;  %v2964_v4 = vand.u32 2147483648, %v8811_v29  ;;  %v2442_v62 = vmul.f32 1.442695, %v2350_v39  ;;  %v8857_v54 = vmul.f32 %v2951_v11, %v8602_v50 }
 0x30d   : > { %v4837_v37 = vpop.eup %4836  ;;  %4846 = vrcp.f32 %v8840_v33  ;;  %v4236_v61 = vpack.c.bf16 %v3593_v18, %v3592_v49  ;;  %vm2958_vm4 = vweird.f32 %v8811_v29  ;;  %vm8862_vm5 = vcmp.eq.f32.partialorder %v2962_v60, 8.507059e+37 }
 0x30e   : > { %v4839_v19 = vpop.eup %4838  ;;  %v8854_v10 = vadd.f32 1.0, %v4837_v37  ;;  %v2381_v30 = vsub.f32 0.0, %v8843_v28  ;;  %v3427_v46 = vand.u32 2147483647, %v8836_v35  ;;  %v3429_v50 = vand.u32 2147483648, %v8836_v35 }
 0x30f   : > { %v4841_v44 = vpop.eup %4840  ;;  %v2954_v57 = vmul.f32 %v4839_v19, %v8811_v29  ;;  %4284 = vst [vmem:[%s6758_s30 + $0xd8] sm:$0xff] %v4236_v61   ;;  %v2965_v5 = vor.u32 1.1754944e-38, %v2964_v4  ;;  %v2979_v59 = vand.u32 2147483648, %v8840_v33  ;;  %vm2959_vm6 = vweird.f32 %v4839_v19 }
 0x310   : > { %v4843_v13 = vpop.eup %4842  ;;  %4848 = vrcp.f32 %v8854_v10  ;;  %v8870_v26 = vadd.f32 1.0, %v4841_v44  ;;  %v2977_v1 = vand.u32 2147483647, %v8840_v33  ;;  %vm3423_vm7 = vweird.f32 %v8836_v35  ;;  %v8888_v38 = vpop.f32.mrf.mxu3  ;;  %vm2960_vm11 = vmor %vm2958_vm4, %vm2959_vm6 }
 0x311   : > { %v2955_v55 = vsub.f32 1.0, %v2954_v57  ;;  %v8873_v51 = vadd.f32 1.0, %v4843_v13  ;;  %4850 = vpow2.f32 %v2442_v62  ;;  %vm2973_vm8 = vweird.f32 %v8840_v33 }
 0x312   : > { %v4845_v52 = vpop.eup %4844  ;;  %4852 = vrcp.f32 %v8870_v26  ;;  %vm8884_vm9 = vcmp.eq.f32.partialorder %v3427_v46, 8.507059e+37  ;;  %v3430_v6 = vor.u32 1.1754944e-38, %v3429_v50  ;;  %v2980_v41 = vor.u32 1.1754944e-38, %v2979_v59 }
 0x313   : > { %v8875_v0 = vpop.eup %4846  ;;  %v2956_v22 = vmul.f32 %v4839_v19, %v2955_v55  ;;  %v3419_v12 = vmul.f32 %v4845_v52, %v8836_v35  ;;  %4854 = vrcp.f32 %v8873_v51  ;;  %v2504_v2 = vmul.f32 1.442695, %v2381_v30  ;;  %v2237_v35 = vpop.f32.mrf.mxu1 }
 0x314   : > { %v2969_v25 = vmul.f32 %v8875_v0, %v8840_v33  ;;  %vm3424_vm12 = vweird.f32 %v4845_v52  ;;  %vm8893_vm13 = vcmp.eq.f32.partialorder %v2977_v1, 8.507059e+37  ;;  %v3442_v63 = vand.u32 2147483647, %v8854_v10 }
 0x315   : > { %v2957_v7 = vadd.f32 %v4839_v19, %v2956_v22  ;;  %v3420_v3 = vsub.f32 1.0, %v3419_v12  ;;  %v3444_v31 = vand.u32 2147483648, %v8854_v10  ;;  %vm2974_vm14 = vweird.f32 %v8875_v0  ;;  %vm8907_vm10 = vmor %vm3423_vm7, %vm3424_vm12 }
 0x316   : > { %v4849_v47 = vpop.eup %4848  ;;  %v2970_v42 = vsub.f32 1.0, %v2969_v25  ;;  %4856 = vpow2.f32 %v2504_v2  ;;  %vm8922_vm0 = vmor %vm2973_vm8, %vm2974_vm14  ;;  %vm3438_vm1 = vweird.f32 %v8854_v10  ;;  %vm8927_vm2 = vcmp.eq.f32.partialorder %v3442_v63, 8.507059e+37 }
 0x317   : > { %v2961_v23 = vsel %vm2960_vm11, %v4839_v19, %v2957_v7  ;;  %v3421_v36 = vmul.f32 %v4845_v52, %v3420_v3  ;;  %v3434_v53 = vmul.f32 %v4849_v47, %v8854_v10  ;;  %v4851_v15 = vpop.eup %4850  ;;  %vm3439_vm15 = vweird.f32 %v4849_v47 }
 0x318   : > { %v2966_v43 = vsel %vm8862_vm5, %v2965_v5, %v2961_v23  ;;  %v2971_v29 = vmul.f32 %v8875_v0, %v2970_v42  ;;  %v4853_v49 = vpop.eup %4852  ;;  %v8912_v18 = vadd.f32 1.0, %v4851_v15  ;;  %v3445_v44 = vor.u32 1.1754944e-38, %v3444_v31  ;;  %vm3440_vm3 = vmor %vm3438_vm1, %vm3439_vm15 }
 0x319   : > { %v3563_v24 = vmul.f32 %v2966_v43, %v8702_v40  ;;  %v3422_v14 = vadd.f32 %v4845_v52, %v3421_v36  ;;  %v3435_v39 = vsub.f32 1.0, %v3434_v53  ;;  %v2984_v19 = vmul.f32 %v4853_v49, %v8870_v26  ;;  %v8918_v61 = vpop.eup %4854 }
 0x31a   : > { %v2972_v11 = vadd.f32 %v8875_v0, %v2971_v29  ;;  %vm2988_vm4 = vweird.f32 %v8870_v26  ;;  %v2994_v10 = vand.u32 2147483648, %v8870_v26  ;;  %v3449_v30 = vmul.f32 %v8918_v61, %v8873_v51 }
 0x31b   : > { %v4161_v40 = vpack.c.bf16 %v3563_v24, %v8857_v54  ;;  %v3426_v60 = vsel %vm8907_vm10, %v4845_v52, %v3422_v14  ;;  %v3436_v37 = vmul.f32 %v4849_v47, %v3435_v39  ;;  %v8932_v54 = vadd.f32 %v8535_v16, %v2234_v56  ;;  %v2317_v56 = vpop.f32.mrf.mxu3  ;;  %v2239_v23 = vpop.f32.mrf.mxu1 }
 0x31c   : > { %v3431_v57 = vsel %vm8884_vm9, %v3430_v6, %v3426_v60  ;;  %v2976_v33 = vsel %vm8922_vm0, %v8875_v0, %v2972_v11  ;;  %v2985_v45 = vsub.f32 1.0, %v2984_v19  ;;  %4858 = vrcp.f32 %v8912_v18  ;;  %v4857_v52 = vpop.eup %4856 }
 0x31d   : > { %4269 = vst [vmem:[%s6758_s30 + $0x60] sm:$0xff] %v4161_v40   ;;  %v3437_v13 = vadd.f32 %v4849_v47, %v3436_v37  ;;  %vm2989_vm5 = vweird.f32 %v4853_v49  ;;  %v2992_v50 = vand.u32 2147483647, %v8870_v26  ;;  %v3594_v5 = vmul.f32 %v3431_v57, %v8740_v27 }
 0x31e   : > { %v2986_v46 = vmul.f32 %v4853_v49, %v2985_v45  ;;  %v2981_v59 = vsel %vm8893_vm13, %v2980_v41, %v2976_v33  ;;  %v2351_v22 = vsub.f32 0.0, %v8932_v54  ;;  %v3450_v25 = vsub.f32 1.0, %v3449_v30  ;;  %vm2990_vm6 = vmor %vm2988_vm4, %vm2989_vm5 }
 0x31f   : > { %v3441_v55 = vsel %vm3440_vm3, %v4849_v47, %v3437_v13  ;;  %v8954_v7 = vadd.f32 1.0, %v4857_v52  ;;  %v2995_v3 = vor.u32 1.1754944e-38, %v2994_v10  ;;  %v8960_v34 = vadd.f32 %v8535_v16, %v8845_v58 }
 0x320   : > { %v3446_v0 = vsel %vm8927_vm2, %v3445_v44, %v3441_v55  ;;  %v2987_v1 = vadd.f32 %v4853_v49, %v2986_v46  ;;  %v2444_v27 = vmul.f32 1.442695, %v2351_v22  ;;  %vm2993_vm7 = vcmp.eq.f32.partialorder %v2992_v50, 8.507059e+37 }
 0x321   : > { %v3595_v12 = vmul.f32 %v3446_v0, %v8782_v9  ;;  %4860 = vrcp.f32 %v8954_v7  ;;  %v3564_v9 = vmul.f32 %v2981_v59, %v8747_v17  ;;  %v3451_v2 = vmul.f32 %v8918_v61, %v3450_v25 }
 0x322   : > { %v2991_v47 = vsel %vm2990_vm6, %v4853_v49, %v2987_v1  ;;  %v8963_v42 = vpop.eup %4858  ;;  %4862 = vpow2.f32 %v2444_v27  ;;  %vm3453_vm8 = vweird.f32 %v8873_v51  ;;  %v2382_v36 = vsub.f32 0.0, %v8960_v34 }
 0x323   : > { %v4241_v6 = vpack.c.bf16 %v3595_v12, %v3594_v5  ;;  %v2996_v41 = vsel %vm2993_vm7, %v2995_v3, %v2991_v47  ;;  %v2999_v58 = vmul.f32 %v8963_v42, %v8912_v18  ;;  %v3457_v53 = vand.u32 2147483647, %v8873_v51  ;;  %v2319_v49 = vpop.f32.mrf.mxu3 }
 0x324   : > { %v3565_v26 = vmul.f32 %v2996_v41, %v8785_v48  ;;  %v3459_v17 = vand.u32 2147483648, %v8873_v51  ;;  %v8976_v15 = vadd.f32 %v8535_v16, %v2237_v35  ;;  %vm3454_vm9 = vweird.f32 %v8918_v61 }
 0x325   : > { %4285 = vst [vmem:[%s6758_s30 + $0xe0] sm:$0xff] %v4241_v6   ;;  %v2506_v48 = vmul.f32 1.442695, %v2382_v36  ;;  %v8981_v43 = vadd.f32 %v8535_v16, %v8888_v38  ;;  %v8984_v29 = vadd.f32 %v8535_v16, %v2239_v23  ;;  %v3452_v31 = vadd.f32 %v8918_v61, %v3451_v2  ;;  %vm9002_vm11 = vmor %vm3453_vm8, %vm3454_vm9 }
 0x326   : > { %v4166_v8 = vpack.c.bf16 %v3565_v26, %v3564_v9  ;;  %v3000_v24 = vsub.f32 1.0, %v2999_v58  ;;  %v2352_v14 = vsub.f32 0.0, %v8976_v15  ;;  %v8990_v39 = vadd.f32 %v8535_v16, %v2317_v56 }
 0x327   : > { %v4861_v63 = vpop.eup %4860  ;;  %v3472_v11 = vand.u32 2147483647, %v8954_v7  ;;  %4864 = vpow2.f32 %v2506_v48  ;;  %v2383_v38 = vsub.f32 0.0, %v8981_v43  ;;  %v3474_v60 = vand.u32 2147483648, %v8954_v7 }
 0x328   : > { %4270 = vst [vmem:[%s6758_s30 + $0x68] sm:$0xff] %v4166_v8   ;;  %v3464_v32 = vmul.f32 %v4861_v63, %v8954_v7  ;;  %v4863_v40 = vpop.eup %4862  ;;  %v2446_v37 = vmul.f32 1.442695, %v2352_v14  ;;  %v2353_v19 = vsub.f32 0.0, %v8984_v29  ;;  %v2384_v35 = vsub.f32 0.0, %v8990_v39 }
 0x329   : > { %v9006_v44 = vadd.f32 1.0, %v4863_v40  ;;  %v2508_v57 = vmul.f32 1.442695, %v2383_v38  ;;  %v9009_v33 = vadd.f32 %v8535_v16, %v2319_v49  ;;  %v3456_v13 = vsel %vm9002_vm11, %v8918_v61, %v3452_v31 }
 0x32a   : > { %v3465_v62 = vsub.f32 1.0, %v3464_v32  ;;  %v3001_v45 = vmul.f32 %v8963_v42, %v3000_v24  ;;  %4866 = vpow2.f32 %v2446_v37  ;;  %v2448_v10 = vmul.f32 1.442695, %v2353_v19 }
 0x32b   : > { %vm3469_vm12 = vweird.f32 %v4861_v63  ;;  %4868 = vrcp.f32 %v9006_v44  ;;  %v2510_v30 = vmul.f32 1.442695, %v2384_v35  ;;  %vm3458_vm13 = vcmp.eq.f32.partialorder %v3457_v53, 8.507059e+37 }
 0x32c   : > { %v3466_v51 = vmul.f32 %v4861_v63, %v3465_v62  ;;  %v3460_v55 = vor.u32 1.1754944e-38, %v3459_v17  ;;  %vm3468_vm14 = vweird.f32 %v8954_v7  ;;  %4870 = vpow2.f32 %v2508_v57 }
 0x32d   : > { %v4865_v16 = vpop.eup %4864  ;;  %vm3004_vm10 = vweird.f32 %v8963_v42  ;;  %4872 = vpow2.f32 %v2448_v10  ;;  %v2385_v61 = vsub.f32 0.0, %v9009_v33  ;;  %v3002_v56 = vadd.f32 %v8963_v42, %v3001_v45  ;;  %vm3470_vm15 = vmor %vm3468_vm14, %vm3469_vm12 }
 0x32e   : > { %v3467_v46 = vadd.f32 %v4861_v63, %v3466_v51  ;;  %v3461_v50 = vsel %vm3458_vm13, %v3460_v55, %v3456_v13  ;;  %v3475_v52 = vor.u32 1.1754944e-38, %v3474_v60  ;;  %v9020_v5 = vadd.f32 1.0, %v4865_v16 }
 0x32f   : > { %v3009_v59 = vand.u32 2147483648, %v8912_v18  ;;  %vm3473_vm0 = vcmp.eq.f32.partialorder %v3472_v11, 8.507059e+37  ;;  %4874 = vpow2.f32 %v2510_v30  ;;  %vm3003_vm1 = vweird.f32 %v8912_v18 }
 0x330   : > { %v3471_v0 = vsel %vm3470_vm15, %v4861_v63, %v3467_v46  ;;  %v4867_v22 = vpop.eup %4866  ;;  %v3007_v12 = vand.u32 2147483647, %v8912_v18  ;;  %4876 = vrcp.f32 %v9020_v5  ;;  %v3596_v7 = vmul.f32 %v3461_v50, %v8788_v20  ;;  %vm9029_vm2 = vmor %vm3003_vm1, %vm3004_vm10 }
 0x331   : > { %v3476_v1 = vsel %vm3473_vm0, %v3475_v52, %v3471_v0  ;;  %v4869_v25 = vpop.eup %4868  ;;  %v9034_v6 = vadd.f32 1.0, %v4867_v22  ;;  %v2512_v47 = vmul.f32 1.442695, %v2385_v61  ;;  %v3006_v18 = vsel %vm9029_vm2, %v8963_v42, %v3002_v56 }
 0x332   : > { %v3597_v27 = vmul.f32 %v3476_v1, %v8843_v28  ;;  %v4871_v9 = vpop.eup %4870  ;;  %v3014_v41 = vmul.f32 %v4869_v25, %v9006_v44  ;;  %v3010_v26 = vor.u32 1.1754944e-38, %v3009_v59  ;;  %vm3008_vm3 = vcmp.eq.f32.partialorder %v3007_v12, 8.507059e+37 }
 0x333   : > { %v4873_v20 = vpop.eup %4872  ;;  %4878 = vrcp.f32 %v9034_v6  ;;  %v9041_v23 = vadd.f32 1.0, %v4871_v9  ;;  %v3024_v8 = vand.u32 2147483648, %v9006_v44  ;;  %vm3019_vm4 = vweird.f32 %v4869_v25 }
 0x334   : > { %v4246_v2 = vpack.c.bf16 %v3597_v27, %v3596_v7  ;;  %v3015_v58 = vsub.f32 1.0, %v3014_v41  ;;  %v3011_v36 = vsel %vm3008_vm3, %v3010_v26, %v3006_v18  ;;  %v9045_v53 = vadd.f32 1.0, %v4873_v20 }
 0x335   : > { %v4875_v28 = vpop.eup %4874  ;;  %4880 = vpow2.f32 %v2512_v47  ;;  %v3022_v48 = vand.u32 2147483647, %v9006_v44  ;;  %vm3018_vm5 = vweird.f32 %v9006_v44  ;;  %v3487_v31 = vand.u32 2147483647, %v9020_v5 }
 0x336   : > { %4286 = vst [vmem:[%s6758_s30 + $0xe8] sm:$0xff] %v4246_v2   ;;  %v9047_v42 = vpop.eup %4876  ;;  %v3016_v17 = vmul.f32 %v4869_v25, %v3015_v58  ;;  %4882 = vrcp.f32 %v9041_v23  ;;  %v3489_v14 = vand.u32 2147483648, %v9020_v5  ;;  %v9057_v49 = vadd.f32 1.0, %v4875_v28  ;;  %vm3020_vm6 = vmor %vm3018_vm5, %vm3019_vm4 }
 0x337   : > { %v3479_v63 = vmul.f32 %v9047_v42, %v9020_v5  ;;  %4884 = vrcp.f32 %v9045_v53  ;;  %v3566_v11 = vmul.f32 %v3011_v36, %v8814_v21  ;;  %v3025_v38 = vor.u32 1.1754944e-38, %v3024_v8 }
 0x338   : > { %v3017_v24 = vadd.f32 %v4869_v25, %v3016_v17  ;;  %vm3023_vm7 = vcmp.eq.f32.partialorder %v3022_v48, 8.507059e+37  ;;  %vm3483_vm8 = vweird.f32 %v9020_v5  ;;  %vm9066_vm9 = vcmp.eq.f32.partialorder %v3487_v31, 8.507059e+37 }
 0x339   : > { %v9059_v32 = vpop.eup %4878  ;;  %v3480_v40 = vsub.f32 1.0, %v3479_v63  ;;  %v3037_v21 = vand.u32 2147483647, %v9034_v6  ;;  %v3490_v13 = vor.u32 1.1754944e-38, %v3489_v14  ;;  %4886 = vrcp.f32 %v9057_v49 }
 0x33a   : > { %v3021_v60 = vsel %vm3020_vm6, %v4869_v25, %v3017_v24  ;;  %v3029_v37 = vmul.f32 %v9059_v32, %v9034_v6  ;;  %vm3484_vm11 = vweird.f32 %v9047_v42  ;;  %vm3033_vm12 = vweird.f32 %v9034_v6 }
 0x33b   : > { %v4881_v19 = vpop.eup %4880  ;;  %v3026_v35 = vsel %vm3023_vm7, %v3025_v38, %v3021_v60  ;;  %v3481_v4 = vmul.f32 %v9047_v42, %v3480_v40  ;;  %v3039_v46 = vand.u32 2147483648, %v9034_v6  ;;  %vm3034_vm13 = vweird.f32 %v9059_v32  ;;  %vm9090_vm10 = vmor %vm3483_vm8, %vm3484_vm11 }
 0x33c   : > { %v4883_v44 = vpop.eup %4882  ;;  %v3567_v57 = vmul.f32 %v3026_v35, %v8932_v54  ;;  %v3030_v45 = vsub.f32 1.0, %v3029_v37  ;;  %v9079_v54 = vadd.f32 1.0, %v4881_v19  ;;  %vm9082_vm14 = vcmp.eq.f32.partialorder %v3037_v21, 8.507059e+37  ;;  %vm9105_vm0 = vmor %vm3033_vm12, %vm3034_vm13 }
 0x33d   : > { %v3482_v10 = vadd.f32 %v9047_v42, %v3481_v4  ;;  %v3494_v51 = vmul.f32 %v4883_v44, %v9041_v23  ;;  %v4885_v30 = vpop.eup %4884  ;;  %vm3499_vm15 = vweird.f32 %v4883_v44  ;;  %v3502_v0 = vand.u32 2147483647, %v9041_v23 }
 0x33e   : > { %v4171_v55 = vpack.c.bf16 %v3567_v57, %v3566_v11  ;;  %v3031_v16 = vmul.f32 %v9059_v32, %v3030_v45  ;;  %v3044_v56 = vmul.f32 %v4885_v30, %v9045_v53  ;;  %v3504_v22 = vand.u32 2147483648, %v9041_v23 }
 0x33f   : > { %v3495_v50 = vsub.f32 1.0, %v3494_v51  ;;  %v3486_v12 = vsel %vm9090_vm10, %v9047_v42, %v3482_v10  ;;  %4888 = vrcp.f32 %v9079_v54  ;;  %v4887_v5 = vpop.eup %4886  ;;  %vm3498_vm1 = vweird.f32 %v9041_v23 }
 0x340   : > { %4271 = vst [vmem:[%s6758_s30 + $0x70] sm:$0xff] %v4171_v55   ;;  %v3032_v59 = vadd.f32 %v9059_v32, %v3031_v16  ;;  %v3045_v25 = vsub.f32 1.0, %v3044_v56  ;;  %vm3049_vm2 = vweird.f32 %v4885_v30  ;;  %v3052_v3 = vand.u32 2147483647, %v9045_v53  ;;  %vm3500_vm3 = vmor %vm3498_vm1, %vm3499_vm15 }
 0x341   : > { %v3496_v1 = vmul.f32 %v4883_v44, %v3495_v50  ;;  %v3054_v27 = vand.u32 2147483648, %v9045_v53  ;;  %v3509_v41 = vmul.f32 %v4887_v5, %v9057_v49  ;;  %v3491_v6 = vsel %vm9066_vm9, %v3490_v13, %v3486_v12 }
 0x342   : > { %v3036_v47 = vsel %vm9105_vm0, %v9059_v32, %v3032_v59  ;;  %v3046_v18 = vmul.f32 %v4885_v30, %v3045_v25  ;;  %v3040_v20 = vor.u32 1.1754944e-38, %v3039_v46  ;;  %v3505_v26 = vor.u32 1.1754944e-38, %v3504_v22 }
 0x343   : > { %v3497_v9 = vadd.f32 %v4883_v44, %v3496_v1  ;;  %vm3048_vm4 = vweird.f32 %v9045_v53  ;;  %vm3503_vm5 = vcmp.eq.f32.partialorder %v3502_v0, 8.507059e+37  ;;  %v3510_v23 = vsub.f32 1.0, %v3509_v41 }
 0x344   : > { %v3047_v58 = vadd.f32 %v4885_v30, %v3046_v18  ;;  %v3041_v28 = vsel %vm9082_vm14, %v3040_v20, %v3036_v47  ;;  %vm3050_vm6 = vmor %vm3048_vm4, %vm3049_vm2  ;;  %vm3053_vm7 = vcmp.eq.f32.partialorder %v3052_v3, 8.507059e+37  ;;  %v3055_v8 = vor.u32 1.1754944e-38, %v3054_v27 }
 0x345   : > { %v3501_v2 = vsel %vm3500_vm3, %v4883_v44, %v3497_v9  ;;  %v4889_v42 = vpop.eup %4888  ;;  %v3598_v17 = vmul.f32 %v3491_v6, %v8960_v34  ;;  %v3511_v63 = vmul.f32 %v4887_v5, %v3510_v23  ;;  %vm3514_vm8 = vweird.f32 %v4887_v5 }
 0x346   : > { %v3506_v36 = vsel %vm3503_vm5, %v3505_v26, %v3501_v2  ;;  %v3051_v53 = vsel %vm3050_vm6, %v4885_v30, %v3047_v58  ;;  %v3519_v24 = vand.u32 2147483648, %v9057_v49  ;;  %v3524_v14 = vmul.f32 %v4889_v42, %v9079_v54 }
 0x347   : > { %v3599_v48 = vmul.f32 %v3506_v36, %v8981_v43  ;;  %v3056_v31 = vsel %vm3053_vm7, %v3055_v8, %v3051_v53  ;;  %v3568_v32 = vmul.f32 %v3041_v28, %v8976_v15  ;;  %v3512_v40 = vadd.f32 %v4887_v5, %v3511_v63 }
 0x348   : > { %v3569_v38 = vmul.f32 %v3056_v31, %v8984_v29  ;;  %vm3513_vm9 = vweird.f32 %v9057_v49  ;;  %v3517_v34 = vand.u32 2147483647, %v9057_v49  ;;  %v3525_v43 = vsub.f32 1.0, %v3524_v14 }
 0x349   : > { %v4251_v11 = vpack.c.bf16 %v3599_v48, %v3598_v17  ;;  %vm3515_vm11 = vmor %vm3513_vm9, %vm3514_vm8  ;;  %v3534_v37 = vand.u32 2147483648, %v9079_v54  ;;  %vm3529_vm12 = vweird.f32 %v4889_v42  ;;  %v3532_v15 = vand.u32 2147483647, %v9079_v54 }
 0x34a   : > { %v4176_v60 = vpack.c.bf16 %v3569_v38, %v3568_v32  ;;  %v3516_v19 = vsel %vm3515_vm11, %v4887_v5, %v3512_v40  ;;  %v3526_v35 = vmul.f32 %v4889_v42, %v3525_v43  ;;  %v3520_v29 = vor.u32 1.1754944e-38, %v3519_v24 }
 0x34b   : > { %4287 = vst [vmem:[%s6758_s30 + $0xf0] sm:$0xff] %v4251_v11   ;;  %vm3518_vm13 = vcmp.eq.f32.partialorder %v3517_v34, 8.507059e+37  ;;  %vm3528_vm14 = vweird.f32 %v9079_v54  ;;  %v3535_v62 = vor.u32 1.1754944e-38, %v3534_v37  ;;  %vm3533_vm15 = vcmp.eq.f32.partialorder %v3532_v15, 8.507059e+37 }
 0x34c   : > { %4272 = vst [vmem:[%s6758_s30 + $0x78] sm:$0xff] %v4176_v60   ;;  %v3527_v49 = vadd.f32 %v4889_v42, %v3526_v35  ;;  %v3521_v4 = vsel %vm3518_vm13, %v3520_v29, %v3516_v19  ;;  %vm3530_vm10 = vmor %vm3528_vm14, %vm3529_vm12 }
 0x34d   : > { %v3600_v57 = vmul.f32 %v3521_v4, %v8990_v39 }
 0x34e   : > { %v3531_v21 = vsel %vm3530_vm10, %v4889_v42, %v3527_v49 }
 0x34f   : > { %v3536_v44 = vsel %vm3533_vm15, %v3535_v62, %v3531_v21 }
 0x350   : > { %v3601_v13 = vmul.f32 %v3536_v44, %v9009_v33 }
 0x352   : > { %v4256_v45 = vpack.c.bf16 %v3601_v13, %v3600_v57 }
 0x354   : > { %4288 = vst [vmem:[%s6758_s30 + $0xf8] sm:$0xff] %v4256_v45  }
 0x355   : > { %5013 = shalt.err (!%p5010_p10)
}
 0x356   : > { %s5062_s8 = smov 64   ;;  %s5063_s30 = smov 4  }
 0x357   : > { %4315 = dma.vmem_to_hbm [thread:$0]  (%p5165_p0), %s3744_s22, 4096, %s3746_s15, %s3731_s27, %s5062_s8, %s5062_s8, %s5063_s30  }
 0x358 PF: > { %p4337_p11 = scmp.ge.s32.totalorder %s5056_s21, 2  ;;  %s3760_s29 = sand.u32 1, %s5044_s18  }
 0x359   : > { %s3761_s11 = scalar_lea.sflag [#allocation4], %s3760_s29 }
 0x35a   : > { %p4329_p12 = pnand %p4337_p11, %p5129_p6 }
 0x35c   : > { %p4330_p13 = pneg %p4329_p12 }
 0x35e   : > { %5039 = dma.done.wait (%p4330_p13), %s3761_s11, 4096  }
 0x35f   : > { %5041 = vsyncadd (%p4330_p13), %s3761_s11, 4294963200  ;;  %p19_p3 = scmp.ge.s32.totalorder %s5155_s14, 7   ;;  %s9537_s18 = smov %s5048_s19 }
 0x360   : > { %s9538_s19 = smov %s5052_s20  ;;  %s9539_s20 = smov %s5171_s23 }
 0x361   : > { %s9540_s21 = smov %s5155_s14  ;;  %21 = sbr.rel (!%p19_p3) target bundleno = 6 (0x6), region = 93 }
 0x366   :  { %3767 = vsyncpa [#allocation3], 1 }
 0x367   :  { %3769 = vsyncpa [#allocation3 + $0x1], 1 }
 0x368   :  { %3770 = vsyncpa [#allocation6], 1 }
 0x369   :  { %3771 = vsyncpa [#allocation4], 1 }
 0x36a   :  { %3773 = vsyncpa [#allocation4 + $0x1], 1 }

</bundles_post_ra>
